<compile_context>
chip_gen: v7x
topology: tpu7x:2x2x1
jax: 0.10.0
libtpu: 0.0.40
codegen_flags: <defaults>
</compile_context>

<pallas_src>
import numpy as np
import jax
import jax.numpy as jnp
from jax import lax
from jax.experimental import pallas as pl
from jax.experimental.pallas import tpu as pltpu

EPS = 1e-5


# ----------------------------------------------------------------------------
# small host-side helpers (static numpy)
# ----------------------------------------------------------------------------
def _bilinear_matrix(n_in, n_out):
    """align_corners=True bilinear interpolation matrix, shape (n_out, n_in)."""
    M = np.zeros((n_out, n_in), dtype=np.float32)
    if n_in == 1:
        M[:, 0] = 1.0
        return M
    for o in range(n_out):
        c = o * (n_in - 1) / (n_out - 1)
        i0 = min(int(np.floor(c)), n_in - 1)
        i1 = min(i0 + 1, n_in - 1)
        f = c - i0
        M[o, i0] += 1.0 - f
        M[o, i1] += f
    return M


def _lerp_taps(n_in, n_out):
    """Static (i0, i1, frac) 2-tap taps for align_corners=True upsampling."""
    if n_in == 1:
        return [(0, 0, 0.0)] * n_out
    taps = []
    for o in range(n_out):
        c = o * (n_in - 1) / (n_out - 1)
        i0 = min(int(np.floor(c)), n_in - 1)
        i1 = min(i0 + 1, n_in - 1)
        taps.append((i0, i1, float(c - i0)))
    return taps


# ----------------------------------------------------------------------------
# in-kernel helpers
# ----------------------------------------------------------------------------
def _zero_halo(ref, H, W, C):
    """Zero only the 1-px halo ring of a (H+2, W+2, C) padded scratch."""
    f32 = jnp.float32
    zr = jnp.zeros((1, W + 2, C), f32)
    ref[0:1, :, :] = zr
    ref[H + 1:H + 2, :, :] = zr
    zc = jnp.zeros((H + 2, 1, C), f32)
    ref[:, 0:1, :] = zc
    ref[:, W + 1:W + 2, :] = zc


def _conv3x3(pad_ref, w_ref, H, W):
    """3x3 'same' conv as 9 accumulated MXU matmuls (no im2col temporary).

    Taps come from 3 dx-shifted slabs (one sublane-shifted load + bf16 cast
    per dx) and free leading-dim slices per dy.  f32 accumulation.
    """
    S = H * W
    cout = w_ref.shape[-1]
    acc = jnp.zeros((S, cout), jnp.float32)
    for dx in range(3):
        slab = pad_ref[:, dx:dx + W, :].astype(jnp.bfloat16)     # (H+2, W, Cin)
        cin = slab.shape[-1]
        for dy in range(3):
            lhs = slab[dy:dy + H].reshape(S, cin)                # minor dim kept
            acc = acc + jnp.dot(lhs, w_ref[dy * 3 + dx],
                                preferred_element_type=jnp.float32)
    return acc


def _batch_stats(y, st_ref, n):
    """Per-batch centered BN partials: mean and sum of squared deviations."""
    mb = jnp.sum(y, axis=0, keepdims=True) * (1.0 / n)
    d = y - mb
    st_ref[0, 0:1, :] = mb
    st_ref[0, 1:2, :] = jnp.sum(d * d, axis=0, keepdims=True)


# ----------------------------------------------------------------------------
# pass 1: upsample + pad + "concat" + conv1 (+ per-batch BN1 partials)
# ----------------------------------------------------------------------------
def _make_conv1_kernel(H1, W1, C1, H2, W2, C2, oy, ox, h_taps, up_border):
    Hu, Wu = 2 * H1, 2 * W1
    S2 = H2 * W2
    f32 = jnp.float32

    def kernel(x1_ref, x2_ref, mw_ref, w1a_ref, w1b_ref,
               y1_ref, st_ref, padA, padB):
        # zero only the halo rings; interiors are fully overwritten below
        _zero_halo(padA, H2, W2, C2)
        if up_border:   # F.pad centring leaves a zero border around `up`
            padB[...] = jnp.zeros((H2 + 2, W2 + 2, C1), f32)
        else:
            _zero_halo(padB, H2, W2, C1)

        # skip connection: ONE bulk store, no reshape
        padA[1:H2 + 1, 1:W2 + 1, :] = x2_ref[0]

        # separable bilinear upsample of x1 (scale=2, align_corners=True)
        #   W pass: batched MXU matmul (batch = H1 rows)
        #   H pass: static 2-tap lerp on leading-axis slices, ONE bulk store
        x13 = x1_ref[0]                                           # (H1, W1, C1)
        mwb = jnp.broadcast_to(mw_ref[...], (H1, Wu, W1))
        tw = lax.dot_general(mwb, x13, (((2,), (1,)), ((0,), (0,))),
                             preferred_element_type=f32)          # (H1, Wu, C1)
        rows = []
        for (j0, j1, g) in h_taps:
            if g == 0.0 or j0 == j1:
                rows.append(tw[j0:j0 + 1])
            else:
                rows.append(tw[j0:j0 + 1] * (1.0 - g) + tw[j1:j1 + 1] * g)
        up = jnp.concatenate(rows, axis=0)                        # (Hu, Wu, C1)
        padB[1 + oy:1 + oy + Hu, 1 + ox:1 + ox + Wu, :] = up

        # conv1 (3x3, pad=1, no bias): the channel concat is realised by
        # splitting the weights across the two source buffers.
        y = _conv3x3(padA, w1a_ref, H2, W2) + _conv3x3(padB, w1b_ref, H2, W2)

        _batch_stats(y, st_ref, S2)
        y1_ref[0] = y.astype(y1_ref.dtype)                        # bf16 out

    return kernel


# ----------------------------------------------------------------------------
# pass 2: BN1 + ReLU + conv2 (+ per-batch BN2 partials)
# ----------------------------------------------------------------------------
def _make_conv2_kernel(H2, W2, Cmid):
    S2 = H2 * W2
    f32 = jnp.float32

    def kernel(y1_ref, a1_ref, c1_ref, w2_ref, y2_ref, st_ref, padM):
        _zero_halo(padM, H2, W2, Cmid)

        # BatchNorm1 (global batch stats folded into scale/shift) + ReLU (f32)
        h1 = jnp.maximum(y1_ref[0].astype(f32) * a1_ref[...] + c1_ref[...],
                         0.0)                                     # (S2, Cmid)
        padM[1:H2 + 1, 1:W2 + 1, :] = h1.reshape(H2, W2, Cmid)

        y = _conv3x3(padM, w2_ref, H2, W2)                        # (S2, Cout)

        _batch_stats(y, st_ref, S2)
        y2_ref[0] = y.astype(y2_ref.dtype)                        # bf16 out

    return kernel


# ----------------------------------------------------------------------------
# pass 3: BN2 + ReLU, emitting NC(HW) directly (lane-dense store over S2)
# ----------------------------------------------------------------------------
def _make_bn_relu_nchw_kernel(Cout):
    def kernel(y2_ref, a2_ref, c2_ref, out_ref):
        f32 = jnp.float32
        o = jnp.maximum(y2_ref[0].astype(f32) * a2_ref[...] + c2_ref[...],
                        0.0)                                      # (S2, Cout)
        # (S2, Cout) -> (Cout, S2) via a trans_b-style matmul with the
        # identity, so the kernel writes NCHW directly (no trailing XLA
        # transpose, unmasked lane-dense stores over S2).
        eye = (lax.broadcasted_iota(jnp.int32, (Cout, Cout), 0) ==
               lax.broadcasted_iota(jnp.int32, (Cout, Cout), 1)).astype(f32)
        out_ref[0] = lax.dot_general(eye, o, (((1,), (1,)), ((), ())),
                                     preferred_element_type=f32)

    return kernel


# ----------------------------------------------------------------------------
# wrapper
# ----------------------------------------------------------------------------
def _bn_affine(st, gamma, beta, n_per_batch):
    """Combine per-batch (mean, M2) partials (Chan) -> BN affine scale/shift."""
    mb = st[:, 0, :]                       # (B, C)
    m2b = st[:, 1, :]
    B = st.shape[0]
    mean = jnp.mean(mb, axis=0)
    M2 = jnp.sum(m2b, axis=0) + n_per_batch * jnp.sum((mb - mean) ** 2, axis=0)
    var = M2 / (B * n_per_batch)           # biased, like torch BN (training)
    a = gamma * lax.rsqrt(var + EPS)
    c = beta - mean * a
    return (a.reshape(1, -1).astype(jnp.float32),
            c.reshape(1, -1).astype(jnp.float32))


def up_forward_pallas(x1_nchw, x2_nchw, params):
    """Up.forward(x1, x2) — x1 gets upsampled, x2 is the skip connection."""
    w1_oihw, g1, b1, w2_oihw, g2, b2 = params
    B, C1, H1, W1 = x1_nchw.shape
    B2, C2, H2, W2 = x2_nchw.shape
    assert B2 == B
    Cmid = w1_oihw.shape[0]
    Cout = w2_oihw.shape[0]
    Cin1 = C2 + C1
    assert w1_oihw.shape == (Cmid, Cin1, 3, 3)
    assert w2_oihw.shape == (Cout, Cmid, 3, 3)

    Hu, Wu = 2 * H1, 2 * W1
    dY, dX = H2 - Hu, W2 - Wu
    # TODO(synk): negative diffY/diffX (cropping) not implemented.
    assert dY >= 0 and dX >= 0
    oy, ox = dY // 2, dX // 2
    S2 = H2 * W2

    # layout glue: NCHW -> channels-last (small tensors; XLA transposes)
    x1r = jnp.transpose(x1_nchw, (0, 2, 3, 1)).astype(jnp.float32)  # (B,H1,W1,C1)
    x2r = jnp.transpose(x2_nchw, (0, 2, 3, 1)).astype(jnp.float32)  # (B,H2,W2,C2)

    # separable upsample operators
    mw = jnp.asarray(_bilinear_matrix(W1, Wu))                      # (Wu, W1)
    h_taps = _lerp_taps(H1, Hu)

    # conv weights OIHW -> per-tap (9, Cin, Cout) bf16; conv1 split by buffer
    w1_t = jnp.transpose(w1_oihw, (2, 3, 1, 0)).reshape(9, Cin1, Cmid)
    w1a = w1_t[:, :C2, :].astype(jnp.bfloat16)     # taps over the skip (x2)
    w1b = w1_t[:, C2:, :].astype(jnp.bfloat16)     # taps over the upsample
    w2_t = (jnp.transpose(w2_oihw, (2, 3, 1, 0))
            .reshape(9, Cmid, Cout).astype(jnp.bfloat16))

    cparams = pltpu.CompilerParams(dimension_semantics=("parallel",))

    # ---- pass 1: upsample + pad + conv1 (+ per-batch BN1 partials) ----------
    k1 = _make_conv1_kernel(H1, W1, C1, H2, W2, C2, oy, ox, h_taps,
                            up_border=(dY > 0 or dX > 0))
    y1, st1 = pl.pallas_call(
        k1,
        grid=(B,),
        out_shape=(jax.ShapeDtypeStruct((B, S2, Cmid), jnp.bfloat16),
                   jax.ShapeDtypeStruct((B, 2, Cmid), jnp.float32)),
        in_specs=[
            pl.BlockSpec((1, H1, W1, C1), lambda b: (b, 0, 0, 0)),
            pl.BlockSpec((1, H2, W2, C2), lambda b: (b, 0, 0, 0)),
            pl.BlockSpec((Wu, W1), lambda b: (0, 0)),
            pl.BlockSpec((9, C2, Cmid), lambda b: (0, 0, 0)),
            pl.BlockSpec((9, C1, Cmid), lambda b: (0, 0, 0)),
        ],
        out_specs=(
            pl.BlockSpec((1, S2, Cmid), lambda b: (b, 0, 0)),
            pl.BlockSpec((1, 2, Cmid), lambda b: (b, 0, 0)),
        ),
        scratch_shapes=[pltpu.VMEM((H2 + 2, W2 + 2, C2), jnp.float32),
                        pltpu.VMEM((H2 + 2, W2 + 2, C1), jnp.float32)],
        compiler_params=cparams,
    )(x1r, x2r, mw, w1a, w1b)

    a1, c1 = _bn_affine(st1, g1, b1, S2)

    # ---- pass 2: BN1 + ReLU + conv2 (+ per-batch BN2 partials) --------------
    k2 = _make_conv2_kernel(H2, W2, Cmid)
    y2, st2 = pl.pallas_call(
        k2,
        grid=(B,),
        out_shape=(jax.ShapeDtypeStruct((B, S2, Cout), jnp.bfloat16),
                   jax.ShapeDtypeStruct((B, 2, Cout), jnp.float32)),
        in_specs=[
            pl.BlockSpec((1, S2, Cmid), lambda b: (b, 0, 0)),
            pl.BlockSpec((1, Cmid), lambda b: (0, 0)),
            pl.BlockSpec((1, Cmid), lambda b: (0, 0)),
            pl.BlockSpec((9, Cmid, Cout), lambda b: (0, 0, 0)),
        ],
        out_specs=(
            pl.BlockSpec((1, S2, Cout), lambda b: (b, 0, 0)),
            pl.BlockSpec((1, 2, Cout), lambda b: (b, 0, 0)),
        ),
        scratch_shapes=[pltpu.VMEM((H2 + 2, W2 + 2, Cmid), jnp.float32)],
        compiler_params=cparams,
    )(y1, a1, c1, w2_t)

    a2, c2 = _bn_affine(st2, g2, b2, S2)

    # ---- pass 3: BN2 + ReLU, NC(HW) out directly -----------------------------
    out = pl.pallas_call(
        _make_bn_relu_nchw_kernel(Cout),
        grid=(B,),
        out_shape=jax.ShapeDtypeStruct((B, Cout, S2), jnp.float32),
        in_specs=[
            pl.BlockSpec((1, S2, Cout), lambda b: (b, 0, 0)),
            pl.BlockSpec((1, Cout), lambda b: (0, 0)),
            pl.BlockSpec((1, Cout), lambda b: (0, 0)),
        ],
        out_specs=pl.BlockSpec((1, Cout, S2), lambda b: (b, 0, 0)),
        compiler_params=cparams,
    )(y2, a2, c2)

    return out.reshape(B, Cout, H2, W2)     # free reshape of contiguous dims


# ----------------------------------------------------------------------------
# pure-JAX reference (NCHW), mirrors the PyTorch module semantics
# ----------------------------------------------------------------------------
def up_forward_ref(x1, x2, params):
    w1, g1, b1, w2, g2, b2 = params
    _, _, H1, W1 = x1.shape
    _, _, H2, W2 = x2.shape
    Hu, Wu = 2 * H1, 2 * W1
    Mh = jnp.asarray(_bilinear_matrix(H1, Hu))
    Mw = jnp.asarray(_bilinear_matrix(W1, Wu))
    up = jnp.einsum('yh,bchw,xw->bcyx', Mh, x1, Mw,
                    precision=lax.Precision.HIGHEST)
    dY, dX = H2 - Hu, W2 - Wu
    up = jnp.pad(up, ((0, 0), (0, 0),
                      (dY // 2, dY - dY // 2), (dX // 2, dX - dX // 2)))
    x = jnp.concatenate([x2, up], axis=1)

    def conv(v, w):
        return lax.conv_general_dilated(
            v, w, (1, 1), ((1, 1), (1, 1)),
            dimension_numbers=('NCHW', 'OIHW', 'NCHW'),
            precision=lax.Precision.HIGHEST)

    def bn_relu(v, g, b):
        m = jnp.mean(v, axis=(0, 2, 3), keepdims=True)
        s = jnp.mean((v - m) ** 2, axis=(0, 2, 3), keepdims=True)
        y = (v - m) * lax.rsqrt(s + EPS) * g[None, :, None, None] \
            + b[None, :, None, None]
        return jnp.maximum(y, 0.0)

    h = bn_relu(conv(x, w1), g1, b1)
    return bn_relu(conv(h, w2), g2, b2)


if __name__ == "__main__":
    key = jax.random.PRNGKey(0)
    ks = jax.random.split(key, 8)

    # Up(in_channels=8, out_channels=8, bilinear=True)
    B = 2
    in_channels, out_channels = 8, 8
    C1 = in_channels // 2          # channels of x1 (deep feature, pre-upsample)
    C2 = in_channels - C1          # channels of x2 (skip connection)
    Cmid = in_channels // 2        # DoubleConv mid_channels
    H1 = W1 = 8
    H2 = W2 = 16

    x1 = jax.random.normal(ks[0], (B, C1, H1, W1), jnp.float32)
    x2 = jax.random.normal(ks[1], (B, C2, H2, W2), jnp.float32)

    w1 = 0.2 * jax.random.normal(ks[2], (Cmid, in_channels, 3, 3), jnp.float32)
    g1 = 1.0 + 0.1 * jax.random.normal(ks[3], (Cmid,), jnp.float32)
    b1 = 0.1 * jax.random.normal(ks[4], (Cmid,), jnp.float32)
    w2 = 0.2 * jax.random.normal(ks[5], (out_channels, Cmid, 3, 3), jnp.float32)
    g2 = 1.0 + 0.1 * jax.random.normal(ks[6], (out_channels,), jnp.float32)
    b2 = 0.1 * jax.random.normal(ks[7], (out_channels,), jnp.float32)
    params = (w1, g1, b1, w2, g2, b2)

    out = up_forward_pallas(x1, x2, params)
    out = jax.block_until_ready(out)
    assert out.shape == (B, out_channels, H2, W2)

    ref = up_forward_ref(x1, x2, params)
    # bf16 MXU operands + bf16 inter-pass intermediates (f32 accumulation /
    # stats) -> relaxed tolerance vs the f32 reference
    np.testing.assert_allclose(np.asarray(out), np.asarray(ref),
                               rtol=3e-2, atol=3e-2)
    print("KERNEL_OK")
</pallas_src>

<mosaic_0001>
module attributes {stable_mosaic.version = 11 : i64} {
  func.func @kernel(%arg0: i32, %arg1: memref<1x8x8x4xf32, #tpu.memory_space<vmem>>, %arg2: memref<1x16x16x4xf32, #tpu.memory_space<vmem>>, %arg3: memref<16x8xf32, #tpu.memory_space<vmem>>, %arg4: memref<9x4x4xbf16, #tpu.memory_space<vmem>>, %arg5: memref<9x4x4xbf16, #tpu.memory_space<vmem>>, %arg6: memref<1x256x4xbf16, #tpu.memory_space<vmem>>, %arg7: memref<1x2x4xf32, #tpu.memory_space<vmem>>, %arg8: memref<18x18x4xf32, #tpu.memory_space<vmem>>, %arg9: memref<18x18x4xf32, #tpu.memory_space<vmem>>) attributes {dimension_semantics = [#tpu.dimension_semantics<parallel>], iteration_bounds = array<i64: 2>, scalar_prefetch = 0 : i64, scratch_operands = 2 : i64, tpu.core_type = #tpu.core_type<tc>, window_params = [{transform_indices = @transform_0, window_bounds = array<i64: 1, 8, 8, 4>}, {transform_indices = @transform_1, window_bounds = array<i64: 1, 16, 16, 4>}, {pipeline_mode = #tpu.pipeline_mode<synchronous>, transform_indices = @transform_2, window_bounds = array<i64: 16, 8>}, {pipeline_mode = #tpu.pipeline_mode<synchronous>, transform_indices = @transform_3, window_bounds = array<i64: 9, 4, 4>}, {pipeline_mode = #tpu.pipeline_mode<synchronous>, transform_indices = @transform_4, window_bounds = array<i64: 9, 4, 4>}, {transform_indices = @transform_5, window_bounds = array<i64: 1, 256, 4>}, {transform_indices = @transform_6, window_bounds = array<i64: 1, 2, 4>}]} {
    %cst = arith.constant 0.000000e+00 : f32
    %0 = vector.broadcast %cst : f32 to vector<1x18x4xf32>
    %c0 = arith.constant 0 : index
    %c0_0 = arith.constant 0 : index
    %c0_1 = arith.constant 0 : index
    %1 = vector.load %arg8[%c0, %c0_0, %c0_1] : memref<18x18x4xf32, #tpu.memory_space<vmem>>, vector<1x18x4xf32>
    tpu.vector_store %arg8[%c0, %c0_0, %c0_1], %0 {strides = array<i32>} : memref<18x18x4xf32, #tpu.memory_space<vmem>>, vector<1x18x4xf32>,
    %c17 = arith.constant 17 : index
    %c0_2 = arith.constant 0 : index
    %c0_3 = arith.constant 0 : index
    %2 = vector.load %arg8[%c17, %c0_2, %c0_3] : memref<18x18x4xf32, #tpu.memory_space<vmem>>, vector<1x18x4xf32>
    tpu.vector_store %arg8[%c17, %c0_2, %c0_3], %0 {strides = array<i32>} : memref<18x18x4xf32, #tpu.memory_space<vmem>>, vector<1x18x4xf32>,
    %cst_4 = arith.constant 0.000000e+00 : f32
    %3 = vector.broadcast %cst_4 : f32 to vector<18x1x4xf32>
    %c0_5 = arith.constant 0 : index
    %c0_6 = arith.constant 0 : index
    %c0_7 = arith.constant 0 : index
    %4 = vector.load %arg8[%c0_5, %c0_6, %c0_7] : memref<18x18x4xf32, #tpu.memory_space<vmem>>, vector<18x1x4xf32>
    tpu.vector_store %arg8[%c0_5, %c0_6, %c0_7], %3 {strides = array<i32>} : memref<18x18x4xf32, #tpu.memory_space<vmem>>, vector<18x1x4xf32>,
    %c0_8 = arith.constant 0 : index
    %c17_9 = arith.constant 17 : index
    %c0_10 = arith.constant 0 : index
    %5 = vector.load %arg8[%c0_8, %c17_9, %c0_10] : memref<18x18x4xf32, #tpu.memory_space<vmem>>, vector<18x1x4xf32>
    tpu.vector_store %arg8[%c0_8, %c17_9, %c0_10], %3 {strides = array<i32>} : memref<18x18x4xf32, #tpu.memory_space<vmem>>, vector<18x1x4xf32>,
    %cst_11 = arith.constant 0.000000e+00 : f32
    %6 = vector.broadcast %cst_11 : f32 to vector<1x18x4xf32>
    %c0_12 = arith.constant 0 : index
    %c0_13 = arith.constant 0 : index
    %c0_14 = arith.constant 0 : index
    %7 = vector.load %arg9[%c0_12, %c0_13, %c0_14] : memref<18x18x4xf32, #tpu.memory_space<vmem>>, vector<1x18x4xf32>
    tpu.vector_store %arg9[%c0_12, %c0_13, %c0_14], %6 {strides = array<i32>} : memref<18x18x4xf32, #tpu.memory_space<vmem>>, vector<1x18x4xf32>,
    %c17_15 = arith.constant 17 : index
    %c0_16 = arith.constant 0 : index
    %c0_17 = arith.constant 0 : index
    %8 = vector.load %arg9[%c17_15, %c0_16, %c0_17] : memref<18x18x4xf32, #tpu.memory_space<vmem>>, vector<1x18x4xf32>
    tpu.vector_store %arg9[%c17_15, %c0_16, %c0_17], %6 {strides = array<i32>} : memref<18x18x4xf32, #tpu.memory_space<vmem>>, vector<1x18x4xf32>,
    %cst_18 = arith.constant 0.000000e+00 : f32
    %9 = vector.broadcast %cst_18 : f32 to vector<18x1x4xf32>
    %c0_19 = arith.constant 0 : index
    %c0_20 = arith.constant 0 : index
    %c0_21 = arith.constant 0 : index
    %10 = vector.load %arg9[%c0_19, %c0_20, %c0_21] : memref<18x18x4xf32, #tpu.memory_space<vmem>>, vector<18x1x4xf32>
    tpu.vector_store %arg9[%c0_19, %c0_20, %c0_21], %9 {strides = array<i32>} : memref<18x18x4xf32, #tpu.memory_space<vmem>>, vector<18x1x4xf32>,
    %c0_22 = arith.constant 0 : index
    %c17_23 = arith.constant 17 : index
    %c0_24 = arith.constant 0 : index
    %11 = vector.load %arg9[%c0_22, %c17_23, %c0_24] : memref<18x18x4xf32, #tpu.memory_space<vmem>>, vector<18x1x4xf32>
    tpu.vector_store %arg9[%c0_22, %c17_23, %c0_24], %9 {strides = array<i32>} : memref<18x18x4xf32, #tpu.memory_space<vmem>>, vector<18x1x4xf32>,
    %c0_25 = arith.constant 0 : index
    %c0_26 = arith.constant 0 : index
    %c0_27 = arith.constant 0 : index
    %c0_28 = arith.constant 0 : index
    %12 = vector.load %arg2[%c0_25, %c0_26, %c0_27, %c0_28] : memref<1x16x16x4xf32, #tpu.memory_space<vmem>>, vector<1x16x16x4xf32>
    %13 = vector.shape_cast %12 : vector<1x16x16x4xf32> to vector<16x16x4xf32>
    %c1 = arith.constant 1 : index
    %c1_29 = arith.constant 1 : index
    %c0_30 = arith.constant 0 : index
    %14 = vector.load %arg8[%c1, %c1_29, %c0_30] : memref<18x18x4xf32, #tpu.memory_space<vmem>>, vector<16x16x4xf32>
    tpu.vector_store %arg8[%c1, %c1_29, %c0_30], %13 {strides = array<i32>} : memref<18x18x4xf32, #tpu.memory_space<vmem>>, vector<16x16x4xf32>,
    %c0_31 = arith.constant 0 : index
    %c0_32 = arith.constant 0 : index
    %c0_33 = arith.constant 0 : index
    %c0_34 = arith.constant 0 : index
    %15 = vector.load %arg1[%c0_31, %c0_32, %c0_33, %c0_34] : memref<1x8x8x4xf32, #tpu.memory_space<vmem>>, vector<1x8x8x4xf32>
    %16 = vector.shape_cast %15 : vector<1x8x8x4xf32> to vector<8x8x4xf32>
    %c0_35 = arith.constant 0 : index
    %c0_36 = arith.constant 0 : index
    %17 = vector.load %arg3[%c0_35, %c0_36] : memref<16x8xf32, #tpu.memory_space<vmem>>, vector<16x8xf32>
    %18 = vector.shape_cast %17 : vector<16x8xf32> to vector<1x16x8xf32>
    %19 = vector.broadcast %18 : vector<1x16x8xf32> to vector<8x16x8xf32>
    %cst_37 = arith.constant dense<0.000000e+00> : vector<8x16x4xf32>
    %20 = tpu.matmul %19, %16, %cst_37 {dimension_numbers = #tpu.dot_dimension_numbers<[2], [1], [1], [2], [0, 0, 0, 1, 1, 2], [0], [0]>} : vector<8x16x8xf32>, vector<8x8x4xf32>, vector<8x16x4xf32> -> vector<8x16x4xf32>
    %21 = vector.extract_strided_slice %20 {offsets = [0, 0, 0], sizes = [1, 16, 4], strides = [1, 1, 1]} : vector<8x16x4xf32> to vector<1x16x4xf32>
    %22 = vector.extract_strided_slice %20 {offsets = [0, 0, 0], sizes = [1, 16, 4], strides = [1, 1, 1]} : vector<8x16x4xf32> to vector<1x16x4xf32>
    %cst_38 = arith.constant 0.533333361 : f32
    %23 = vector.broadcast %cst_38 : f32 to vector<1x16x4xf32>
    %24 = arith.mulf %22, %23 : vector<1x16x4xf32>
    %25 = vector.extract_strided_slice %20 {offsets = [1, 0, 0], sizes = [1, 16, 4], strides = [1, 1, 1]} : vector<8x16x4xf32> to vector<1x16x4xf32>
    %cst_39 = arith.constant 0.466666669 : f32
    %26 = vector.broadcast %cst_39 : f32 to vector<1x16x4xf32>
    %27 = arith.mulf %25, %26 : vector<1x16x4xf32>
    %28 = arith.addf %24, %27 : vector<1x16x4xf32>
    %29 = vector.extract_strided_slice %20 {offsets = [0, 0, 0], sizes = [1, 16, 4], strides = [1, 1, 1]} : vector<8x16x4xf32> to vector<1x16x4xf32>
    %cst_40 = arith.constant 0.0666666701 : f32
    %30 = vector.broadcast %cst_40 : f32 to vector<1x16x4xf32>
    %31 = arith.mulf %29, %30 : vector<1x16x4xf32>
    %32 = vector.extract_strided_slice %20 {offsets = [1, 0, 0], sizes = [1, 16, 4], strides = [1, 1, 1]} : vector<8x16x4xf32> to vector<1x16x4xf32>
    %cst_41 = arith.constant 0.933333337 : f32
    %33 = vector.broadcast %cst_41 : f32 to vector<1x16x4xf32>
    %34 = arith.mulf %32, %33 : vector<1x16x4xf32>
    %35 = arith.addf %31, %34 : vector<1x16x4xf32>
    %36 = vector.extract_strided_slice %20 {offsets = [1, 0, 0], sizes = [1, 16, 4], strides = [1, 1, 1]} : vector<8x16x4xf32> to vector<1x16x4xf32>
    %cst_42 = arith.constant 6.000000e-01 : f32
    %37 = vector.broadcast %cst_42 : f32 to vector<1x16x4xf32>
    %38 = arith.mulf %36, %37 : vector<1x16x4xf32>
    %39 = vector.extract_strided_slice %20 {offsets = [2, 0, 0], sizes = [1, 16, 4], strides = [1, 1, 1]} : vector<8x16x4xf32> to vector<1x16x4xf32>
    %cst_43 = arith.constant 4.000000e-01 : f32
    %40 = vector.broadcast %cst_43 : f32 to vector<1x16x4xf32>
    %41 = arith.mulf %39, %40 : vector<1x16x4xf32>
    %42 = arith.addf %38, %41 : vector<1x16x4xf32>
    %43 = vector.extract_strided_slice %20 {offsets = [1, 0, 0], sizes = [1, 16, 4], strides = [1, 1, 1]} : vector<8x16x4xf32> to vector<1x16x4xf32>
    %cst_44 = arith.constant 0.13333334 : f32
    %44 = vector.broadcast %cst_44 : f32 to vector<1x16x4xf32>
    %45 = arith.mulf %43, %44 : vector<1x16x4xf32>
    %46 = vector.extract_strided_slice %20 {offsets = [2, 0, 0], sizes = [1, 16, 4], strides = [1, 1, 1]} : vector<8x16x4xf32> to vector<1x16x4xf32>
    %cst_45 = arith.constant 0.866666674 : f32
    %47 = vector.broadcast %cst_45 : f32 to vector<1x16x4xf32>
    %48 = arith.mulf %46, %47 : vector<1x16x4xf32>
    %49 = arith.addf %45, %48 : vector<1x16x4xf32>
    %50 = vector.extract_strided_slice %20 {offsets = [2, 0, 0], sizes = [1, 16, 4], strides = [1, 1, 1]} : vector<8x16x4xf32> to vector<1x16x4xf32>
    %cst_46 = arith.constant 0.666666686 : f32
    %51 = vector.broadcast %cst_46 : f32 to vector<1x16x4xf32>
    %52 = arith.mulf %50, %51 : vector<1x16x4xf32>
    %53 = vector.extract_strided_slice %20 {offsets = [3, 0, 0], sizes = [1, 16, 4], strides = [1, 1, 1]} : vector<8x16x4xf32> to vector<1x16x4xf32>
    %cst_47 = arith.constant 0.333333343 : f32
    %54 = vector.broadcast %cst_47 : f32 to vector<1x16x4xf32>
    %55 = arith.mulf %53, %54 : vector<1x16x4xf32>
    %56 = arith.addf %52, %55 : vector<1x16x4xf32>
    %57 = vector.extract_strided_slice %20 {offsets = [2, 0, 0], sizes = [1, 16, 4], strides = [1, 1, 1]} : vector<8x16x4xf32> to vector<1x16x4xf32>
    %cst_48 = arith.constant 2.000000e-01 : f32
    %58 = vector.broadcast %cst_48 : f32 to vector<1x16x4xf32>
    %59 = arith.mulf %57, %58 : vector<1x16x4xf32>
    %60 = vector.extract_strided_slice %20 {offsets = [3, 0, 0], sizes = [1, 16, 4], strides = [1, 1, 1]} : vector<8x16x4xf32> to vector<1x16x4xf32>
    %cst_49 = arith.constant 8.000000e-01 : f32
    %61 = vector.broadcast %cst_49 : f32 to vector<1x16x4xf32>
    %62 = arith.mulf %60, %61 : vector<1x16x4xf32>
    %63 = arith.addf %59, %62 : vector<1x16x4xf32>
    %64 = vector.extract_strided_slice %20 {offsets = [3, 0, 0], sizes = [1, 16, 4], strides = [1, 1, 1]} : vector<8x16x4xf32> to vector<1x16x4xf32>
    %cst_50 = arith.constant 0.733333349 : f32
    %65 = vector.broadcast %cst_50 : f32 to vector<1x16x4xf32>
    %66 = arith.mulf %64, %65 : vector<1x16x4xf32>
    %67 = vector.extract_strided_slice %20 {offsets = [4, 0, 0], sizes = [1, 16, 4], strides = [1, 1, 1]} : vector<8x16x4xf32> to vector<1x16x4xf32>
    %cst_51 = arith.constant 0.266666681 : f32
    %68 = vector.broadcast %cst_51 : f32 to vector<1x16x4xf32>
    %69 = arith.mulf %67, %68 : vector<1x16x4xf32>
    %70 = arith.addf %66, %69 : vector<1x16x4xf32>
    %71 = vector.extract_strided_slice %20 {offsets = [3, 0, 0], sizes = [1, 16, 4], strides = [1, 1, 1]} : vector<8x16x4xf32> to vector<1x16x4xf32>
    %cst_52 = arith.constant 0.266666681 : f32
    %72 = vector.broadcast %cst_52 : f32 to vector<1x16x4xf32>
    %73 = arith.mulf %71, %72 : vector<1x16x4xf32>
    %74 = vector.extract_strided_slice %20 {offsets = [4, 0, 0], sizes = [1, 16, 4], strides = [1, 1, 1]} : vector<8x16x4xf32> to vector<1x16x4xf32>
    %cst_53 = arith.constant 0.733333349 : f32
    %75 = vector.broadcast %cst_53 : f32 to vector<1x16x4xf32>
    %76 = arith.mulf %74, %75 : vector<1x16x4xf32>
    %77 = arith.addf %73, %76 : vector<1x16x4xf32>
    %78 = vector.extract_strided_slice %20 {offsets = [4, 0, 0], sizes = [1, 16, 4], strides = [1, 1, 1]} : vector<8x16x4xf32> to vector<1x16x4xf32>
    %cst_54 = arith.constant 8.000000e-01 : f32
    %79 = vector.broadcast %cst_54 : f32 to vector<1x16x4xf32>
    %80 = arith.mulf %78, %79 : vector<1x16x4xf32>
    %81 = vector.extract_strided_slice %20 {offsets = [5, 0, 0], sizes = [1, 16, 4], strides = [1, 1, 1]} : vector<8x16x4xf32> to vector<1x16x4xf32>
    %cst_55 = arith.constant 2.000000e-01 : f32
    %82 = vector.broadcast %cst_55 : f32 to vector<1x16x4xf32>
    %83 = arith.mulf %81, %82 : vector<1x16x4xf32>
    %84 = arith.addf %80, %83 : vector<1x16x4xf32>
    %85 = vector.extract_strided_slice %20 {offsets = [4, 0, 0], sizes = [1, 16, 4], strides = [1, 1, 1]} : vector<8x16x4xf32> to vector<1x16x4xf32>
    %cst_56 = arith.constant 0.333333343 : f32
    %86 = vector.broadcast %cst_56 : f32 to vector<1x16x4xf32>
    %87 = arith.mulf %85, %86 : vector<1x16x4xf32>
    %88 = vector.extract_strided_slice %20 {offsets = [5, 0, 0], sizes = [1, 16, 4], strides = [1, 1, 1]} : vector<8x16x4xf32> to vector<1x16x4xf32>
    %cst_57 = arith.constant 0.666666686 : f32
    %89 = vector.broadcast %cst_57 : f32 to vector<1x16x4xf32>
    %90 = arith.mulf %88, %89 : vector<1x16x4xf32>
    %91 = arith.addf %87, %90 : vector<1x16x4xf32>
    %92 = vector.extract_strided_slice %20 {offsets = [5, 0, 0], sizes = [1, 16, 4], strides = [1, 1, 1]} : vector<8x16x4xf32> to vector<1x16x4xf32>
    %cst_58 = arith.constant 0.866666674 : f32
    %93 = vector.broadcast %cst_58 : f32 to vector<1x16x4xf32>
    %94 = arith.mulf %92, %93 : vector<1x16x4xf32>
    %95 = vector.extract_strided_slice %20 {offsets = [6, 0, 0], sizes = [1, 16, 4], strides = [1, 1, 1]} : vector<8x16x4xf32> to vector<1x16x4xf32>
    %cst_59 = arith.constant 0.13333334 : f32
    %96 = vector.broadcast %cst_59 : f32 to vector<1x16x4xf32>
    %97 = arith.mulf %95, %96 : vector<1x16x4xf32>
    %98 = arith.addf %94, %97 : vector<1x16x4xf32>
    %99 = vector.extract_strided_slice %20 {offsets = [5, 0, 0], sizes = [1, 16, 4], strides = [1, 1, 1]} : vector<8x16x4xf32> to vector<1x16x4xf32>
    %cst_60 = arith.constant 4.000000e-01 : f32
    %100 = vector.broadcast %cst_60 : f32 to vector<1x16x4xf32>
    %101 = arith.mulf %99, %100 : vector<1x16x4xf32>
    %102 = vector.extract_strided_slice %20 {offsets = [6, 0, 0], sizes = [1, 16, 4], strides = [1, 1, 1]} : vector<8x16x4xf32> to vector<1x16x4xf32>
    %cst_61 = arith.constant 6.000000e-01 : f32
    %103 = vector.broadcast %cst_61 : f32 to vector<1x16x4xf32>
    %104 = arith.mulf %102, %103 : vector<1x16x4xf32>
    %105 = arith.addf %101, %104 : vector<1x16x4xf32>
    %106 = vector.extract_strided_slice %20 {offsets = [6, 0, 0], sizes = [1, 16, 4], strides = [1, 1, 1]} : vector<8x16x4xf32> to vector<1x16x4xf32>
    %cst_62 = arith.constant 0.933333337 : f32
    %107 = vector.broadcast %cst_62 : f32 to vector<1x16x4xf32>
    %108 = arith.mulf %106, %107 : vector<1x16x4xf32>
    %109 = vector.extract_strided_slice %20 {offsets = [7, 0, 0], sizes = [1, 16, 4], strides = [1, 1, 1]} : vector<8x16x4xf32> to vector<1x16x4xf32>
    %cst_63 = arith.constant 0.0666666701 : f32
    %110 = vector.broadcast %cst_63 : f32 to vector<1x16x4xf32>
    %111 = arith.mulf %109, %110 : vector<1x16x4xf32>
    %112 = arith.addf %108, %111 : vector<1x16x4xf32>
    %113 = vector.extract_strided_slice %20 {offsets = [6, 0, 0], sizes = [1, 16, 4], strides = [1, 1, 1]} : vector<8x16x4xf32> to vector<1x16x4xf32>
    %cst_64 = arith.constant 0.466666669 : f32
    %114 = vector.broadcast %cst_64 : f32 to vector<1x16x4xf32>
    %115 = arith.mulf %113, %114 : vector<1x16x4xf32>
    %116 = vector.extract_strided_slice %20 {offsets = [7, 0, 0], sizes = [1, 16, 4], strides = [1, 1, 1]} : vector<8x16x4xf32> to vector<1x16x4xf32>
    %cst_65 = arith.constant 0.533333361 : f32
    %117 = vector.broadcast %cst_65 : f32 to vector<1x16x4xf32>
    %118 = arith.mulf %116, %117 : vector<1x16x4xf32>
    %119 = arith.addf %115, %118 : vector<1x16x4xf32>
    %120 = vector.extract_strided_slice %20 {offsets = [7, 0, 0], sizes = [1, 16, 4], strides = [1, 1, 1]} : vector<8x16x4xf32> to vector<1x16x4xf32>
    %121 = tpu.concatenate %21, %28, %35, %42, %49, %56, %63, %70, %77, %84, %91, %98, %105, %112, %119, %120 in 0 : vector<1x16x4xf32>, vector<1x16x4xf32>, vector<1x16x4xf32>, vector<1x16x4xf32>, vector<1x16x4xf32>, vector<1x16x4xf32>, vector<1x16x4xf32>, vector<1x16x4xf32>, vector<1x16x4xf32>, vector<1x16x4xf32>, vector<1x16x4xf32>, vector<1x16x4xf32>, vector<1x16x4xf32>, vector<1x16x4xf32>, vector<1x16x4xf32>, vector<1x16x4xf32> -> vector<16x16x4xf32>
    %c1_66 = arith.constant 1 : index
    %c1_67 = arith.constant 1 : index
    %c0_68 = arith.constant 0 : index
    %122 = vector.load %arg9[%c1_66, %c1_67, %c0_68] : memref<18x18x4xf32, #tpu.memory_space<vmem>>, vector<16x16x4xf32>
    tpu.vector_store %arg9[%c1_66, %c1_67, %c0_68], %121 {strides = array<i32>} : memref<18x18x4xf32, #tpu.memory_space<vmem>>, vector<16x16x4xf32>,
    %cst_69 = arith.constant 0.000000e+00 : f32
    %123 = vector.broadcast %cst_69 : f32 to vector<256x4xf32>
    %c0_70 = arith.constant 0 : index
    %c0_71 = arith.constant 0 : index
    %c0_72 = arith.constant 0 : index
    %124 = vector.load %arg8[%c0_70, %c0_71, %c0_72] : memref<18x18x4xf32, #tpu.memory_space<vmem>>, vector<18x16x4xf32>
    %125 = arith.truncf %124 : vector<18x16x4xf32> to vector<18x16x4xbf16>
    %126 = vector.extract_strided_slice %125 {offsets = [0, 0, 0], sizes = [16, 16, 4], strides = [1, 1, 1]} : vector<18x16x4xbf16> to vector<16x16x4xbf16>
    %127 = vector.shape_cast %126 : vector<16x16x4xbf16> to vector<256x4xbf16>
    %c0_73 = arith.constant 0 : index
    %c0_74 = arith.constant 0 : index
    %c0_75 = arith.constant 0 : index
    %128 = vector.load %arg4[%c0_73, %c0_74, %c0_75] : memref<9x4x4xbf16, #tpu.memory_space<vmem>>, vector<1x4x4xbf16>
    %129 = vector.shape_cast %128 : vector<1x4x4xbf16> to vector<4x4xbf16>
    %cst_76 = arith.constant dense<0.000000e+00> : vector<256x4xf32>
    %130 = tpu.matmul %127, %129, %cst_76 {dimension_numbers = #tpu.dot_dimension_numbers<[1], [0], [0], [1], [0, 0, 1, 1], [], []>} : vector<256x4xbf16>, vector<4x4xbf16>, vector<256x4xf32> -> vector<256x4xf32>
    %131 = arith.addf %123, %130 : vector<256x4xf32>
    %132 = vector.extract_strided_slice %125 {offsets = [1, 0, 0], sizes = [16, 16, 4], strides = [1, 1, 1]} : vector<18x16x4xbf16> to vector<16x16x4xbf16>
    %133 = vector.shape_cast %132 : vector<16x16x4xbf16> to vector<256x4xbf16>
    %c3 = arith.constant 3 : index
    %c0_77 = arith.constant 0 : index
    %c0_78 = arith.constant 0 : index
    %134 = vector.load %arg4[%c3, %c0_77, %c0_78] : memref<9x4x4xbf16, #tpu.memory_space<vmem>>, vector<1x4x4xbf16>
    %135 = vector.shape_cast %134 : vector<1x4x4xbf16> to vector<4x4xbf16>
    %cst_79 = arith.constant dense<0.000000e+00> : vector<256x4xf32>
    %136 = tpu.matmul %133, %135, %cst_79 {dimension_numbers = #tpu.dot_dimension_numbers<[1], [0], [0], [1], [0, 0, 1, 1], [], []>} : vector<256x4xbf16>, vector<4x4xbf16>, vector<256x4xf32> -> vector<256x4xf32>
    %137 = arith.addf %131, %136 : vector<256x4xf32>
    %138 = vector.extract_strided_slice %125 {offsets = [2, 0, 0], sizes = [16, 16, 4], strides = [1, 1, 1]} : vector<18x16x4xbf16> to vector<16x16x4xbf16>
    %139 = vector.shape_cast %138 : vector<16x16x4xbf16> to vector<256x4xbf16>
    %c6 = arith.constant 6 : index
    %c0_80 = arith.constant 0 : index
    %c0_81 = arith.constant 0 : index
    %140 = vector.load %arg4[%c6, %c0_80, %c0_81] : memref<9x4x4xbf16, #tpu.memory_space<vmem>>, vector<1x4x4xbf16>
    %141 = vector.shape_cast %140 : vector<1x4x4xbf16> to vector<4x4xbf16>
    %cst_82 = arith.constant dense<0.000000e+00> : vector<256x4xf32>
    %142 = tpu.matmul %139, %141, %cst_82 {dimension_numbers = #tpu.dot_dimension_numbers<[1], [0], [0], [1], [0, 0, 1, 1], [], []>} : vector<256x4xbf16>, vector<4x4xbf16>, vector<256x4xf32> -> vector<256x4xf32>
    %143 = arith.addf %137, %142 : vector<256x4xf32>
    %c0_83 = arith.constant 0 : index
    %c1_84 = arith.constant 1 : index
    %c0_85 = arith.constant 0 : index
    %144 = vector.load %arg8[%c0_83, %c1_84, %c0_85] : memref<18x18x4xf32, #tpu.memory_space<vmem>>, vector<18x16x4xf32>
    %145 = arith.truncf %144 : vector<18x16x4xf32> to vector<18x16x4xbf16>
    %146 = vector.extract_strided_slice %145 {offsets = [0, 0, 0], sizes = [16, 16, 4], strides = [1, 1, 1]} : vector<18x16x4xbf16> to vector<16x16x4xbf16>
    %147 = vector.shape_cast %146 : vector<16x16x4xbf16> to vector<256x4xbf16>
    %c1_86 = arith.constant 1 : index
    %c0_87 = arith.constant 0 : index
    %c0_88 = arith.constant 0 : index
    %148 = vector.load %arg4[%c1_86, %c0_87, %c0_88] : memref<9x4x4xbf16, #tpu.memory_space<vmem>>, vector<1x4x4xbf16>
    %149 = vector.shape_cast %148 : vector<1x4x4xbf16> to vector<4x4xbf16>
    %cst_89 = arith.constant dense<0.000000e+00> : vector<256x4xf32>
    %150 = tpu.matmul %147, %149, %cst_89 {dimension_numbers = #tpu.dot_dimension_numbers<[1], [0], [0], [1], [0, 0, 1, 1], [], []>} : vector<256x4xbf16>, vector<4x4xbf16>, vector<256x4xf32> -> vector<256x4xf32>
    %151 = arith.addf %143, %150 : vector<256x4xf32>
    %152 = vector.extract_strided_slice %145 {offsets = [1, 0, 0], sizes = [16, 16, 4], strides = [1, 1, 1]} : vector<18x16x4xbf16> to vector<16x16x4xbf16>
    %153 = vector.shape_cast %152 : vector<16x16x4xbf16> to vector<256x4xbf16>
    %c4 = arith.constant 4 : index
    %c0_90 = arith.constant 0 : index
    %c0_91 = arith.constant 0 : index
    %154 = vector.load %arg4[%c4, %c0_90, %c0_91] : memref<9x4x4xbf16, #tpu.memory_space<vmem>>, vector<1x4x4xbf16>
    %155 = vector.shape_cast %154 : vector<1x4x4xbf16> to vector<4x4xbf16>
    %cst_92 = arith.constant dense<0.000000e+00> : vector<256x4xf32>
    %156 = tpu.matmul %153, %155, %cst_92 {dimension_numbers = #tpu.dot_dimension_numbers<[1], [0], [0], [1], [0, 0, 1, 1], [], []>} : vector<256x4xbf16>, vector<4x4xbf16>, vector<256x4xf32> -> vector<256x4xf32>
    %157 = arith.addf %151, %156 : vector<256x4xf32>
    %158 = vector.extract_strided_slice %145 {offsets = [2, 0, 0], sizes = [16, 16, 4], strides = [1, 1, 1]} : vector<18x16x4xbf16> to vector<16x16x4xbf16>
    %159 = vector.shape_cast %158 : vector<16x16x4xbf16> to vector<256x4xbf16>
    %c7 = arith.constant 7 : index
    %c0_93 = arith.constant 0 : index
    %c0_94 = arith.constant 0 : index
    %160 = vector.load %arg4[%c7, %c0_93, %c0_94] : memref<9x4x4xbf16, #tpu.memory_space<vmem>>, vector<1x4x4xbf16>
    %161 = vector.shape_cast %160 : vector<1x4x4xbf16> to vector<4x4xbf16>
    %cst_95 = arith.constant dense<0.000000e+00> : vector<256x4xf32>
    %162 = tpu.matmul %159, %161, %cst_95 {dimension_numbers = #tpu.dot_dimension_numbers<[1], [0], [0], [1], [0, 0, 1, 1], [], []>} : vector<256x4xbf16>, vector<4x4xbf16>, vector<256x4xf32> -> vector<256x4xf32>
    %163 = arith.addf %157, %162 : vector<256x4xf32>
    %c0_96 = arith.constant 0 : index
    %c2 = arith.constant 2 : index
    %c0_97 = arith.constant 0 : index
    %164 = vector.load %arg8[%c0_96, %c2, %c0_97] : memref<18x18x4xf32, #tpu.memory_space<vmem>>, vector<18x16x4xf32>
    %165 = arith.truncf %164 : vector<18x16x4xf32> to vector<18x16x4xbf16>
    %166 = vector.extract_strided_slice %165 {offsets = [0, 0, 0], sizes = [16, 16, 4], strides = [1, 1, 1]} : vector<18x16x4xbf16> to vector<16x16x4xbf16>
    %167 = vector.shape_cast %166 : vector<16x16x4xbf16> to vector<256x4xbf16>
    %c2_98 = arith.constant 2 : index
    %c0_99 = arith.constant 0 : index
    %c0_100 = arith.constant 0 : index
    %168 = vector.load %arg4[%c2_98, %c0_99, %c0_100] : memref<9x4x4xbf16, #tpu.memory_space<vmem>>, vector<1x4x4xbf16>
    %169 = vector.shape_cast %168 : vector<1x4x4xbf16> to vector<4x4xbf16>
    %cst_101 = arith.constant dense<0.000000e+00> : vector<256x4xf32>
    %170 = tpu.matmul %167, %169, %cst_101 {dimension_numbers = #tpu.dot_dimension_numbers<[1], [0], [0], [1], [0, 0, 1, 1], [], []>} : vector<256x4xbf16>, vector<4x4xbf16>, vector<256x4xf32> -> vector<256x4xf32>
    %171 = arith.addf %163, %170 : vector<256x4xf32>
    %172 = vector.extract_strided_slice %165 {offsets = [1, 0, 0], sizes = [16, 16, 4], strides = [1, 1, 1]} : vector<18x16x4xbf16> to vector<16x16x4xbf16>
    %173 = vector.shape_cast %172 : vector<16x16x4xbf16> to vector<256x4xbf16>
    %c5 = arith.constant 5 : index
    %c0_102 = arith.constant 0 : index
    %c0_103 = arith.constant 0 : index
    %174 = vector.load %arg4[%c5, %c0_102, %c0_103] : memref<9x4x4xbf16, #tpu.memory_space<vmem>>, vector<1x4x4xbf16>
    %175 = vector.shape_cast %174 : vector<1x4x4xbf16> to vector<4x4xbf16>
    %cst_104 = arith.constant dense<0.000000e+00> : vector<256x4xf32>
    %176 = tpu.matmul %173, %175, %cst_104 {dimension_numbers = #tpu.dot_dimension_numbers<[1], [0], [0], [1], [0, 0, 1, 1], [], []>} : vector<256x4xbf16>, vector<4x4xbf16>, vector<256x4xf32> -> vector<256x4xf32>
    %177 = arith.addf %171, %176 : vector<256x4xf32>
    %178 = vector.extract_strided_slice %165 {offsets = [2, 0, 0], sizes = [16, 16, 4], strides = [1, 1, 1]} : vector<18x16x4xbf16> to vector<16x16x4xbf16>
    %179 = vector.shape_cast %178 : vector<16x16x4xbf16> to vector<256x4xbf16>
    %c8 = arith.constant 8 : index
    %c0_105 = arith.constant 0 : index
    %c0_106 = arith.constant 0 : index
    %180 = vector.load %arg4[%c8, %c0_105, %c0_106] : memref<9x4x4xbf16, #tpu.memory_space<vmem>>, vector<1x4x4xbf16>
    %181 = vector.shape_cast %180 : vector<1x4x4xbf16> to vector<4x4xbf16>
    %cst_107 = arith.constant dense<0.000000e+00> : vector<256x4xf32>
    %182 = tpu.matmul %179, %181, %cst_107 {dimension_numbers = #tpu.dot_dimension_numbers<[1], [0], [0], [1], [0, 0, 1, 1], [], []>} : vector<256x4xbf16>, vector<4x4xbf16>, vector<256x4xf32> -> vector<256x4xf32>
    %183 = arith.addf %177, %182 : vector<256x4xf32>
    %cst_108 = arith.constant 0.000000e+00 : f32
    %184 = vector.broadcast %cst_108 : f32 to vector<256x4xf32>
    %c0_109 = arith.constant 0 : index
    %c0_110 = arith.constant 0 : index
    %c0_111 = arith.constant 0 : index
    %185 = vector.load %arg9[%c0_109, %c0_110, %c0_111] : memref<18x18x4xf32, #tpu.memory_space<vmem>>, vector<18x16x4xf32>
    %186 = arith.truncf %185 : vector<18x16x4xf32> to vector<18x16x4xbf16>
    %187 = vector.extract_strided_slice %186 {offsets = [0, 0, 0], sizes = [16, 16, 4], strides = [1, 1, 1]} : vector<18x16x4xbf16> to vector<16x16x4xbf16>
    %188 = vector.shape_cast %187 : vector<16x16x4xbf16> to vector<256x4xbf16>
    %c0_112 = arith.constant 0 : index
    %c0_113 = arith.constant 0 : index
    %c0_114 = arith.constant 0 : index
    %189 = vector.load %arg5[%c0_112, %c0_113, %c0_114] : memref<9x4x4xbf16, #tpu.memory_space<vmem>>, vector<1x4x4xbf16>
    %190 = vector.shape_cast %189 : vector<1x4x4xbf16> to vector<4x4xbf16>
    %cst_115 = arith.constant dense<0.000000e+00> : vector<256x4xf32>
    %191 = tpu.matmul %188, %190, %cst_115 {dimension_numbers = #tpu.dot_dimension_numbers<[1], [0], [0], [1], [0, 0, 1, 1], [], []>} : vector<256x4xbf16>, vector<4x4xbf16>, vector<256x4xf32> -> vector<256x4xf32>
    %192 = arith.addf %184, %191 : vector<256x4xf32>
    %193 = vector.extract_strided_slice %186 {offsets = [1, 0, 0], sizes = [16, 16, 4], strides = [1, 1, 1]} : vector<18x16x4xbf16> to vector<16x16x4xbf16>
    %194 = vector.shape_cast %193 : vector<16x16x4xbf16> to vector<256x4xbf16>
    %c3_116 = arith.constant 3 : index
    %c0_117 = arith.constant 0 : index
    %c0_118 = arith.constant 0 : index
    %195 = vector.load %arg5[%c3_116, %c0_117, %c0_118] : memref<9x4x4xbf16, #tpu.memory_space<vmem>>, vector<1x4x4xbf16>
    %196 = vector.shape_cast %195 : vector<1x4x4xbf16> to vector<4x4xbf16>
    %cst_119 = arith.constant dense<0.000000e+00> : vector<256x4xf32>
    %197 = tpu.matmul %194, %196, %cst_119 {dimension_numbers = #tpu.dot_dimension_numbers<[1], [0], [0], [1], [0, 0, 1, 1], [], []>} : vector<256x4xbf16>, vector<4x4xbf16>, vector<256x4xf32> -> vector<256x4xf32>
    %198 = arith.addf %192, %197 : vector<256x4xf32>
    %199 = vector.extract_strided_slice %186 {offsets = [2, 0, 0], sizes = [16, 16, 4], strides = [1, 1, 1]} : vector<18x16x4xbf16> to vector<16x16x4xbf16>
    %200 = vector.shape_cast %199 : vector<16x16x4xbf16> to vector<256x4xbf16>
    %c6_120 = arith.constant 6 : index
    %c0_121 = arith.constant 0 : index
    %c0_122 = arith.constant 0 : index
    %201 = vector.load %arg5[%c6_120, %c0_121, %c0_122] : memref<9x4x4xbf16, #tpu.memory_space<vmem>>, vector<1x4x4xbf16>
    %202 = vector.shape_cast %201 : vector<1x4x4xbf16> to vector<4x4xbf16>
    %cst_123 = arith.constant dense<0.000000e+00> : vector<256x4xf32>
    %203 = tpu.matmul %200, %202, %cst_123 {dimension_numbers = #tpu.dot_dimension_numbers<[1], [0], [0], [1], [0, 0, 1, 1], [], []>} : vector<256x4xbf16>, vector<4x4xbf16>, vector<256x4xf32> -> vector<256x4xf32>
    %204 = arith.addf %198, %203 : vector<256x4xf32>
    %c0_124 = arith.constant 0 : index
    %c1_125 = arith.constant 1 : index
    %c0_126 = arith.constant 0 : index
    %205 = vector.load %arg9[%c0_124, %c1_125, %c0_126] : memref<18x18x4xf32, #tpu.memory_space<vmem>>, vector<18x16x4xf32>
    %206 = arith.truncf %205 : vector<18x16x4xf32> to vector<18x16x4xbf16>
    %207 = vector.extract_strided_slice %206 {offsets = [0, 0, 0], sizes = [16, 16, 4], strides = [1, 1, 1]} : vector<18x16x4xbf16> to vector<16x16x4xbf16>
    %208 = vector.shape_cast %207 : vector<16x16x4xbf16> to vector<256x4xbf16>
    %c1_127 = arith.constant 1 : index
    %c0_128 = arith.constant 0 : index
    %c0_129 = arith.constant 0 : index
    %209 = vector.load %arg5[%c1_127, %c0_128, %c0_129] : memref<9x4x4xbf16, #tpu.memory_space<vmem>>, vector<1x4x4xbf16>
    %210 = vector.shape_cast %209 : vector<1x4x4xbf16> to vector<4x4xbf16>
    %cst_130 = arith.constant dense<0.000000e+00> : vector<256x4xf32>
    %211 = tpu.matmul %208, %210, %cst_130 {dimension_numbers = #tpu.dot_dimension_numbers<[1], [0], [0], [1], [0, 0, 1, 1], [], []>} : vector<256x4xbf16>, vector<4x4xbf16>, vector<256x4xf32> -> vector<256x4xf32>
    %212 = arith.addf %204, %211 : vector<256x4xf32>
    %213 = vector.extract_strided_slice %206 {offsets = [1, 0, 0], sizes = [16, 16, 4], strides = [1, 1, 1]} : vector<18x16x4xbf16> to vector<16x16x4xbf16>
    %214 = vector.shape_cast %213 : vector<16x16x4xbf16> to vector<256x4xbf16>
    %c4_131 = arith.constant 4 : index
    %c0_132 = arith.constant 0 : index
    %c0_133 = arith.constant 0 : index
    %215 = vector.load %arg5[%c4_131, %c0_132, %c0_133] : memref<9x4x4xbf16, #tpu.memory_space<vmem>>, vector<1x4x4xbf16>
    %216 = vector.shape_cast %215 : vector<1x4x4xbf16> to vector<4x4xbf16>
    %cst_134 = arith.constant dense<0.000000e+00> : vector<256x4xf32>
    %217 = tpu.matmul %214, %216, %cst_134 {dimension_numbers = #tpu.dot_dimension_numbers<[1], [0], [0], [1], [0, 0, 1, 1], [], []>} : vector<256x4xbf16>, vector<4x4xbf16>, vector<256x4xf32> -> vector<256x4xf32>
    %218 = arith.addf %212, %217 : vector<256x4xf32>
    %219 = vector.extract_strided_slice %206 {offsets = [2, 0, 0], sizes = [16, 16, 4], strides = [1, 1, 1]} : vector<18x16x4xbf16> to vector<16x16x4xbf16>
    %220 = vector.shape_cast %219 : vector<16x16x4xbf16> to vector<256x4xbf16>
    %c7_135 = arith.constant 7 : index
    %c0_136 = arith.constant 0 : index
    %c0_137 = arith.constant 0 : index
    %221 = vector.load %arg5[%c7_135, %c0_136, %c0_137] : memref<9x4x4xbf16, #tpu.memory_space<vmem>>, vector<1x4x4xbf16>
    %222 = vector.shape_cast %221 : vector<1x4x4xbf16> to vector<4x4xbf16>
    %cst_138 = arith.constant dense<0.000000e+00> : vector<256x4xf32>
    %223 = tpu.matmul %220, %222, %cst_138 {dimension_numbers = #tpu.dot_dimension_numbers<[1], [0], [0], [1], [0, 0, 1, 1], [], []>} : vector<256x4xbf16>, vector<4x4xbf16>, vector<256x4xf32> -> vector<256x4xf32>
    %224 = arith.addf %218, %223 : vector<256x4xf32>
    %c0_139 = arith.constant 0 : index
    %c2_140 = arith.constant 2 : index
    %c0_141 = arith.constant 0 : index
    %225 = vector.load %arg9[%c0_139, %c2_140, %c0_141] : memref<18x18x4xf32, #tpu.memory_space<vmem>>, vector<18x16x4xf32>
    %226 = arith.truncf %225 : vector<18x16x4xf32> to vector<18x16x4xbf16>
    %227 = vector.extract_strided_slice %226 {offsets = [0, 0, 0], sizes = [16, 16, 4], strides = [1, 1, 1]} : vector<18x16x4xbf16> to vector<16x16x4xbf16>
    %228 = vector.shape_cast %227 : vector<16x16x4xbf16> to vector<256x4xbf16>
    %c2_142 = arith.constant 2 : index
    %c0_143 = arith.constant 0 : index
    %c0_144 = arith.constant 0 : index
    %229 = vector.load %arg5[%c2_142, %c0_143, %c0_144] : memref<9x4x4xbf16, #tpu.memory_space<vmem>>, vector<1x4x4xbf16>
    %230 = vector.shape_cast %229 : vector<1x4x4xbf16> to vector<4x4xbf16>
    %cst_145 = arith.constant dense<0.000000e+00> : vector<256x4xf32>
    %231 = tpu.matmul %228, %230, %cst_145 {dimension_numbers = #tpu.dot_dimension_numbers<[1], [0], [0], [1], [0, 0, 1, 1], [], []>} : vector<256x4xbf16>, vector<4x4xbf16>, vector<256x4xf32> -> vector<256x4xf32>
    %232 = arith.addf %224, %231 : vector<256x4xf32>
    %233 = vector.extract_strided_slice %226 {offsets = [1, 0, 0], sizes = [16, 16, 4], strides = [1, 1, 1]} : vector<18x16x4xbf16> to vector<16x16x4xbf16>
    %234 = vector.shape_cast %233 : vector<16x16x4xbf16> to vector<256x4xbf16>
    %c5_146 = arith.constant 5 : index
    %c0_147 = arith.constant 0 : index
    %c0_148 = arith.constant 0 : index
    %235 = vector.load %arg5[%c5_146, %c0_147, %c0_148] : memref<9x4x4xbf16, #tpu.memory_space<vmem>>, vector<1x4x4xbf16>
    %236 = vector.shape_cast %235 : vector<1x4x4xbf16> to vector<4x4xbf16>
    %cst_149 = arith.constant dense<0.000000e+00> : vector<256x4xf32>
    %237 = tpu.matmul %234, %236, %cst_149 {dimension_numbers = #tpu.dot_dimension_numbers<[1], [0], [0], [1], [0, 0, 1, 1], [], []>} : vector<256x4xbf16>, vector<4x4xbf16>, vector<256x4xf32> -> vector<256x4xf32>
    %238 = arith.addf %232, %237 : vector<256x4xf32>
    %239 = vector.extract_strided_slice %226 {offsets = [2, 0, 0], sizes = [16, 16, 4], strides = [1, 1, 1]} : vector<18x16x4xbf16> to vector<16x16x4xbf16>
    %240 = vector.shape_cast %239 : vector<16x16x4xbf16> to vector<256x4xbf16>
    %c8_150 = arith.constant 8 : index
    %c0_151 = arith.constant 0 : index
    %c0_152 = arith.constant 0 : index
    %241 = vector.load %arg5[%c8_150, %c0_151, %c0_152] : memref<9x4x4xbf16, #tpu.memory_space<vmem>>, vector<1x4x4xbf16>
    %242 = vector.shape_cast %241 : vector<1x4x4xbf16> to vector<4x4xbf16>
    %cst_153 = arith.constant dense<0.000000e+00> : vector<256x4xf32>
    %243 = tpu.matmul %240, %242, %cst_153 {dimension_numbers = #tpu.dot_dimension_numbers<[1], [0], [0], [1], [0, 0, 1, 1], [], []>} : vector<256x4xbf16>, vector<4x4xbf16>, vector<256x4xf32> -> vector<256x4xf32>
    %244 = arith.addf %238, %243 : vector<256x4xf32>
    %245 = arith.addf %183, %244 : vector<256x4xf32>
    %cst_154 = arith.constant dense<0.000000e+00> : vector<4xf32>
    %246 = vector.multi_reduction <add>, %245, %cst_154 [0] : vector<256x4xf32> to vector<4xf32>
    %247 = vector.shape_cast %246 : vector<4xf32> to vector<1x4xf32>
    %cst_155 = arith.constant 3.906250e-03 : f32
    %248 = vector.broadcast %cst_155 : f32 to vector<1x4xf32>
    %249 = arith.mulf %247, %248 : vector<1x4xf32>
    %250 = vector.broadcast %249 : vector<1x4xf32> to vector<256x4xf32>
    %251 = arith.subf %245, %250 : vector<256x4xf32>
    %c0_156 = arith.constant 0 : index
    %c0_157 = arith.constant 0 : index
    %c0_158 = arith.constant 0 : index
    %252 = vector.load %arg7[%c0_156, %c0_157, %c0_158] : memref<1x2x4xf32, #tpu.memory_space<vmem>>, vector<1x1x4xf32>
    %253 = vector.shape_cast %252 : vector<1x1x4xf32> to vector<1x4xf32>
    %254 = vector.shape_cast %249 : vector<1x4xf32> to vector<1x1x4xf32>
    tpu.vector_store %arg7[%c0_156, %c0_157, %c0_158], %254 {strides = array<i32>} : memref<1x2x4xf32, #tpu.memory_space<vmem>>, vector<1x1x4xf32>,
    %255 = arith.mulf %251, %251 : vector<256x4xf32>
    %cst_159 = arith.constant dense<0.000000e+00> : vector<4xf32>
    %256 = vector.multi_reduction <add>, %255, %cst_159 [0] : vector<256x4xf32> to vector<4xf32>
    %257 = vector.shape_cast %256 : vector<4xf32> to vector<1x4xf32>
    %c0_160 = arith.constant 0 : index
    %c1_161 = arith.constant 1 : index
    %c0_162 = arith.constant 0 : index
    %258 = vector.load %arg7[%c0_160, %c1_161, %c0_162] : memref<1x2x4xf32, #tpu.memory_space<vmem>>, vector<1x1x4xf32>
    %259 = vector.shape_cast %258 : vector<1x1x4xf32> to vector<1x4xf32>
    %260 = vector.shape_cast %257 : vector<1x4xf32> to vector<1x1x4xf32>
    tpu.vector_store %arg7[%c0_160, %c1_161, %c0_162], %260 {strides = array<i32>} : memref<1x2x4xf32, #tpu.memory_space<vmem>>, vector<1x1x4xf32>,
    %261 = arith.truncf %245 : vector<256x4xf32> to vector<256x4xbf16>
    %c0_163 = arith.constant 0 : index
    %c0_164 = arith.constant 0 : index
    %c0_165 = arith.constant 0 : index
    %262 = vector.load %arg6[%c0_163, %c0_164, %c0_165] : memref<1x256x4xbf16, #tpu.memory_space<vmem>>, vector<1x256x4xbf16>
    %263 = vector.shape_cast %262 : vector<1x256x4xbf16> to vector<256x4xbf16>
    %264 = vector.shape_cast %261 : vector<256x4xbf16> to vector<1x256x4xbf16>
    tpu.vector_store %arg6[%c0_163, %c0_164, %c0_165], %264 {strides = array<i32>} : memref<1x256x4xbf16, #tpu.memory_space<vmem>>, vector<1x256x4xbf16>,
    return
  }
  func.func @transform_0(%arg0: i32) -> (i32, i32, i32, i32) {
    %c0_i32 = arith.constant 0 : i32
    %c0_i32_0 = arith.constant 0 : i32
    %c0_i32_1 = arith.constant 0 : i32
    %c0_i32_2 = arith.constant 0 : i32
    return %arg0, %c0_i32, %c0_i32_0, %c0_i32_1 : i32, i32, i32, i32
  }
  func.func @transform_1(%arg0: i32) -> (i32, i32, i32, i32) {
    %c0_i32 = arith.constant 0 : i32
    %c0_i32_0 = arith.constant 0 : i32
    %c0_i32_1 = arith.constant 0 : i32
    %c0_i32_2 = arith.constant 0 : i32
    return %arg0, %c0_i32, %c0_i32_0, %c0_i32_1 : i32, i32, i32, i32
  }
  func.func @transform_2(%arg0: i32) -> (i32, i32) {
    %c0_i32 = arith.constant 0 : i32
    %c0_i32_0 = arith.constant 0 : i32
    %c0_i32_1 = arith.constant 0 : i32
    return %c0_i32, %c0_i32_0 : i32, i32
  }
  func.func @transform_3(%arg0: i32) -> (i32, i32, i32) {
    %c0_i32 = arith.constant 0 : i32
    %c0_i32_0 = arith.constant 0 : i32
    %c0_i32_1 = arith.constant 0 : i32
    %c0_i32_2 = arith.constant 0 : i32
    return %c0_i32, %c0_i32_0, %c0_i32_1 : i32, i32, i32
  }
  func.func @transform_4(%arg0: i32) -> (i32, i32, i32) {
    %c0_i32 = arith.constant 0 : i32
    %c0_i32_0 = arith.constant 0 : i32
    %c0_i32_1 = arith.constant 0 : i32
    %c0_i32_2 = arith.constant 0 : i32
    return %c0_i32, %c0_i32_0, %c0_i32_1 : i32, i32, i32
  }
  func.func @transform_5(%arg0: i32) -> (i32, i32, i32) {
    %c0_i32 = arith.constant 0 : i32
    %c0_i32_0 = arith.constant 0 : i32
    %c0_i32_1 = arith.constant 0 : i32
    return %arg0, %c0_i32, %c0_i32_0 : i32, i32, i32
  }
  func.func @transform_6(%arg0: i32) -> (i32, i32, i32) {
    %c0_i32 = arith.constant 0 : i32
    %c0_i32_0 = arith.constant 0 : i32
    %c0_i32_1 = arith.constant 0 : i32
    return %arg0, %c0_i32, %c0_i32_0 : i32, i32, i32
  }
}

</mosaic_0001>

<bundles_post_ra>
// kernel: tpu_custom_call.1
= control target key start
LH: loop header
LB: loop body
LE: loop exit
PB: predicated region body
PF: predicated region fallthrough
CT: control target
= control target key end

     0   :  { %12 = vsyncpa [#allocation5], 0  ;;  %s9606_s0 = inlined_call_operand.vmem [shape: f32[2,8,8,4], index: 0, kind: input, shape index: {}]   ;;  %s9607_s1 = inlined_call_operand.vmem [shape: f32[2,16,16,4], index: 1, kind: input, shape index: {}]   ;;  %s9608_s2 = inlined_call_operand.vmem [shape: f32[16,8], index: 2, kind: input, shape index: {}]   ;;  %s9609_s3 = inlined_call_operand.vmem [shape: bf16[9,4,4], index: 3, kind: input, shape index: {}]   ;;  %s9610_s4 = inlined_call_operand.vmem [shape: bf16[9,4,4], index: 4, kind: input, shape index: {}]   ;;  %s9611_s5 = inlined_call_operand.vmem [shape: bf16[2,256,4], index: 5, kind: output, shape index: {0}]   ;;  %s9612_s6 = inlined_call_operand.hbm [shape: f32[2,2,4], index: 6, kind: output, shape index: {1}]  }
   0x1   :  { %14 = vsyncpa [#allocation5 + $0x1], 0  ;;  %s7858_s21 = smov 0   ;;  %s7860_s22 = smov 0  }
   0x2   :  { %s7862_s23 = smov 0   ;;  %s7864_s24 = smov 0  }
   0x3 LB: > { %s7879_s25 = sadd.s32 4294967295, %s7819_s24   ;;  %s5771_s26 = sadd.s32 4294967294, %s7819_s24   ;;  %s7819_s24 = sphi %s7864_s24, %s9618_s24   ;;  %s7815_s23 = sphi %s7862_s23, %s9617_s23   ;;  %s7811_s22 = sphi %s7860_s22, %s9616_s22   ;;  %s7807_s21 = sphi %s7858_s21, %s9615_s21  }
   0x4   : > { %s7883_s27 = sadd.s32 1, %s7819_s24   ;;  %s168_s28 = sadd.s32 1, %s7815_s23 }
   0x5   : > { %s165_s29 = ssub.s32 %s7819_s24, %s7883_s27  ;;  %p178_p0 = scmp.ne.s32.totalorder %s7815_s23, %s7811_s22 }
   0x6   : > { %p166_p1 = scmp.eq.s32.totalorder %s165_s29, 0  ;;  %p179_p2 = scmp.eq.s32.totalorder %s7879_s25, 1 }
   0x7   : > { %p184_p3 = scmp.ne.s32.totalorder %s7811_s22, %s7807_s21  ;;  %p185_p4 = scmp.eq.s32.totalorder %s5771_s26, 1 }
   0x8   : > { %s7894_s30 = scalar_select %p166_p1, %s7815_s23, %s168_s28  }
   0x9   : > { %p7896_p5 = por %p179_p2, %p178_p0  ;;  %p7900_p6 = por %p185_p4, %p184_p3 }
   0xa   : > { %p5774_p7 = scmp.ge.s32.totalorder %s7819_s24, 1  ;;  %p228_p8 = scmp.lt.s32.totalorder %s7819_s24, 3 }
   0xc   : > { %p229_p9 = pnand %p5774_p7, %p228_p8 }
   0xd   : > { %p268_p10 = scmp.lt.s32.totalorder (!%p229_p9), %s7879_s25, 1  ;;  %v7910_v0 = vld [vmem:[%s9608_s2] sm:$0xff] (!%p229_p9)  ;;  %vm448_vm0 = vcmask (!%p229_p9), 64512   ;;  %vm284_vm1 = vcmask (!%p229_p9), 31744   ;;  %vm293_vm2 = vcmask (!%p229_p9), 24576   ;;  %v7821_v1 = vmov (!%p229_p9), 0.0  }
   0xe   : > { %232 = sbr.rel (%p229_p9) target bundleno = 1171 (0x493), region = 40  ;;  %6505 = vmatprep.mubr.msk.f32.mxu0 (!%p229_p9), %vm448_vm0, %v7910_v0  ;;  %6510 = vmatprep.mubr.msk.f32.mxu1 (!%p229_p9), %vm448_vm0, %v7910_v0  ;;  %295 = vst.msk [vmem:[#allocation2 + $0x18] sm:$0x1] (!%p229_p9), %vm293_vm2, %v7821_v1  ;;  %296 = vst.msk [vmem:[#allocation2 + $0x30] sm:$0x1] (!%p229_p9), %vm293_vm2, %v7821_v1  ;;  %v8088_v4 = vld [vmem:[%s9608_s2 + $0x8] sm:$0xff] (!%p229_p9) }
   0xf   : > { %285 = vst.msk [vmem:[#allocation2] sm:$0xff] (!%p229_p9), %vm284_vm1, %v7821_v1  ;;  %286 = vst.msk [vmem:[#allocation2 + $0x8] sm:$0xff] (!%p229_p9), %vm284_vm1, %v7821_v1  ;;  %v5798_v26 = vld [vmem:[%s9609_s3 + $0x6] sm:$0x3] (!%p229_p9)  ;;  %vm1277_vm3 = vcmask (!%p229_p9), 1041408   ;;  %vm287_vm4 = vcmask (!%p229_p9), 25600  }
  0x10   : > { %290 = vst.msk [vmem:[#allocation2 + $0x198] sm:$0xff] (!%p229_p9), %vm284_vm1, %v7821_v1  ;;  %291 = vst.msk [vmem:[#allocation2 + $0x1a0] sm:$0xff] (!%p229_p9), %vm284_vm1, %v7821_v1  ;;  %v1279_v40 = vsel (!%p229_p9), %vm1277_vm3, %v5798_v26, 0  ;;  %v1226_v44 = vld [vmem:[%s9609_s3] sm:$0x3] (!%p229_p9)  ;;  %vm5620_vm5 = vcmask (!%p229_p9), 27648  }
  0x11   : > { %297 = vst.msk [vmem:[#allocation2 + $0x48] sm:$0x1] (!%p229_p9), %vm293_vm2, %v7821_v1  ;;  %298 = vst.msk [vmem:[#allocation2 + $0x60] sm:$0x1] (!%p229_p9), %vm293_vm2, %v7821_v1  ;;  %v1446_v47 = vsel (!%p229_p9), %vm1277_vm3, %v1226_v44, 0  ;;  %s6135_s28 = sshll.u32 (!%p229_p9), %s7879_s25, 5 }
  0x12   : > { %299 = vst.msk [vmem:[#allocation2 + $0x78] sm:$0x1] (!%p229_p9), %vm293_vm2, %v7821_v1  ;;  %300 = vst.msk [vmem:[#allocation2 + $0x90] sm:$0x1] (!%p229_p9), %vm293_vm2, %v7821_v1  ;;  %v8213_v60 = vld [vmem:[%s9609_s3 + $0xc] sm:$0x3] (!%p229_p9) }
  0x13   : > { %301 = vst.msk [vmem:[#allocation2 + $0xa8] sm:$0x1] (!%p229_p9), %vm293_vm2, %v7821_v1  ;;  %302 = vst.msk [vmem:[#allocation2 + $0xc0] sm:$0x1] (!%p229_p9), %vm293_vm2, %v7821_v1 }
  0x14   : > { %303 = vst.msk [vmem:[#allocation2 + $0xd8] sm:$0x1] (!%p229_p9), %vm293_vm2, %v7821_v1  ;;  %304 = vst.msk [vmem:[#allocation2 + $0xf0] sm:$0x1] (!%p229_p9), %vm293_vm2, %v7821_v1 }
  0x15   : > { %s7917_s11 = scalar_select %p268_p10, %s7879_s25, 1  ;;  %305 = vst.msk [vmem:[#allocation2 + $0x108] sm:$0x1] %vm293_vm2, %v7821_v1  ;;  %306 = vst.msk [vmem:[#allocation2 + $0x120] sm:$0x1] %vm293_vm2, %v7821_v1 }
  0x16   : > { %307 = vst.msk [vmem:[#allocation2 + $0x138] sm:$0x1] %vm293_vm2, %v7821_v1  ;;  %308 = vst.msk [vmem:[#allocation2 + $0x150] sm:$0x1] %vm293_vm2, %v7821_v1  ;;  %s7822_s25 = smov [#allocation4]  }
  0x17   : > { %309 = vst.msk [vmem:[#allocation2 + $0x168] sm:$0x1] %vm293_vm2, %v7821_v1  ;;  %310 = vst.msk [vmem:[#allocation2 + $0x180] sm:$0x1] %vm293_vm2, %v7821_v1  ;;  %s6138_s12 = sshll.u32 %s7917_s11, 6  ;;  %s6139_s13 = sshll.u32 %s7917_s11, 8 }
  0x18   : > { %313 = vst.msk [vmem:[#allocation2 + $0x29] sm:$0x1] %vm293_vm2, %v7821_v1  ;;  %314 = vst.msk [vmem:[#allocation2 + $0x41] sm:$0x1] %vm293_vm2, %v7821_v1  ;;  %s8076_s16 = scalar_lea.vmem %s9606_s0, %s6138_s12  ;;  %s8081_s19 = scalar_lea.vmem %s9607_s1, %s6139_s13 }
  0x19   : > { %315 = vst.msk [vmem:[#allocation2 + $0x59] sm:$0x1] %vm293_vm2, %v7821_v1  ;;  %316 = vst.msk [vmem:[#allocation2 + $0x71] sm:$0x1] %vm293_vm2, %v7821_v1  ;;  %v438_v2 = vld [vmem:[%s8076_s16] sm:$0xff]  ;;  %v439_v3 = vld [vmem:[%s8076_s16 + $0x8] sm:$0xff]  ;;  %s9560_s12 = scalar_lea.hbm %s9612_s6, %s6135_s28 }
  0x1a   : > { %317 = vst.msk [vmem:[#allocation2 + $0x89] sm:$0x1] %vm293_vm2, %v7821_v1  ;;  %318 = vst.msk [vmem:[#allocation2 + $0xa1] sm:$0x1] %vm293_vm2, %v7821_v1  ;;  %6503 = vmatprep.subr.mxu0 %v438_v2  ;;  %6508 = vmatprep.subr.mxu1 %v439_v3  ;;  %v440_v5 = vld [vmem:[%s8076_s16 + $0x10] sm:$0xff]  ;;  %v441_v6 = vld [vmem:[%s8076_s16 + $0x18] sm:$0xff] }
  0x1b   : > { %319 = vst.msk [vmem:[#allocation2 + $0xb9] sm:$0x1] %vm293_vm2, %v7821_v1  ;;  %320 = vst.msk [vmem:[#allocation2 + $0xd1] sm:$0x1] %vm293_vm2, %v7821_v1  ;;  %6504 = vmatpush3.msra.mxu0 %v438_v2  ;;  %6509 = vmatpush3.msra.mxu1 %v439_v3  ;;  %v373_v7 = vld [vmem:[%s8081_s19] sm:$0xff]  ;;  %v374_v8 = vld [vmem:[%s8081_s19 + $0x8] sm:$0xff] }
  0x1c   : > { %321 = vst.msk [vmem:[#allocation2 + $0xe9] sm:$0x1] %vm293_vm2, %v7821_v1  ;;  %322 = vst.msk [vmem:[#allocation2 + $0x101] sm:$0x1] %vm293_vm2, %v7821_v1  ;;  %6506 = vmatmul.mubr.msk.f32.vlgmr.msra.gmra.mrb[0].mxu0 %vm448_vm0, %v8088_v4  ;;  %6511 = vmatmul.mubr.msk.f32.vlgmr.msra.gmra.mrb[0].mxu1 %vm448_vm0, %v8088_v4  ;;  %v443_v9 = vld [vmem:[%s8076_s16 + $0x28] sm:$0xff]  ;;  %v375_v10 = vld [vmem:[%s8081_s19 + $0x10] sm:$0xff] }
  0x1d   : > { %323 = vst.msk [vmem:[#allocation2 + $0x119] sm:$0x1] %vm293_vm2, %v7821_v1  ;;  %324 = vst.msk [vmem:[#allocation2 + $0x131] sm:$0x1] %vm293_vm2, %v7821_v1  ;;  %v376_v11 = vld [vmem:[%s8081_s19 + $0x18] sm:$0xff]  ;;  %v377_v12 = vld [vmem:[%s8081_s19 + $0x20] sm:$0xff]  ;;  %6513 = vmatprep.subr.mxu0 %v440_v5  ;;  %6518 = vmatprep.subr.mxu1 %v441_v6 }
  0x1e   : > { %325 = vst.msk [vmem:[#allocation2 + $0x149] sm:$0x1] %vm293_vm2, %v7821_v1  ;;  %326 = vst.msk [vmem:[#allocation2 + $0x161] sm:$0x1] %vm293_vm2, %v7821_v1  ;;  %v378_v13 = vld [vmem:[%s8081_s19 + $0x28] sm:$0xff]  ;;  %v379_v14 = vld [vmem:[%s8081_s19 + $0x30] sm:$0xff]  ;;  %6514 = vmatpush3.msra.mxu0 %v440_v5  ;;  %6515 = vmatprep.mubr.msk.f32.mxu0 %vm448_vm0, %v7910_v0 }
  0x1f   : > { %327 = vst.msk [vmem:[#allocation2 + $0x179] sm:$0x1] %vm293_vm2, %v7821_v1  ;;  %328 = vst.msk [vmem:[#allocation2 + $0x191] sm:$0x1] %vm293_vm2, %v7821_v1  ;;  %v380_v15 = vld [vmem:[%s8081_s19 + $0x38] sm:$0xff]  ;;  %v442_v17 = vld [vmem:[%s8076_s16 + $0x20] sm:$0xff]  ;;  %6519 = vmatpush3.msra.mxu1 %v441_v6  ;;  %6520 = vmatprep.mubr.msk.f32.mxu1 %vm448_vm0, %v7910_v0 }
  0x20   : > { %330 = vst.msk [vmem:[#allocation3] sm:$0xff] %vm284_vm1, %v7821_v1  ;;  %331 = vst.msk [vmem:[#allocation3 + $0x8] sm:$0xff] %vm284_vm1, %v7821_v1  ;;  %v445_v16 = vld [vmem:[%s8076_s16 + $0x38] sm:$0xff]  ;;  %v381_v18 = vld [vmem:[%s8081_s19 + $0x40] sm:$0xff]  ;;  %6516 = vmatmul.mubr.msk.f32.vlgmr.msra.gmra.mrb[2].mxu0 %vm448_vm0, %v8088_v4  ;;  %6521 = vmatmul.mubr.msk.f32.vlgmr.msra.gmra.mrb[2].mxu1 %vm448_vm0, %v8088_v4  ;;  %s7761_s15 = sshll.u32 %s7822_s25, 4  ;;  %s7762_s15 = int_to_ptr.vmem [resolvable:$false] %s7761_s15 }
  0x21   : > { %334 = vst.msk [vmem:[#allocation3 + $0x198] sm:$0xff] %vm284_vm1, %v7821_v1  ;;  %335 = vst.msk [vmem:[#allocation3 + $0x1a0] sm:$0xff] %vm284_vm1, %v7821_v1  ;;  %v382_v19 = vld [vmem:[%s8081_s19 + $0x48] sm:$0xff]  ;;  %v383_v20 = vld [vmem:[%s8081_s19 + $0x50] sm:$0xff]  ;;  %6528 = vmatprep.subr.mxu1 %v443_v9  ;;  %6530 = vmatprep.mubr.msk.f32.mxu1 %vm448_vm0, %v7910_v0 }
  0x22   : > { %338 = vst.msk [vmem:[#allocation3 + $0x18] sm:$0x1] %vm293_vm2, %v7821_v1  ;;  %339 = vst.msk [vmem:[#allocation3 + $0x30] sm:$0x1] %vm293_vm2, %v7821_v1  ;;  %v384_v21 = vld [vmem:[%s8081_s19 + $0x58] sm:$0xff]  ;;  %v385_v22 = vld [vmem:[%s8081_s19 + $0x60] sm:$0xff]  ;;  %6529 = vmatpush3.msra.mxu1 %v443_v9  ;;  %6523 = vmatprep.subr.mxu0 %v442_v17 }
  0x23   : > { %340 = vst.msk [vmem:[#allocation3 + $0x48] sm:$0x1] %vm293_vm2, %v7821_v1  ;;  %341 = vst.msk [vmem:[#allocation3 + $0x60] sm:$0x1] %vm293_vm2, %v7821_v1  ;;  %v386_v23 = vld [vmem:[%s8081_s19 + $0x68] sm:$0xff]  ;;  %v387_v24 = vld [vmem:[%s8081_s19 + $0x70] sm:$0xff]  ;;  %6538 = vmatprep.subr.mxu1 %v445_v16  ;;  %6524 = vmatpush3.msra.mxu0 %v442_v17 }
  0x24   : > { %342 = vst.msk [vmem:[#allocation3 + $0x78] sm:$0x1] %vm293_vm2, %v7821_v1  ;;  %343 = vst.msk [vmem:[#allocation3 + $0x90] sm:$0x1] %vm293_vm2, %v7821_v1  ;;  %v388_v25 = vld [vmem:[%s8081_s19 + $0x78] sm:$0xff]  ;;  %v389_v27 = vld [vmem:[%s8081_s19 + $0x80] sm:$0xff]  ;;  %6531 = vmatmul.mubr.msk.f32.vlgmr.msra.gmra.mrb[4].mxu1 %vm448_vm0, %v8088_v4  ;;  %6525 = vmatprep.mubr.msk.f32.mxu0 %vm448_vm0, %v7910_v0 }
  0x25   : > { %344 = vst.msk [vmem:[#allocation3 + $0xa8] sm:$0x1] %vm293_vm2, %v7821_v1  ;;  %345 = vst.msk [vmem:[#allocation3 + $0xc0] sm:$0x1] %vm293_vm2, %v7821_v1  ;;  %v390_v28 = vld [vmem:[%s8081_s19 + $0x88] sm:$0xff]  ;;  %v391_v29 = vld [vmem:[%s8081_s19 + $0x90] sm:$0xff]  ;;  %6539 = vmatpush3.msra.mxu1 %v445_v16  ;;  %6540 = vmatprep.mubr.msk.f32.mxu1 %vm448_vm0, %v7910_v0 }
  0x26   : > { %346 = vst.msk [vmem:[#allocation3 + $0xd8] sm:$0x1] %vm293_vm2, %v7821_v1  ;;  %347 = vst.msk [vmem:[#allocation3 + $0xf0] sm:$0x1] %vm293_vm2, %v7821_v1  ;;  %v392_v30 = vld [vmem:[%s8081_s19 + $0x98] sm:$0xff]  ;;  %v393_v31 = vld [vmem:[%s8081_s19 + $0xa0] sm:$0xff]  ;;  %7699 = vmatprep.subr.msk.bf16.mxu1 %vm1277_vm3, %v5798_v26  ;;  %6526 = vmatmul.mubr.msk.f32.vlgmr.msra.gmra.mrb[4].mxu0 %vm448_vm0, %v8088_v4 }
  0x27   : > { %348 = vst.msk [vmem:[#allocation3 + $0x108] sm:$0x1] %vm293_vm2, %v7821_v1  ;;  %349 = vst.msk [vmem:[#allocation3 + $0x120] sm:$0x1] %vm293_vm2, %v7821_v1  ;;  %v394_v32 = vld [vmem:[%s8081_s19 + $0xa8] sm:$0xff]  ;;  %v395_v35 = vld [vmem:[%s8081_s19 + $0xb0] sm:$0xff]  ;;  %6535 = vmatprep.mubr.msk.f32.mxu0 %vm448_vm0, %v7910_v0 }
  0x28   : > { %350 = vst.msk [vmem:[#allocation3 + $0x138] sm:$0x1] %vm293_vm2, %v7821_v1  ;;  %351 = vst.msk [vmem:[#allocation3 + $0x150] sm:$0x1] %vm293_vm2, %v7821_v1  ;;  %v444_v36 = vld [vmem:[%s8076_s16 + $0x30] sm:$0xff]  ;;  %v396_v43 = vld [vmem:[%s8081_s19 + $0xb8] sm:$0xff]  ;;  %6541 = vmatmul.mubr.msk.f32.vlgmr.msra.gmra.mrb[6].mxu1 %vm448_vm0, %v8088_v4 }
  0x29   : > { %352 = vst.msk [vmem:[#allocation3 + $0x168] sm:$0x1] %vm293_vm2, %v7821_v1  ;;  %353 = vst.msk [vmem:[#allocation3 + $0x180] sm:$0x1] %vm293_vm2, %v7821_v1  ;;  %6533 = vmatprep.subr.mxu0 %v444_v36  ;;  %6544 = vmatpush3.bf16.msra.mxu1 %v1279_v40  ;;  %v397_v50 = vld [vmem:[%s8081_s19 + $0xc0] sm:$0xff]  ;;  %v398_v51 = vld [vmem:[%s8081_s19 + $0xc8] sm:$0xff] }
  0x2a   : > { %356 = vst.msk [vmem:[#allocation3 + $0x29] sm:$0x1] %vm293_vm2, %v7821_v1  ;;  %357 = vst.msk [vmem:[#allocation3 + $0x41] sm:$0x1] %vm293_vm2, %v7821_v1  ;;  %6534 = vmatpush3.msra.mxu0 %v444_v36  ;;  %7700 = vmatprep.subr.msk.bf16.mxu1 %vm1277_vm3, %v1226_v44  ;;  %v399_v52 = vld [vmem:[%s8081_s19 + $0xd0] sm:$0xff]  ;;  %v400_v53 = vld [vmem:[%s8081_s19 + $0xd8] sm:$0xff] }
  0x2b   : > { %358 = vst.msk [vmem:[#allocation3 + $0x59] sm:$0x1] %vm293_vm2, %v7821_v1  ;;  %359 = vst.msk [vmem:[#allocation3 + $0x71] sm:$0x1] %vm293_vm2, %v7821_v1  ;;  %6536 = vmatmul.mubr.msk.f32.vlgmr.msra.gmra.mrb[6].mxu0 %vm448_vm0, %v8088_v4  ;;  %v401_v54 = vld [vmem:[%s8081_s19 + $0xe0] sm:$0xff]  ;;  %v402_v55 = vld [vmem:[%s8081_s19 + $0xe8] sm:$0xff] }
  0x2c   : > { %360 = vst.msk [vmem:[#allocation3 + $0x89] sm:$0x1] %vm293_vm2, %v7821_v1  ;;  %361 = vst.msk [vmem:[#allocation3 + $0xa1] sm:$0x1] %vm293_vm2, %v7821_v1  ;;  %v403_v56 = vld [vmem:[%s8081_s19 + $0xf0] sm:$0xff]  ;;  %v404_v57 = vld [vmem:[%s8081_s19 + $0xf8] sm:$0xff] }
  0x2d   : > { %362 = vst.msk [vmem:[#allocation3 + $0xb9] sm:$0x1] %vm293_vm2, %v7821_v1  ;;  %363 = vst.msk [vmem:[#allocation3 + $0xd1] sm:$0x1] %vm293_vm2, %v7821_v1  ;;  %v1615_v36 = vsel %vm1277_vm3, %v8213_v60, 0  ;;  %v1810_v44 = vld [vmem:[#allocation2 + $0x1] sm:$0xff] }
  0x2e   : > { %364 = vst.msk [vmem:[#allocation3 + $0xe9] sm:$0x1] %vm293_vm2, %v7821_v1  ;;  %365 = vst.msk [vmem:[#allocation3 + $0x101] sm:$0x1] %vm293_vm2, %v7821_v1  ;;  %s6140_s16 = sshll.u32 %s7917_s11, 7  ;;  %s265_s11 = sand.u32 1, %s7811_s22  }
  0x2f   : > { %366 = vst.msk [vmem:[#allocation3 + $0x119] sm:$0x1] %vm293_vm2, %v7821_v1  ;;  %367 = vst.msk [vmem:[#allocation3 + $0x131] sm:$0x1] %vm293_vm2, %v7821_v1  ;;  %s9148_s19 = scalar_lea.vmem %s9611_s5, %s6140_s16  ;;  %s5775_s20 = sshll.u32 %s265_s11, 1 }
  0x30   : > { %368 = vst.msk [vmem:[#allocation3 + $0x149] sm:$0x1] %vm293_vm2, %v7821_v1  ;;  %369 = vst.msk [vmem:[#allocation3 + $0x161] sm:$0x1] %vm293_vm2, %v7821_v1  ;;  %s9415_s26 = scalar_lea.vmem [#allocation4], %s5775_s20  ;;  %s5659_s13 = scalar_lea.sflag [#allocation5], %s265_s11 }
  0x31   : > { %370 = vst.msk [vmem:[#allocation3 + $0x179] sm:$0x1] %vm293_vm2, %v7821_v1  ;;  %371 = vst.msk [vmem:[#allocation3 + $0x191] sm:$0x1] %vm293_vm2, %v7821_v1  ;;  %s5675_s29 = sshll.u32 %s9415_s26, 4  ;;  %s7763_s16 = scalar_lea.vmem %s7762_s15, 64  ;;  %s9562_s29 = int_to_ptr.vmem [resolvable:$true] %s5675_s29 }
  0x32   : > { %294 = vst.msk [vmem:[#allocation2] sm:$0x1] %vm293_vm2, %v7821_v1  ;;  %311 = vst.msk [vmem:[#allocation2 + $0x198] sm:$0x1] %vm293_vm2, %v7821_v1  ;;  %s7757_s14 = scalar_lea.vmem %s9562_s29, 32  ;;  %p7764_p0 = scmp.lt.s32.totalorder %s9562_s29, %s7762_s15 }
  0x33   : > { %337 = vst.msk [vmem:[#allocation3] sm:$0x1] %vm293_vm2, %v7821_v1  ;;  %354 = vst.msk [vmem:[#allocation3 + $0x198] sm:$0x1] %vm293_vm2, %v7821_v1  ;;  %p7758_p11 = scmp.ne.s32.totalorder %s9562_s29, %s7757_s14  ;;  %p7765_p1 = scmp.lt.s32.totalorder %s7763_s16, %s7757_s14 }
  0x34   : > { %406 = vst.msk [vmem:[#allocation2 + $0x19] sm:$0xff] %vm284_vm1, %v373_v7  ;;  %407 = vst.msk [vmem:[#allocation2 + $0x21] sm:$0xff] %vm284_vm1, %v374_v8 }
  0x35   : > { %408 = vst.msk [vmem:[#allocation2 + $0x31] sm:$0xff] %vm284_vm1, %v375_v10  ;;  %409 = vst.msk [vmem:[#allocation2 + $0x39] sm:$0xff] %vm284_vm1, %v376_v11  ;;  %p7759_p12 = pnand %p7758_p11, %p7896_p5  ;;  %p7766_p2 = por %p7765_p1, %p7764_p0 }
  0x36   : > { %410 = vst.msk [vmem:[#allocation2 + $0x49] sm:$0xff] %vm284_vm1, %v377_v12  ;;  %411 = vst.msk [vmem:[#allocation2 + $0x51] sm:$0xff] %vm284_vm1, %v378_v13 }
  0x37   : > { %412 = vst.msk [vmem:[#allocation2 + $0x61] sm:$0xff] %vm284_vm1, %v379_v14  ;;  %413 = vst.msk [vmem:[#allocation2 + $0x69] sm:$0xff] %vm284_vm1, %v380_v15  ;;  %p7760_p13 = pneg %p7759_p12 }
  0x38   : > { %414 = vst.msk [vmem:[#allocation2 + $0x79] sm:$0xff] %vm284_vm1, %v381_v18  ;;  %415 = vst.msk [vmem:[#allocation2 + $0x81] sm:$0xff] %vm284_vm1, %v382_v19 }
  0x39   : > { %416 = vst.msk [vmem:[#allocation2 + $0x91] sm:$0xff] %vm284_vm1, %v383_v20  ;;  %417 = vst.msk [vmem:[#allocation2 + $0x99] sm:$0xff] %vm284_vm1, %v384_v21  ;;  %p7767_p3 = pnand %p7766_p2, %p7760_p13 }
  0x3a   : > { %418 = vst.msk [vmem:[#allocation2 + $0xa9] sm:$0xff] %vm284_vm1, %v385_v22  ;;  %419 = vst.msk [vmem:[#allocation2 + $0xb1] sm:$0xff] %vm284_vm1, %v386_v23 }
  0x3b   : > { %420 = vst.msk [vmem:[#allocation2 + $0xc1] sm:$0xff] %vm284_vm1, %v387_v24  ;;  %421 = vst.msk [vmem:[#allocation2 + $0xc9] sm:$0xff] %vm284_vm1, %v388_v25  ;;  %v1174_v33 = vld [vmem:[#allocation2 + $0x18] sm:$0xff]  ;;  %v1175_v34 = vld [vmem:[#allocation2 + $0x20] sm:$0xff] }
  0x3c   : > { %422 = vst.msk [vmem:[#allocation2 + $0xd9] sm:$0xff] %vm284_vm1, %v389_v27  ;;  %423 = vst.msk [vmem:[#allocation2 + $0xe1] sm:$0xff] %vm284_vm1, %v390_v28  ;;  %v8165_v37 = vpack.c.bf16 %v1175_v34, %v1174_v33  ;;  %v1176_v38 = vld [vmem:[#allocation2 + $0x30] sm:$0xff]  ;;  %v1177_v39 = vld [vmem:[#allocation2 + $0x38] sm:$0xff] }
  0x3d   : > { %424 = vst.msk [vmem:[#allocation2 + $0xf1] sm:$0xff] %vm284_vm1, %v391_v29  ;;  %425 = vst.msk [vmem:[#allocation2 + $0xf9] sm:$0xff] %vm284_vm1, %v392_v30  ;;  %v1178_v41 = vld [vmem:[#allocation2 + $0x48] sm:$0xff]  ;;  %v1179_v42 = vld [vmem:[#allocation2 + $0x50] sm:$0xff]  ;;  %v8180_v45 = vpack.c.bf16 %v1177_v39, %v1176_v38 }
  0x3e   : > { %426 = vst.msk [vmem:[#allocation2 + $0x109] sm:$0xff] %vm284_vm1, %v393_v31  ;;  %427 = vst.msk [vmem:[#allocation2 + $0x111] sm:$0xff] %vm284_vm1, %v394_v32  ;;  %6545 = vmatprep.mubr.msk.bf16.mxu1 %vm284_vm1, %v8165_v37  ;;  %v8184_v46 = vpack.c.bf16 %v1179_v42, %v1178_v41  ;;  %v1180_v48 = vld [vmem:[#allocation2 + $0x60] sm:$0xff]  ;;  %v1181_v49 = vld [vmem:[#allocation2 + $0x68] sm:$0xff] }
  0x3f   : > { %428 = vst.msk [vmem:[#allocation2 + $0x121] sm:$0xff] %vm284_vm1, %v395_v35  ;;  %429 = vst.msk [vmem:[#allocation2 + $0x129] sm:$0xff] %vm284_vm1, %v396_v43  ;;  %6546 = vmatmul.mubr.msk.bf16.vlgmr.msra.gmra.mrb[8].mxu1 %vm284_vm1, %v8180_v45  ;;  %v1182_v58 = vld [vmem:[#allocation2 + $0x78] sm:$0xff]  ;;  %v1183_v59 = vld [vmem:[#allocation2 + $0x80] sm:$0xff]  ;;  %v8215_v61 = vpack.c.bf16 %v1181_v49, %v1180_v48 }
  0x40   : > { %430 = vst.msk [vmem:[#allocation2 + $0x139] sm:$0xff] %vm284_vm1, %v397_v50  ;;  %431 = vst.msk [vmem:[#allocation2 + $0x141] sm:$0xff] %vm284_vm1, %v398_v51  ;;  %6549 = vmatprep.mubr.msk.bf16.mxu1 %vm284_vm1, %v8184_v46  ;;  %6578 = vmatpush3.bf16.msra.mxu1 %v1446_v47  ;;  %v8219_v62 = vpack.c.bf16 %v1183_v59, %v1182_v58  ;;  %v1184_v63 = vld [vmem:[#allocation2 + $0x90] sm:$0xff]  ;;  %v1185_v0 = vld [vmem:[#allocation2 + $0x98] sm:$0xff] }
  0x41   : > { %432 = vst.msk [vmem:[#allocation2 + $0x151] sm:$0xff] %vm284_vm1, %v399_v52  ;;  %433 = vst.msk [vmem:[#allocation2 + $0x159] sm:$0xff] %vm284_vm1, %v400_v53  ;;  %7701 = vmatprep.subr.msk.bf16.mxu1 %vm1277_vm3, %v8213_v60  ;;  %v1186_v2 = vld [vmem:[#allocation2 + $0xa8] sm:$0xff]  ;;  %v1187_v3 = vld [vmem:[#allocation2 + $0xb0] sm:$0xff]  ;;  %v8225_v4 = vpack.c.bf16 %v1185_v0, %v1184_v63 }
  0x42   : > { %434 = vst.msk [vmem:[#allocation2 + $0x169] sm:$0xff] %vm284_vm1, %v401_v54  ;;  %435 = vst.msk [vmem:[#allocation2 + $0x171] sm:$0xff] %vm284_vm1, %v402_v55  ;;  %v8227_v5 = vpack.c.bf16 %v1187_v3, %v1186_v2  ;;  %v1188_v6 = vld [vmem:[#allocation2 + $0xc0] sm:$0xff]  ;;  %v1189_v7 = vld [vmem:[#allocation2 + $0xc8] sm:$0xff] }
  0x43   : > { %436 = vst.msk [vmem:[#allocation2 + $0x181] sm:$0xff] %vm284_vm1, %v403_v56  ;;  %437 = vst.msk [vmem:[#allocation2 + $0x189] sm:$0xff] %vm284_vm1, %v404_v57  ;;  %v1190_v8 = vld [vmem:[#allocation2 + $0xd8] sm:$0xff]  ;;  %v1191_v9 = vld [vmem:[#allocation2 + $0xe0] sm:$0xff]  ;;  %v8233_v10 = vpack.c.bf16 %v1189_v7, %v1188_v6 }
  0x44   : > { %v8235_v11 = vpack.c.bf16 %v1191_v9, %v1190_v8  ;;  %v1192_v12 = vld [vmem:[#allocation2 + $0xf0] sm:$0xff]  ;;  %v1193_v13 = vld [vmem:[#allocation2 + $0xf8] sm:$0xff]  ;;  %v1172_v32 = vld [vmem:[#allocation2] sm:$0xff]  ;;  %288 = vst.msk [vmem:[#allocation2 + $0x10] sm:$0x3] %vm287_vm4, %v7821_v1 }
  0x45   : > { %v1194_v14 = vld [vmem:[#allocation2 + $0x108] sm:$0xff]  ;;  %v1195_v15 = vld [vmem:[#allocation2 + $0x110] sm:$0xff]  ;;  %v8241_v16 = vpack.c.bf16 %v1193_v13, %v1192_v12  ;;  %292 = vst.msk [vmem:[#allocation2 + $0x1a8] sm:$0x3] %vm287_vm4, %v7821_v1  ;;  %332 = vst.msk [vmem:[#allocation3 + $0x10] sm:$0x3] %vm287_vm4, %v7821_v1 }
  0x46   : > { %v8243_v17 = vpack.c.bf16 %v1195_v15, %v1194_v14  ;;  %v1196_v18 = vld [vmem:[#allocation2 + $0x120] sm:$0xff]  ;;  %v1197_v19 = vld [vmem:[#allocation2 + $0x128] sm:$0xff]  ;;  %336 = vst.msk [vmem:[#allocation3 + $0x1a8] sm:$0x3] %vm287_vm4, %v7821_v1  ;;  %v1206_v42 = vld [vmem:[#allocation2 + $0x198] sm:$0xff] }
  0x47   : > { %6550 = vmatmul.mubr.msk.bf16.gmra.mrb[12].mxu1 %vm284_vm1, %v8215_v61  ;;  %v1198_v20 = vld [vmem:[#allocation2 + $0x138] sm:$0xff]  ;;  %v1199_v21 = vld [vmem:[#allocation2 + $0x140] sm:$0xff]  ;;  %v8249_v22 = vpack.c.bf16 %v1197_v19, %v1196_v18  ;;  %v1173_v33 = vld [vmem:[#allocation2 + $0x8] sm:$0xff]  ;;  %312 = vst.msk [vmem:[#allocation2 + $0x11] sm:$0x1] %vm293_vm2, %v7821_v1 }
  0x48   : > { %6553 = vmatprep.mubr.msk.bf16.mxu1 %vm284_vm1, %v8219_v62  ;;  %v8251_v23 = vpack.c.bf16 %v1199_v21, %v1198_v20  ;;  %v1200_v24 = vld [vmem:[#allocation2 + $0x150] sm:$0xff]  ;;  %v1201_v25 = vld [vmem:[#allocation2 + $0x158] sm:$0xff]  ;;  %v1208_v35 = vpack.c.bf16 %v1173_v33, %v1172_v32  ;;  %329 = vst.msk [vmem:[#allocation2 + $0x1a9] sm:$0x1] %vm293_vm2, %v7821_v1  ;;  %355 = vst.msk [vmem:[#allocation3 + $0x11] sm:$0x1] %vm293_vm2, %v7821_v1 }
  0x49   : > { %v1202_v26 = vld [vmem:[#allocation2 + $0x168] sm:$0xff]  ;;  %v1203_v27 = vld [vmem:[#allocation2 + $0x170] sm:$0xff]  ;;  %v1222_v28 = vpack.c.bf16 %v1201_v25, %v1200_v24  ;;  %372 = vst.msk [vmem:[#allocation3 + $0x1a9] sm:$0x1] %vm293_vm2, %v7821_v1  ;;  %v5848_v38 = vld [vmem:[%s9609_s3 + $0x2] sm:$0x3] }
  0x4a   : > { %v1223_v29 = vpack.c.bf16 %v1203_v27, %v1202_v26  ;;  %v1204_v30 = vld [vmem:[#allocation2 + $0x180] sm:$0xff]  ;;  %v1205_v31 = vld [vmem:[#allocation2 + $0x188] sm:$0xff]  ;;  %v1915_v40 = vsel %vm1277_vm3, %v5848_v38, 0  ;;  %v1814_v50 = vld [vmem:[#allocation2 + $0x31] sm:$0xff] }
  0x4b   : > { %v1224_v34 = vpack.c.bf16 %v1205_v31, %v1204_v30  ;;  %v5950_v1 = vld [vmem:[%s9610_s4 + $0x6] sm:$0x3]  ;;  %v8299_v39 = vld [vmem:[%s9610_s4] sm:$0x3]  ;;  %v5865_v41 = vld [vmem:[%s9609_s3 + $0x8] sm:$0x3] }
  0x4c   : > { %7708 = vmatprep.subr.msk.bf16.mxu0 %vm1277_vm3, %v5950_v1  ;;  %v1207_v43 = vld [vmem:[#allocation2 + $0x1a0] sm:$0xff]  ;;  %v2116_v54 = vsel %vm1277_vm3, %v5865_v41, 0  ;;  %v8361_v55 = vld [vmem:[%s9609_s3 + $0xe] sm:$0x3]  ;;  %v1817_v57 = vld [vmem:[#allocation2 + $0x51] sm:$0xff] }
  0x4d   : > { %v1812_v48 = vld [vmem:[#allocation2 + $0x19] sm:$0xff]  ;;  %v1813_v49 = vld [vmem:[#allocation2 + $0x21] sm:$0xff]  ;;  %v1816_v56 = vld [vmem:[#allocation2 + $0x49] sm:$0xff] }
  0x4e   : > { %v1815_v51 = vld [vmem:[#allocation2 + $0x39] sm:$0xff]  ;;  %v8353_v52 = vpack.c.bf16 %v1813_v49, %v1812_v48  ;;  %v1818_v58 = vld [vmem:[#allocation2 + $0x61] sm:$0xff]  ;;  %v1819_v59 = vld [vmem:[#allocation2 + $0x69] sm:$0xff]  ;;  %v8370_v2 = vpack.c.bf16 %v1817_v57, %v1816_v56 }
  0x4f   : > { %6554 = vmatmul.mubr.msk.bf16.gmra.mrb[16].mxu1 %vm284_vm1, %v8225_v4  ;;  %v8355_v53 = vpack.c.bf16 %v1815_v51, %v1814_v50  ;;  %v1820_v8 = vld [vmem:[#allocation2 + $0x79] sm:$0xff]  ;;  %v1821_v9 = vld [vmem:[#allocation2 + $0x81] sm:$0xff] }
  0x50   : > { %6557 = vmatprep.mubr.msk.bf16.mxu1 %vm284_vm1, %v8227_v5  ;;  %v1823_v12 = vld [vmem:[#allocation2 + $0x99] sm:$0xff]  ;;  %v8386_v33 = vpack.c.bf16 %v1821_v9, %v1820_v8 }
  0x57   : > { %6558 = vmatmul.mubr.msk.bf16.gmra.mrb[20].mxu1 %vm284_vm1, %v8233_v10 }
  0x58   : > { %6561 = vmatprep.mubr.msk.bf16.mxu1 %vm284_vm1, %v8235_v11 }
  0x5f   : > { %6562 = vmatmul.mubr.msk.bf16.gmra.mrb[24].mxu1 %vm284_vm1, %v8241_v16 }
  0x60   : > { %6565 = vmatprep.mubr.msk.bf16.mxu1 %vm284_vm1, %v8243_v17 }
  0x67   : > { %6566 = vmatmul.mubr.msk.bf16.gmra.mrb[28].mxu1 %vm284_vm1, %v8249_v22 }
  0x68   : > { %6569 = vmatprep.mubr.msk.bf16.mxu1 %vm284_vm1, %v8251_v23 }
  0x6f   : > { %6570 = vmatmul.mubr.msk.bf16.gmra.mrb[32].mxu1 %vm284_vm1, %v1222_v28 }
  0x70   : > { %6573 = vmatprep.mubr.msk.bf16.mxu1 %vm284_vm1, %v1223_v29 }
  0x77   : > { %6574 = vmatmul.mubr.msk.bf16.gmra.mrb[36].mxu1 %vm284_vm1, %v1224_v34 }
  0x78   : > { %6579 = vmatprep.mubr.msk.bf16.mxu1 %vm284_vm1, %v1208_v35 }
  0x7f   : > { %6580 = vmatmul.mubr.msk.bf16.vlgmr.msra.gmra.mrb[8].mxu1 %vm284_vm1, %v8165_v37  ;;  %v3320_v37 = vsel %vm1277_vm3, %v5950_v1, 0 }
  0x80   : > { %6583 = vmatprep.mubr.msk.bf16.mxu1 %vm284_vm1, %v8180_v45  ;;  %6612 = vmatpush3.bf16.msra.mxu1 %v1615_v36 }
  0x81   : > { %7702 = vmatprep.subr.msk.bf16.mxu1 %vm1277_vm3, %v5848_v38  ;;  %6850 = vmatpush3.bf16.msra.mxu0 %v3320_v37 }
  0x82   : > { %7709 = vmatprep.subr.msk.bf16.mxu0 %vm1277_vm3, %v8299_v39 }
  0x87   : > { %6584 = vmatmul.mubr.msk.bf16.gmra.mrb[12].mxu1 %vm284_vm1, %v8184_v46 }
  0x88   : > { %6587 = vmatprep.mubr.msk.bf16.mxu1 %vm284_vm1, %v8215_v61 }
  0x8f   : > { %6588 = vmatmul.mubr.msk.bf16.gmra.mrb[16].mxu1 %vm284_vm1, %v8219_v62 }
  0x90   : > { %6591 = vmatprep.mubr.msk.bf16.mxu1 %vm284_vm1, %v8225_v4 }
  0x97   : > { %6592 = vmatmul.mubr.msk.bf16.gmra.mrb[20].mxu1 %vm284_vm1, %v8227_v5 }
  0x98   : > { %6595 = vmatprep.mubr.msk.bf16.mxu1 %vm284_vm1, %v8233_v10 }
  0x9f   : > { %6596 = vmatmul.mubr.msk.bf16.gmra.mrb[24].mxu1 %vm284_vm1, %v8235_v11 }
  0xa0   : > { %6599 = vmatprep.mubr.msk.bf16.mxu1 %vm284_vm1, %v8241_v16 }
  0xa7   : > { %6600 = vmatmul.mubr.msk.bf16.gmra.mrb[28].mxu1 %vm284_vm1, %v8243_v17 }
  0xa8   : > { %6603 = vmatprep.mubr.msk.bf16.mxu1 %vm284_vm1, %v8249_v22 }
  0xaf   : > { %6604 = vmatmul.mubr.msk.bf16.gmra.mrb[32].mxu1 %vm284_vm1, %v8251_v23 }
  0xb0   : > { %6607 = vmatprep.mubr.msk.bf16.mxu1 %vm284_vm1, %v1222_v28 }
  0xb7   : > { %6608 = vmatmul.mubr.msk.bf16.gmra.mrb[36].mxu1 %vm284_vm1, %v1223_v29 }
  0xb8   : > { %6613 = vmatprep.mubr.msk.bf16.mxu1 %vm284_vm1, %v8180_v45  ;;  %v1811_v45 = vld [vmem:[#allocation2 + $0x9] sm:$0xff] }
  0xb9   : > { %v1846_v47 = vpack.c.bf16 %v1811_v45, %v1810_v44  ;;  %v1825_v44 = vld [vmem:[#allocation2 + $0xb1] sm:$0xff] }
  0xbf   : > { %6614 = vmatmul.mubr.msk.bf16.vlgmr.msra.gmra.mrb[8].mxu1 %vm284_vm1, %v8184_v46  ;;  %v1225_v46 = vpack.c.bf16 %v1207_v43, %v1206_v42  ;;  %v1824_v43 = vld [vmem:[#allocation2 + $0xa9] sm:$0xff] }
  0xc0   : > { %6617 = vmatprep.mubr.msk.bf16.mxu1 %vm284_vm1, %v8215_v61  ;;  %6646 = vmatpush3.bf16.msra.mxu1 %v1915_v40 }
  0xc1   : > { %7703 = vmatprep.subr.msk.bf16.mxu1 %vm1277_vm3, %v5865_v41 }
  0xc7   : > { %6618 = vmatmul.mubr.msk.bf16.gmra.mrb[12].mxu1 %vm284_vm1, %v8219_v62 }
  0xc8   : > { %6621 = vmatprep.mubr.msk.bf16.mxu1 %vm284_vm1, %v8225_v4  ;;  %v8372_v4 = vpack.c.bf16 %v1819_v59, %v1818_v58 }
  0xcf   : > { %6622 = vmatmul.mubr.msk.bf16.gmra.mrb[16].mxu1 %vm284_vm1, %v8227_v5 }
  0xd0   : > { %6625 = vmatprep.mubr.msk.bf16.mxu1 %vm284_vm1, %v8233_v10  ;;  %v8376_v10 = vsel %vm1277_vm3, %v8299_v39, 0 }
  0xd7   : > { %6626 = vmatmul.mubr.msk.bf16.gmra.mrb[20].mxu1 %vm284_vm1, %v8235_v11  ;;  %v1822_v11 = vld [vmem:[#allocation2 + $0x91] sm:$0xff] }
  0xd8   : > { %6629 = vmatprep.mubr.msk.bf16.mxu1 %vm284_vm1, %v8241_v16 }
  0xdf   : > { %6630 = vmatmul.mubr.msk.bf16.gmra.mrb[24].mxu1 %vm284_vm1, %v8243_v17 }
  0xe0   : > { %6633 = vmatprep.mubr.msk.bf16.mxu1 %vm284_vm1, %v8249_v22 }
  0xe7   : > { %6634 = vmatmul.mubr.msk.bf16.gmra.mrb[28].mxu1 %vm284_vm1, %v8251_v23 }
  0xe8   : > { %6637 = vmatprep.mubr.msk.bf16.mxu1 %vm284_vm1, %v1222_v28 }
  0xef   : > { %6638 = vmatmul.mubr.msk.bf16.gmra.mrb[32].mxu1 %vm284_vm1, %v1223_v29  ;;  %v6507_v60 = vpop.f32.mrb[0].mxu0  ;;  %v6512_v61 = vpop.f32.mrb[0].mxu1 }
  0xf0   : > { %6641 = vmatprep.mubr.msk.bf16.mxu1 %vm284_vm1, %v1224_v34  ;;  %v1056_v62 = vmul.f32 0.53333336, %v6507_v60  ;;  %v1062_v63 = vmul.f32 0.06666667, %v6507_v60  ;;  %1141 = vst.msk [vmem:[#allocation3 + $0x21] sm:$0xff] %vm284_vm1, %v6507_v60  ;;  %v8388_v34 = vpack.c.bf16 %v1823_v12, %v1822_v11 }
  0xf1   : > { %v1058_v0 = vmul.f32 0.46666667, %v6512_v61  ;;  %v1064_v3 = vmul.f32 0.93333334, %v6512_v61  ;;  %v521_v6 = vpop.f32.mrb[1].mxu0  ;;  %v596_v7 = vpop.f32.mrb[1].mxu1 }
  0xf2   : > { %v1055_v14 = vmul.f32 0.53333336, %v521_v6  ;;  %v1061_v15 = vmul.f32 0.06666667, %v521_v6  ;;  %1140 = vst.msk [vmem:[#allocation3 + $0x19] sm:$0xff] %vm284_vm1, %v521_v6 }
  0xf3   : > { %v1060_v5 = vadd.f32 %v1058_v0, %v1056_v62  ;;  %v1066_v13 = vadd.f32 %v1064_v3, %v1062_v63  ;;  %v1057_v16 = vmul.f32 0.46666667, %v596_v7  ;;  %v1068_v17 = vmul.f32 0.6, %v6512_v61  ;;  %v6517_v23 = vpop.f32.mrb[2].mxu0  ;;  %v6522_v24 = vpop.f32.mrb[2].mxu1 }
  0xf4   : > { %v1074_v18 = vmul.f32 0.13333334, %v6512_v61  ;;  %v1063_v19 = vmul.f32 0.93333334, %v596_v7  ;;  %v1067_v21 = vmul.f32 0.6, %v596_v7 }
  0xf5   : > { %1143 = vst.msk [vmem:[#allocation3 + $0x39] sm:$0xff] %vm284_vm1, %v1060_v5  ;;  %1145 = vst.msk [vmem:[#allocation3 + $0x51] sm:$0xff] %vm284_vm1, %v1066_v13  ;;  %v1059_v20 = vadd.f32 %v1057_v16, %v1055_v14  ;;  %v1073_v22 = vmul.f32 0.13333334, %v596_v7  ;;  %v1070_v26 = vmul.f32 0.4, %v6517_v23  ;;  %v8410_v14 = vpack.c.bf16 %v1825_v44, %v1824_v43 }
  0xf6   : > { %v1065_v25 = vadd.f32 %v1063_v19, %v1061_v15  ;;  %v1076_v27 = vmul.f32 0.8666667, %v6517_v23  ;;  %v1080_v28 = vmul.f32 0.6666667, %v6517_v23  ;;  %v1086_v29 = vmul.f32 0.2, %v6517_v23 }
  0xf7   : > { %6642 = vmatmul.mubr.msk.bf16.gmra.mrb[36].mxu1 %vm284_vm1, %v1225_v46  ;;  %1142 = vst.msk [vmem:[#allocation3 + $0x31] sm:$0xff] %vm284_vm1, %v1059_v20  ;;  %v671_v30 = vpop.f32.mrb[3].mxu0  ;;  %v1082_v31 = vmul.f32 0.33333334, %v6522_v24  ;;  %v746_v32 = vpop.f32.mrb[3].mxu1  ;;  %v1072_v35 = vadd.f32 %v1070_v26, %v1068_v17  ;;  %v1826_v63 = vld [vmem:[#allocation2 + $0xc1] sm:$0xff] }
  0xf8   : > { %6647 = vmatprep.mubr.msk.bf16.mxu1 %vm284_vm1, %v1846_v47  ;;  %1144 = vst.msk [vmem:[#allocation3 + $0x49] sm:$0xff] %vm284_vm1, %v1065_v25  ;;  %v1078_v36 = vadd.f32 %v1076_v27, %v1074_v18  ;;  %v1069_v38 = vmul.f32 0.4, %v671_v30  ;;  %v1075_v1 = vmul.f32 0.8666667, %v671_v30  ;;  %v1827_v0 = vld [vmem:[#allocation2 + $0xc9] sm:$0xff] }
  0xf9   : > { %v8391_v37 = vpop.f32.mrb[4].mxu1  ;;  %v1079_v39 = vmul.f32 0.6666667, %v671_v30  ;;  %v1085_v40 = vmul.f32 0.2, %v671_v30  ;;  %v1084_v41 = vadd.f32 %v1082_v31, %v1080_v28  ;;  %v3216_v49 = vld [vmem:[#allocation3 + $0x18] sm:$0xff] }
  0xfa   : > { %v1088_v42 = vmul.f32 0.8, %v6522_v24  ;;  %1147 = vst.msk [vmem:[#allocation3 + $0x69] sm:$0xff] %vm284_vm1, %v1072_v35  ;;  %1149 = vst.msk [vmem:[#allocation3 + $0x81] sm:$0xff] %vm284_vm1, %v1078_v36  ;;  %v1071_v45 = vadd.f32 %v1069_v38, %v1067_v21  ;;  %v1077_v46 = vadd.f32 %v1075_v1, %v1073_v22  ;;  %v1092_v47 = vmul.f32 0.73333335, %v6522_v24 }
  0xfb   : > { %v1098_v48 = vmul.f32 0.26666668, %v6522_v24  ;;  %v3217_v50 = vld [vmem:[#allocation3 + $0x20] sm:$0xff]  ;;  %1151 = vst.msk [vmem:[#allocation3 + $0x99] sm:$0xff] %vm284_vm1, %v1084_v41  ;;  %v1087_v56 = vmul.f32 0.8, %v746_v32  ;;  %v8423_v38 = vpack.c.bf16 %v1827_v0, %v1826_v63 }
  0xfc   : > { %v1090_v51 = vadd.f32 %v1088_v42, %v1086_v29  ;;  %v1091_v57 = vmul.f32 0.73333335, %v746_v32  ;;  %1146 = vst.msk [vmem:[#allocation3 + $0x61] sm:$0xff] %vm284_vm1, %v1071_v45  ;;  %1148 = vst.msk [vmem:[#allocation3 + $0x79] sm:$0xff] %vm284_vm1, %v1077_v46  ;;  %v1097_v58 = vmul.f32 0.26666668, %v746_v32  ;;  %v8398_v59 = vpack.c.bf16 %v3217_v50, %v3216_v49 }
  0xfd   : > { %v6527_v60 = vpop.f32.mrb[4].mxu0  ;;  %v1106_v61 = vmul.f32 0.2, %v8391_v37  ;;  %v896_v62 = vpop.f32.mrb[5].mxu1  ;;  %v1089_v5 = vadd.f32 %v1087_v56, %v1085_v40  ;;  %v1828_v27 = vld [vmem:[#allocation2 + $0xd9] sm:$0xff]  ;;  %v1829_v28 = vld [vmem:[#allocation2 + $0xe1] sm:$0xff] }
  0xfe   : > { %1153 = vst.msk [vmem:[#allocation3 + $0xb1] sm:$0xff] %vm284_vm1, %v1090_v51  ;;  %v1094_v6 = vmul.f32 0.26666668, %v6527_v60  ;;  %v1100_v7 = vmul.f32 0.73333335, %v6527_v60  ;;  %6851 = vmatprep.mubr.msk.bf16.mxu0 %vm284_vm1, %v8398_v59  ;;  %v3218_v19 = vld [vmem:[#allocation3 + $0x30] sm:$0xff] }
  0xff   : > { %6648 = vmatmul.mubr.msk.bf16.vlgmr.msra.gmra.mrb[8].mxu1 %vm284_vm1, %v8353_v52  ;;  %v821_v8 = vpop.f32.mrb[5].mxu0  ;;  %v8406_v9 = vpop.f32.mrb[6].mxu1  ;;  %v1104_v11 = vmul.f32 0.8, %v6527_v60  ;;  %v1110_v12 = vmul.f32 0.33333334, %v6527_v60 }
 0x100   : > { %6651 = vmatprep.mubr.msk.bf16.mxu1 %vm284_vm1, %v8355_v53  ;;  %6680 = vmatpush3.bf16.msra.mxu1 %v2116_v54  ;;  %v1081_v54 = vmul.f32 0.33333334, %v746_v32  ;;  %v1093_v13 = vmul.f32 0.26666668, %v821_v8  ;;  %1171 = vst.msk [vmem:[#allocation3 + $0x189] sm:$0xff] %vm284_vm1, %v8406_v9  ;;  %1152 = vst.msk [vmem:[#allocation3 + $0xa9] sm:$0xff] %vm284_vm1, %v1089_v5  ;;  %v1096_v15 = vadd.f32 %v1094_v6, %v1092_v47 }
 0x101   : > { %7704 = vmatprep.subr.msk.bf16.mxu1 %vm1277_vm3, %v8361_v55  ;;  %v1102_v16 = vadd.f32 %v1100_v7, %v1098_v48  ;;  %v1099_v17 = vmul.f32 0.73333335, %v821_v8  ;;  %v1103_v18 = vmul.f32 0.8, %v821_v8  ;;  %v3219_v20 = vld [vmem:[#allocation3 + $0x38] sm:$0xff]  ;;  %v3220_v24 = vld [vmem:[#allocation3 + $0x48] sm:$0xff]  ;;  %v1108_v26 = vadd.f32 %v1106_v61, %v1104_v11 }
 0x102   : > { %v1083_v3 = vadd.f32 %v1081_v54, %v1079_v39  ;;  %v1095_v21 = vadd.f32 %v1093_v13, %v1091_v57  ;;  %v1109_v22 = vmul.f32 0.33333334, %v821_v8  ;;  %v8416_v23 = vpack.c.bf16 %v3219_v20, %v3218_v19  ;;  %v3221_v25 = vld [vmem:[#allocation3 + $0x50] sm:$0xff]  ;;  %v6537_v29 = vpop.f32.mrb[6].mxu0  ;;  %v1830_v30 = vld [vmem:[#allocation2 + $0xf1] sm:$0xff]  ;;  %v1046_v31 = vpop.f32.mrb[7].mxu1 }
 0x103   : > { %1155 = vst.msk [vmem:[#allocation3 + $0xc9] sm:$0xff] %vm284_vm1, %v1096_v15  ;;  %1157 = vst.msk [vmem:[#allocation3 + $0xe1] sm:$0xff] %vm284_vm1, %v1102_v16  ;;  %v1101_v32 = vadd.f32 %v1099_v17, %v1097_v58  ;;  %v8420_v35 = vpack.c.bf16 %v3221_v25, %v3220_v24  ;;  %v1112_v36 = vmul.f32 0.6666667, %v8391_v37  ;;  %v971_v1 = vpop.f32.mrb[7].mxu0  ;;  %v1831_v39 = vld [vmem:[#allocation2 + $0xf9] sm:$0xff] }
 0x104   : > { %1150 = vst.msk [vmem:[#allocation3 + $0x91] sm:$0xff] %vm284_vm1, %v1083_v3  ;;  %1170 = vst.msk [vmem:[#allocation3 + $0x181] sm:$0xff] %vm284_vm1, %v1046_v31  ;;  %v8429_v40 = vld [vmem:[%s9610_s4 + $0xc] sm:$0x3]  ;;  %6852 = vmatmul.mubr.msk.bf16.vlgmr.msra.gmra.mrb[8].mxu0 %vm284_vm1, %v8416_v23  ;;  %v1116_v41 = vmul.f32 0.8666667, %v8391_v37  ;;  %v8450_v58 = vpack.c.bf16 %v1831_v39, %v1830_v30 }
 0x105   : > { %1154 = vst.msk [vmem:[#allocation3 + $0xc1] sm:$0xff] %vm284_vm1, %v1095_v21  ;;  %1159 = vst.msk [vmem:[#allocation3 + $0xf9] sm:$0xff] %vm284_vm1, %v1108_v26  ;;  %v1105_v42 = vmul.f32 0.2, %v896_v62  ;;  %v1111_v43 = vmul.f32 0.6666667, %v896_v62  ;;  %6884 = vmatpush3.bf16.msra.mxu0 %v8376_v10  ;;  %6855 = vmatprep.mubr.msk.bf16.mxu0 %vm284_vm1, %v8420_v35  ;;  %v1114_v44 = vadd.f32 %v1112_v36, %v1110_v12 }
 0x106   : > { %1156 = vst.msk [vmem:[#allocation3 + $0xd9] sm:$0xff] %vm284_vm1, %v1101_v32  ;;  %v1122_v45 = vmul.f32 0.4, %v8391_v37  ;;  %v1115_v46 = vmul.f32 0.8666667, %v896_v62  ;;  %v3222_v50 = vld [vmem:[#allocation3 + $0x60] sm:$0xff]  ;;  %7710 = vmatprep.subr.msk.bf16.mxu0 %vm1277_vm3, %v8429_v40  ;;  %v8448_v37 = vpack.c.bf16 %v1829_v28, %v1828_v27 }
 0x107   : > { %6652 = vmatmul.mubr.msk.bf16.gmra.mrb[12].mxu1 %vm284_vm1, %v8370_v2  ;;  %v1107_v47 = vadd.f32 %v1105_v42, %v1103_v18  ;;  %v1113_v48 = vadd.f32 %v1111_v43, %v1109_v22  ;;  %v1121_v49 = vmul.f32 0.4, %v896_v62  ;;  %v1118_v51 = vmul.f32 0.13333334, %v6537_v29  ;;  %1161 = vst.msk [vmem:[#allocation3 + $0x111] sm:$0xff] %vm284_vm1, %v1114_v44  ;;  %v3223_v10 = vld [vmem:[#allocation3 + $0x68] sm:$0xff] }
 0x108   : > { %6655 = vmatprep.mubr.msk.bf16.mxu1 %vm284_vm1, %v8372_v4  ;;  %v3224_v54 = vld [vmem:[#allocation3 + $0x78] sm:$0xff]  ;;  %v3225_v56 = vld [vmem:[#allocation3 + $0x80] sm:$0xff]  ;;  %v1124_v57 = vmul.f32 0.6, %v6537_v29  ;;  %v1128_v61 = vmul.f32 0.93333334, %v6537_v29  ;;  %v8454_v7 = vpack.c.bf16 %v3223_v10, %v3222_v50 }
 0x109   : > { %1158 = vst.msk [vmem:[#allocation3 + $0xf1] sm:$0xff] %vm284_vm1, %v1107_v47  ;;  %1160 = vst.msk [vmem:[#allocation3 + $0x109] sm:$0xff] %vm284_vm1, %v1113_v48  ;;  %v1120_v60 = vadd.f32 %v1118_v51, %v1116_v41  ;;  %v1117_v62 = vmul.f32 0.13333334, %v971_v1  ;;  %v1123_v63 = vmul.f32 0.6, %v971_v1  ;;  %v8458_v13 = vpack.c.bf16 %v3225_v56, %v3224_v54 }
 0x10a   : > { %v1126_v0 = vadd.f32 %v1124_v57, %v1122_v45  ;;  %v1134_v3 = vmul.f32 0.46666667, %v6537_v29  ;;  %v1127_v5 = vmul.f32 0.93333334, %v971_v1  ;;  %v1133_v6 = vmul.f32 0.46666667, %v971_v1 }
 0x10b   : > { %1163 = vst.msk [vmem:[#allocation3 + $0x129] sm:$0xff] %vm284_vm1, %v1120_v60  ;;  %v1119_v8 = vadd.f32 %v1117_v62, %v1115_v46  ;;  %v1125_v11 = vadd.f32 %v1123_v63, %v1121_v49  ;;  %v1130_v12 = vmul.f32 0.06666667, %v8406_v9  ;;  %v1136_v15 = vmul.f32 0.53333336, %v8406_v9  ;;  %v1832_v9 = vld [vmem:[#allocation2 + $0x109] sm:$0xff] }
 0x10c   : > { %1165 = vst.msk [vmem:[#allocation3 + $0x141] sm:$0xff] %vm284_vm1, %v1126_v0  ;;  %v1129_v16 = vmul.f32 0.06666667, %v1046_v31  ;;  %v1135_v17 = vmul.f32 0.53333336, %v1046_v31  ;;  %6856 = vmatmul.mubr.msk.bf16.gmra.mrb[12].mxu0 %vm284_vm1, %v8454_v7  ;;  %v1833_v22 = vld [vmem:[#allocation2 + $0x111] sm:$0xff] }
 0x10d   : > { %1162 = vst.msk [vmem:[#allocation3 + $0x121] sm:$0xff] %vm284_vm1, %v1119_v8  ;;  %1164 = vst.msk [vmem:[#allocation3 + $0x139] sm:$0xff] %vm284_vm1, %v1125_v11  ;;  %v1132_v18 = vadd.f32 %v1130_v12, %v1128_v61  ;;  %6859 = vmatprep.mubr.msk.bf16.mxu0 %vm284_vm1, %v8458_v13  ;;  %v1138_v19 = vadd.f32 %v1136_v15, %v1134_v3  ;;  %v3226_v24 = vld [vmem:[#allocation3 + $0x90] sm:$0xff]  ;;  %v3227_v25 = vld [vmem:[#allocation3 + $0x98] sm:$0xff]  ;;  %v8478_v31 = vpack.c.bf16 %v1833_v22, %v1832_v9 }
 0x10e   : > { %v1131_v20 = vadd.f32 %v1129_v16, %v1127_v5  ;;  %v1137_v21 = vadd.f32 %v1135_v17, %v1133_v6  ;;  %v1834_v26 = vld [vmem:[#allocation2 + $0x121] sm:$0xff]  ;;  %v3228_v27 = vld [vmem:[#allocation3 + $0xa8] sm:$0xff]  ;;  %v1835_v29 = vld [vmem:[#allocation2 + $0x129] sm:$0xff]  ;;  %v8476_v30 = vpack.c.bf16 %v3227_v25, %v3226_v24  ;;  %v2317_v12 = vsel %vm1277_vm3, %v8361_v55, 0 }
 0x10f   : > { %6656 = vmatmul.mubr.msk.bf16.gmra.mrb[16].mxu1 %vm284_vm1, %v8386_v33  ;;  %1167 = vst.msk [vmem:[#allocation3 + $0x159] sm:$0xff] %vm284_vm1, %v1132_v18  ;;  %1169 = vst.msk [vmem:[#allocation3 + $0x171] sm:$0xff] %vm284_vm1, %v1138_v19  ;;  %v3229_v28 = vld [vmem:[#allocation3 + $0xb0] sm:$0xff]  ;;  %v8482_v36 = vpack.c.bf16 %v1835_v29, %v1834_v26  ;;  %v3230_v41 = vld [vmem:[#allocation3 + $0xc0] sm:$0xff]  ;;  %v3656_v26 = vsel %vm1277_vm3, %v8429_v40, 0 }
 0x110   : > { %6659 = vmatprep.mubr.msk.bf16.mxu1 %vm284_vm1, %v8388_v34  ;;  %1166 = vst.msk [vmem:[#allocation3 + $0x151] sm:$0xff] %vm284_vm1, %v1131_v20  ;;  %1168 = vst.msk [vmem:[#allocation3 + $0x169] sm:$0xff] %vm284_vm1, %v1137_v21  ;;  %v8480_v32 = vpack.c.bf16 %v3229_v28, %v3228_v27  ;;  %v1836_v1 = vld [vmem:[#allocation2 + $0x139] sm:$0xff]  ;;  %v1837_v39 = vld [vmem:[#allocation2 + $0x141] sm:$0xff] }
 0x111   : > { %v3231_v42 = vld [vmem:[#allocation3 + $0xc8] sm:$0xff]  ;;  %v3232_v44 = vld [vmem:[#allocation3 + $0xd8] sm:$0xff]  ;;  %v3233_v45 = vld [vmem:[#allocation3 + $0xe0] sm:$0xff]  ;;  %v8494_v48 = vpack.c.bf16 %v1837_v39, %v1836_v1 }
 0x112   : > { %v1838_v43 = vld [vmem:[#allocation2 + $0x151] sm:$0xff]  ;;  %v1839_v46 = vld [vmem:[#allocation2 + $0x159] sm:$0xff]  ;;  %v8492_v47 = vpack.c.bf16 %v3231_v42, %v3230_v41  ;;  %v8496_v49 = vpack.c.bf16 %v3233_v45, %v3232_v44  ;;  %v1840_v51 = vld [vmem:[#allocation2 + $0x169] sm:$0xff] }
 0x113   : > { %v8498_v50 = vpack.c.bf16 %v1839_v46, %v1838_v43  ;;  %v3234_v10 = vld [vmem:[#allocation3 + $0xf0] sm:$0xff]  ;;  %v3235_v54 = vld [vmem:[#allocation3 + $0xf8] sm:$0xff]  ;;  %v1841_v56 = vld [vmem:[#allocation2 + $0x171] sm:$0xff] }
 0x114   : > { %6860 = vmatmul.mubr.msk.bf16.gmra.mrb[16].mxu0 %vm284_vm1, %v8476_v30  ;;  %v3236_v57 = vld [vmem:[#allocation3 + $0x108] sm:$0xff]  ;;  %v3237_v60 = vld [vmem:[#allocation3 + $0x110] sm:$0xff]  ;;  %v8508_v61 = vpack.c.bf16 %v3235_v54, %v3234_v10  ;;  %v8510_v62 = vpack.c.bf16 %v1841_v56, %v1840_v51  ;;  %v3238_v0 = vld [vmem:[#allocation3 + $0x120] sm:$0xff] }
 0x115   : > { %6863 = vmatprep.mubr.msk.bf16.mxu0 %vm284_vm1, %v8480_v32  ;;  %v8512_v63 = vpack.c.bf16 %v3237_v60, %v3236_v57  ;;  %v3239_v3 = vld [vmem:[#allocation3 + $0x128] sm:$0xff]  ;;  %v3240_v5 = vld [vmem:[#allocation3 + $0x138] sm:$0xff]  ;;  %v3241_v6 = vld [vmem:[#allocation3 + $0x140] sm:$0xff] }
 0x116   : > { %v8522_v8 = vpack.c.bf16 %v3239_v3, %v3238_v0  ;;  %v8524_v11 = vpack.c.bf16 %v3241_v6, %v3240_v5  ;;  %v5899_v15 = vld [vmem:[%s9609_s3 + $0x4] sm:$0x3]  ;;  %v3214_v20 = vld [vmem:[#allocation3] sm:$0xff]  ;;  %v3215_v21 = vld [vmem:[#allocation3 + $0x8] sm:$0xff] }
 0x117   : > { %6660 = vmatmul.mubr.msk.bf16.gmra.mrb[20].mxu1 %vm284_vm1, %v8410_v14  ;;  %v3243_v16 = vld [vmem:[#allocation3 + $0x158] sm:$0xff]  ;;  %v3244_v17 = vld [vmem:[#allocation3 + $0x168] sm:$0xff]  ;;  %v3245_v18 = vld [vmem:[#allocation3 + $0x170] sm:$0xff]  ;;  %v3250_v24 = vpack.c.bf16 %v3215_v21, %v3214_v20  ;;  %v2617_v29 = vsel %vm1277_vm3, %v5899_v15, 0 }
 0x118   : > { %6663 = vmatprep.mubr.msk.bf16.mxu1 %vm284_vm1, %v8423_v38  ;;  %v8542_v19 = vpack.c.bf16 %v3245_v18, %v3244_v17  ;;  %v3246_v9 = vld [vmem:[#allocation3 + $0x180] sm:$0xff]  ;;  %v3247_v22 = vld [vmem:[#allocation3 + $0x188] sm:$0xff]  ;;  %v6000_v27 = vld [vmem:[%s9610_s4 + $0x2] sm:$0x3] }
 0x119   : > { %v8552_v25 = vpack.c.bf16 %v3247_v22, %v3246_v9  ;;  %v1843_v40 = vld [vmem:[#allocation2 + $0x189] sm:$0xff]  ;;  %v2519_v39 = vld [vmem:[#allocation2 + $0x52] sm:$0xff]  ;;  %v2525_v54 = vld [vmem:[#allocation2 + $0x9a] sm:$0xff] }
 0x11a   : > { %v5916_v1 = vld [vmem:[%s9609_s3 + $0xa] sm:$0x3]  ;;  %v2520_v41 = vld [vmem:[#allocation2 + $0x62] sm:$0xff]  ;;  %v3249_v46 = vld [vmem:[#allocation3 + $0x1a0] sm:$0xff] }
 0x11b   : > { %v2521_v42 = vld [vmem:[#allocation2 + $0x6a] sm:$0xff]  ;;  %v2524_v10 = vld [vmem:[#allocation2 + $0x92] sm:$0xff]  ;;  %v2528_v6 = vld [vmem:[#allocation2 + $0xc2] sm:$0xff] }
 0x11c   : > { %6864 = vmatmul.mubr.msk.bf16.gmra.mrb[20].mxu0 %vm284_vm1, %v8492_v47  ;;  %v8702_v44 = vpack.c.bf16 %v2521_v42, %v2520_v41  ;;  %v3248_v45 = vld [vmem:[#allocation3 + $0x198] sm:$0xff]  ;;  %v8714_v60 = vpack.c.bf16 %v2525_v54, %v2524_v10  ;;  %v2527_v3 = vld [vmem:[#allocation2 + $0xb2] sm:$0xff]  ;;  %v2530_v20 = vld [vmem:[#allocation2 + $0xda] sm:$0xff] }
 0x11d   : > { %6867 = vmatprep.mubr.msk.bf16.mxu0 %vm284_vm1, %v8496_v49  ;;  %v3267_v51 = vpack.c.bf16 %v3249_v46, %v3248_v45  ;;  %v2526_v0 = vld [vmem:[#allocation2 + $0xaa] sm:$0xff]  ;;  %v3857_v18 = vld [vmem:[#allocation3 + $0x49] sm:$0xff]  ;;  %v2531_v21 = vld [vmem:[#allocation2 + $0xe2] sm:$0xff] }
 0x11e   : > { %v3856_v5 = vld [vmem:[#allocation3 + $0x39] sm:$0xff]  ;;  %v3860_v9 = vld [vmem:[#allocation3 + $0x69] sm:$0xff]  ;;  %v3871_v10 = vld [vmem:[#allocation3 + $0xf1] sm:$0xff] }
 0x11f   : > { %6664 = vmatmul.mubr.msk.bf16.gmra.mrb[24].mxu1 %vm284_vm1, %v8448_v37  ;;  %v8735_v17 = vld [vmem:[%s9610_s4 + $0xe] sm:$0x3]  ;;  %v2532_v22 = vld [vmem:[#allocation2 + $0xf2] sm:$0xff]  ;;  %v2541_v41 = vld [vmem:[#allocation2 + $0x15a] sm:$0xff] }
 0x120   : > { %6667 = vmatprep.mubr.msk.bf16.mxu1 %vm284_vm1, %v8450_v58  ;;  %v3872_v54 = vld [vmem:[#allocation3 + $0xf9] sm:$0xff] }
 0x124   : > { %6868 = vmatmul.mubr.msk.bf16.gmra.mrb[24].mxu0 %vm284_vm1, %v8508_v61 }
 0x125   : > { %6871 = vmatprep.mubr.msk.bf16.mxu0 %vm284_vm1, %v8512_v63 }
 0x127   : > { %6668 = vmatmul.mubr.msk.bf16.gmra.mrb[28].mxu1 %vm284_vm1, %v8478_v31 }
 0x128   : > { %6671 = vmatprep.mubr.msk.bf16.mxu1 %vm284_vm1, %v8482_v36 }
 0x12c   : > { %6872 = vmatmul.mubr.msk.bf16.gmra.mrb[28].mxu0 %vm284_vm1, %v8522_v8 }
 0x12d   : > { %6875 = vmatprep.mubr.msk.bf16.mxu0 %vm284_vm1, %v8524_v11 }
 0x12f   : > { %6672 = vmatmul.mubr.msk.bf16.gmra.mrb[32].mxu1 %vm284_vm1, %v8494_v48 }
 0x130   : > { %6675 = vmatprep.mubr.msk.bf16.mxu1 %vm284_vm1, %v8498_v50 }
 0x137   : > { %6676 = vmatmul.mubr.msk.bf16.gmra.mrb[36].mxu1 %vm284_vm1, %v8510_v62 }
 0x138   : > { %6681 = vmatprep.mubr.msk.bf16.mxu1 %vm284_vm1, %v8353_v52  ;;  %v3242_v52 = vld [vmem:[#allocation3 + $0x150] sm:$0xff] }
 0x139   : > { %v8540_v55 = vpack.c.bf16 %v3243_v16, %v3242_v52 }
 0x13b   : > { %6876 = vmatmul.mubr.msk.bf16.gmra.mrb[32].mxu0 %vm284_vm1, %v8540_v55 }
 0x13c   : > { %6879 = vmatprep.mubr.msk.bf16.mxu0 %vm284_vm1, %v8542_v19 }
 0x13f   : > { %6682 = vmatmul.mubr.msk.bf16.vlgmr.msra.gmra.mrb[8].mxu1 %vm284_vm1, %v8355_v53 }
 0x140   : > { %6685 = vmatprep.mubr.msk.bf16.mxu1 %vm284_vm1, %v8370_v2  ;;  %6714 = vmatpush3.bf16.msra.mxu1 %v2317_v12 }
 0x141   : > { %7705 = vmatprep.subr.msk.bf16.mxu1 %vm1277_vm3, %v5899_v15  ;;  %v8726_v15 = vpack.c.bf16 %v2527_v3, %v2526_v0  ;;  %v3874_v0 = vld [vmem:[#allocation3 + $0x111] sm:$0xff]  ;;  %v3875_v3 = vld [vmem:[#allocation3 + $0x121] sm:$0xff] }
 0x143   : > { %6880 = vmatmul.mubr.msk.bf16.gmra.mrb[36].mxu0 %vm284_vm1, %v8552_v25 }
 0x144   : > { %6885 = vmatprep.mubr.msk.bf16.mxu0 %vm284_vm1, %v3250_v24  ;;  %v2533_v24 = vld [vmem:[#allocation2 + $0xfa] sm:$0xff] }
 0x147   : > { %6686 = vmatmul.mubr.msk.bf16.gmra.mrb[12].mxu1 %vm284_vm1, %v8372_v4 }
 0x148   : > { %6689 = vmatprep.mubr.msk.bf16.mxu1 %vm284_vm1, %v8386_v33 }
 0x14b   : > { %6886 = vmatmul.mubr.msk.bf16.vlgmr.msra.gmra.mrb[8].mxu0 %vm284_vm1, %v8398_v59  ;;  %v1842_v59 = vld [vmem:[#allocation2 + $0x181] sm:$0xff] }
 0x14c   : > { %6918 = vmatpush3.bf16.msra.mxu0 %v3656_v26  ;;  %6889 = vmatprep.mubr.msk.bf16.mxu0 %vm284_vm1, %v8416_v23  ;;  %v1862_v28 = vpack.c.bf16 %v1843_v40, %v1842_v59  ;;  %v8749_v26 = vpack.c.bf16 %v2531_v21, %v2530_v20  ;;  %v8753_v59 = vpack.c.bf16 %v2533_v24, %v2532_v22  ;;  %v3861_v40 = vld [vmem:[#allocation3 + $0x79] sm:$0xff]  ;;  %v4358_v24 = vsel %vm1277_vm3, %v8735_v17, 0 }
 0x14d   : > { %7711 = vmatprep.subr.msk.bf16.mxu0 %vm1277_vm3, %v6000_v27 }
 0x14f   : > { %6690 = vmatmul.mubr.msk.bf16.gmra.mrb[16].mxu1 %vm284_vm1, %v8388_v34 }
 0x150   : > { %6693 = vmatprep.mubr.msk.bf16.mxu1 %vm284_vm1, %v8410_v14 }
 0x153   : > { %6890 = vmatmul.mubr.msk.bf16.gmra.mrb[12].mxu0 %vm284_vm1, %v8420_v35 }
 0x154   : > { %6893 = vmatprep.mubr.msk.bf16.mxu0 %vm284_vm1, %v8454_v7 }
 0x157   : > { %6694 = vmatmul.mubr.msk.bf16.gmra.mrb[20].mxu1 %vm284_vm1, %v8423_v38 }
 0x158   : > { %6697 = vmatprep.mubr.msk.bf16.mxu1 %vm284_vm1, %v8448_v37 }
 0x15b   : > { %6894 = vmatmul.mubr.msk.bf16.gmra.mrb[16].mxu0 %vm284_vm1, %v8458_v13 }
 0x15c   : > { %6897 = vmatprep.mubr.msk.bf16.mxu0 %vm284_vm1, %v8476_v30 }
 0x15f   : > { %6698 = vmatmul.mubr.msk.bf16.gmra.mrb[24].mxu1 %vm284_vm1, %v8450_v58 }
 0x160   : > { %6701 = vmatprep.mubr.msk.bf16.mxu1 %vm284_vm1, %v8478_v31 }
 0x163   : > { %6898 = vmatmul.mubr.msk.bf16.gmra.mrb[20].mxu0 %vm284_vm1, %v8480_v32 }
 0x164   : > { %6901 = vmatprep.mubr.msk.bf16.mxu0 %vm284_vm1, %v8492_v47 }
 0x167   : > { %6702 = vmatmul.mubr.msk.bf16.gmra.mrb[28].mxu1 %vm284_vm1, %v8482_v36 }
 0x168   : > { %6705 = vmatprep.mubr.msk.bf16.mxu1 %vm284_vm1, %v8494_v48 }
 0x16b   : > { %6902 = vmatmul.mubr.msk.bf16.gmra.mrb[24].mxu0 %vm284_vm1, %v8496_v49 }
 0x16c   : > { %6905 = vmatprep.mubr.msk.bf16.mxu0 %vm284_vm1, %v8508_v61 }
 0x16f   : > { %6706 = vmatmul.mubr.msk.bf16.gmra.mrb[32].mxu1 %vm284_vm1, %v8498_v50 }
 0x170   : > { %6709 = vmatprep.mubr.msk.bf16.mxu1 %vm284_vm1, %v8510_v62 }
 0x173   : > { %6906 = vmatmul.mubr.msk.bf16.gmra.mrb[28].mxu0 %vm284_vm1, %v8512_v63 }
 0x174   : > { %6909 = vmatprep.mubr.msk.bf16.mxu0 %vm284_vm1, %v8522_v8 }
 0x177   : > { %6710 = vmatmul.mubr.msk.bf16.gmra.mrb[36].mxu1 %vm284_vm1, %v1862_v28 }
 0x178   : > { %6715 = vmatprep.mubr.msk.bf16.mxu1 %vm284_vm1, %v8355_v53  ;;  %v3956_v53 = vsel %vm1277_vm3, %v6000_v27, 0 }
 0x17b   : > { %6910 = vmatmul.mubr.msk.bf16.gmra.mrb[32].mxu0 %vm284_vm1, %v8524_v11 }
 0x17c   : > { %6913 = vmatprep.mubr.msk.bf16.mxu0 %vm284_vm1, %v8540_v55 }
 0x17f   : > { %6716 = vmatmul.mubr.msk.bf16.vlgmr.msra.gmra.mrb[8].mxu1 %vm284_vm1, %v8370_v2  ;;  %v8639_v2 = vld [vmem:[%s9610_s4 + $0x8] sm:$0x3] }
 0x180   : > { %6719 = vmatprep.mubr.msk.bf16.mxu1 %vm284_vm1, %v8372_v4  ;;  %6748 = vmatpush3.bf16.msra.mxu1 %v2617_v29  ;;  %v1844_v4 = vld [vmem:[#allocation2 + $0x199] sm:$0xff]  ;;  %v4157_v12 = vsel %vm1277_vm3, %v8639_v2, 0  ;;  %v3863_v29 = vld [vmem:[#allocation3 + $0x91] sm:$0xff] }
 0x181   : > { %7706 = vmatprep.subr.msk.bf16.mxu1 %vm1277_vm3, %v5916_v1 }
 0x183   : > { %6914 = vmatmul.mubr.msk.bf16.gmra.mrb[36].mxu0 %vm284_vm1, %v8542_v19 }
 0x184   : > { %6919 = vmatprep.mubr.msk.bf16.mxu0 %vm284_vm1, %v8416_v23 }
 0x187   : > { %6720 = vmatmul.mubr.msk.bf16.gmra.mrb[12].mxu1 %vm284_vm1, %v8386_v33  ;;  %v1845_v33 = vld [vmem:[#allocation2 + $0x1a1] sm:$0xff] }
 0x188   : > { %6723 = vmatprep.mubr.msk.bf16.mxu1 %vm284_vm1, %v8388_v34  ;;  %v2512_v34 = vld [vmem:[#allocation2 + $0x2] sm:$0xff]  ;;  %v1863_v23 = vpack.c.bf16 %v1845_v33, %v1844_v4  ;;  %v2537_v33 = vld [vmem:[#allocation2 + $0x12a] sm:$0xff] }
 0x189   : > { %v2536_v4 = vld [vmem:[#allocation2 + $0x122] sm:$0xff] }
 0x18b   : > { %6920 = vmatmul.mubr.msk.bf16.vlgmr.msra.gmra.mrb[8].mxu0 %vm284_vm1, %v8420_v35 }
 0x18c   : > { %6952 = vmatpush3.bf16.msra.mxu0 %v3956_v53  ;;  %6923 = vmatprep.mubr.msk.bf16.mxu0 %vm284_vm1, %v8454_v7  ;;  %v2517_v7 = vld [vmem:[#allocation2 + $0x3a] sm:$0xff]  ;;  %v2535_v53 = vld [vmem:[#allocation2 + $0x112] sm:$0xff] }
 0x18d   : > { %7712 = vmatprep.subr.msk.bf16.mxu0 %vm1277_vm3, %v8639_v2  ;;  %v3864_v2 = vld [vmem:[#allocation3 + $0x99] sm:$0xff] }
 0x18f   : > { %6724 = vmatmul.mubr.msk.bf16.gmra.mrb[16].mxu1 %vm284_vm1, %v8410_v14  ;;  %v2513_v14 = vld [vmem:[#allocation2 + $0xa] sm:$0xff] }
 0x190   : > { %6727 = vmatprep.mubr.msk.bf16.mxu1 %vm284_vm1, %v8423_v38  ;;  %v2548_v35 = vpack.c.bf16 %v2513_v14, %v2512_v34  ;;  %v2514_v38 = vld [vmem:[#allocation2 + $0x1a] sm:$0xff] }
 0x193   : > { %6924 = vmatmul.mubr.msk.bf16.gmra.mrb[12].mxu0 %vm284_vm1, %v8458_v13 }
 0x194   : > { %6927 = vmatprep.mubr.msk.bf16.mxu0 %vm284_vm1, %v8476_v30 }
 0x197   : > { %6728 = vmatmul.mubr.msk.bf16.gmra.mrb[20].mxu1 %vm284_vm1, %v8448_v37  ;;  %v2515_v37 = vld [vmem:[#allocation2 + $0x22] sm:$0xff] }
 0x198   : > { %6731 = vmatprep.mubr.msk.bf16.mxu1 %vm284_vm1, %v8450_v58  ;;  %v2516_v58 = vld [vmem:[#allocation2 + $0x32] sm:$0xff]  ;;  %v8680_v13 = vpack.c.bf16 %v2515_v37, %v2514_v38  ;;  %v3866_v37 = vld [vmem:[#allocation3 + $0xb1] sm:$0xff] }
 0x199   : > { %v8682_v30 = vpack.c.bf16 %v2517_v7, %v2516_v58  ;;  %v3865_v38 = vld [vmem:[#allocation3 + $0xa9] sm:$0xff]  ;;  %v3867_v58 = vld [vmem:[#allocation3 + $0xc1] sm:$0xff] }
 0x19a   : > { %v2538_v7 = vld [vmem:[#allocation2 + $0x13a] sm:$0xff]  ;;  %v8779_v42 = vpack.c.bf16 %v3866_v37, %v3865_v38  ;;  %v4560_v37 = vld [vmem:[#allocation3 + $0x52] sm:$0xff] }
 0x19b   : > { %6928 = vmatmul.mubr.msk.bf16.gmra.mrb[16].mxu0 %vm284_vm1, %v8480_v32  ;;  %v8692_v32 = vld [vmem:[%s9609_s3 + $0x10] sm:$0x3]  ;;  %v4559_v38 = vld [vmem:[#allocation3 + $0x4a] sm:$0xff] }
 0x19c   : > { %6931 = vmatprep.mubr.msk.bf16.mxu0 %vm284_vm1, %v8492_v47  ;;  %v3851_v47 = vld [vmem:[#allocation3 + $0x1] sm:$0xff] }
 0x19f   : > { %6732 = vmatmul.mubr.msk.bf16.gmra.mrb[24].mxu1 %vm284_vm1, %v8478_v31  ;;  %v2818_v31 = vsel %vm1277_vm3, %v5916_v1, 0  ;;  %v2534_v1 = vld [vmem:[#allocation2 + $0x10a] sm:$0xff] }
 0x1a0   : > { %6735 = vmatprep.mubr.msk.bf16.mxu1 %vm284_vm1, %v8482_v36  ;;  %v2518_v36 = vld [vmem:[#allocation2 + $0x4a] sm:$0xff]  ;;  %v8765_v14 = vpack.c.bf16 %v2535_v53, %v2534_v1 }
 0x1a1   : > { %v8700_v43 = vpack.c.bf16 %v2519_v39, %v2518_v36  ;;  %v3868_v36 = vld [vmem:[#allocation3 + $0xc9] sm:$0xff]  ;;  %v4555_v53 = vld [vmem:[#allocation3 + $0x1a] sm:$0xff] }
 0x1a2   : > { %v2540_v39 = vld [vmem:[#allocation2 + $0x152] sm:$0xff]  ;;  %v8783_v46 = vpack.c.bf16 %v3868_v36, %v3867_v58 }
 0x1a3   : > { %6932 = vmatmul.mubr.msk.bf16.gmra.mrb[20].mxu0 %vm284_vm1, %v8496_v49  ;;  %v2522_v49 = vld [vmem:[#allocation2 + $0x7a] sm:$0xff]  ;;  %v4561_v58 = vld [vmem:[#allocation3 + $0x62] sm:$0xff] }
 0x1a4   : > { %6935 = vmatprep.mubr.msk.bf16.mxu0 %vm284_vm1, %v8508_v61  ;;  %v3853_v61 = vld [vmem:[#allocation3 + $0x19] sm:$0xff] }
 0x1a7   : > { %6736 = vmatmul.mubr.msk.bf16.gmra.mrb[28].mxu1 %vm284_vm1, %v8494_v48  ;;  %v3852_v48 = vld [vmem:[#allocation3 + $0x9] sm:$0xff] }
 0x1a8   : > { %6739 = vmatprep.mubr.msk.bf16.mxu1 %vm284_vm1, %v8498_v50  ;;  %v2523_v50 = vld [vmem:[#allocation2 + $0x82] sm:$0xff]  ;;  %v3887_v56 = vpack.c.bf16 %v3852_v48, %v3851_v47  ;;  %v8785_v47 = vpack.c.bf16 %v2541_v41, %v2540_v39  ;;  %v4563_v39 = vld [vmem:[#allocation3 + $0x7a] sm:$0xff]  ;;  %v4564_v41 = vld [vmem:[#allocation3 + $0x82] sm:$0xff] }
 0x1a9   : > { %v8712_v57 = vpack.c.bf16 %v2523_v50, %v2522_v49  ;;  %v3869_v48 = vld [vmem:[#allocation3 + $0xd9] sm:$0xff]  ;;  %v3870_v49 = vld [vmem:[#allocation3 + $0xe1] sm:$0xff] }
 0x1aa   : > { %v2542_v50 = vld [vmem:[#allocation2 + $0x16a] sm:$0xff] }
 0x1ab   : > { %6936 = vmatmul.mubr.msk.bf16.gmra.mrb[24].mxu0 %vm284_vm1, %v8512_v63  ;;  %v3855_v63 = vld [vmem:[#allocation3 + $0x31] sm:$0xff] }
 0x1ac   : > { %6939 = vmatprep.mubr.msk.bf16.mxu0 %vm284_vm1, %v8522_v8  ;;  %v2529_v8 = vld [vmem:[#allocation2 + $0xca] sm:$0xff]  ;;  %v8728_v52 = vpack.c.bf16 %v3856_v5, %v3855_v63  ;;  %v3873_v63 = vld [vmem:[#allocation3 + $0x109] sm:$0xff] }
 0x1ad   : > { %v8730_v16 = vpack.c.bf16 %v2529_v8, %v2528_v6  ;;  %v3876_v5 = vld [vmem:[#allocation3 + $0x129] sm:$0xff]  ;;  %v8809_v6 = vpack.c.bf16 %v3874_v0, %v3873_v63  ;;  %v4574_v63 = vld [vmem:[#allocation3 + $0xfa] sm:$0xff] }
 0x1ae   : > { %v8811_v8 = vpack.c.bf16 %v3876_v5, %v3875_v3  ;;  %v4575_v5 = vld [vmem:[#allocation3 + $0x10a] sm:$0xff] }
 0x1af   : > { %6740 = vmatmul.mubr.msk.bf16.gmra.mrb[32].mxu1 %vm284_vm1, %v8510_v62  ;;  %v3854_v62 = vld [vmem:[#allocation3 + $0x21] sm:$0xff] }
 0x1b0   : > { %6743 = vmatprep.mubr.msk.bf16.mxu1 %vm284_vm1, %v1862_v28  ;;  %v3862_v28 = vld [vmem:[#allocation3 + $0x81] sm:$0xff] }
 0x1b1   : > { %v8763_v34 = vpack.c.bf16 %v3862_v28, %v3861_v40  ;;  %v6051_v40 = vld [vmem:[%s9610_s4 + $0x4] sm:$0x3] }
 0x1b3   : > { %6940 = vmatmul.mubr.msk.bf16.gmra.mrb[28].mxu0 %vm284_vm1, %v8524_v11  ;;  %v8722_v11 = vpack.c.bf16 %v3854_v62, %v3853_v61  ;;  %v8799_v62 = vpack.c.bf16 %v3872_v54, %v3871_v10 }
 0x1b4   : > { %6943 = vmatprep.mubr.msk.bf16.mxu0 %vm284_vm1, %v8540_v55  ;;  %v3858_v55 = vld [vmem:[#allocation3 + $0x51] sm:$0xff] }
 0x1b7   : > { %6744 = vmatmul.mubr.msk.bf16.gmra.mrb[36].mxu1 %vm284_vm1, %v1863_v23  ;;  %v8767_v23 = vpack.c.bf16 %v3864_v2, %v3863_v29  ;;  %v3884_v29 = vld [vmem:[#allocation3 + $0x189] sm:$0xff] }
 0x1b8   : > { %6749 = vmatprep.mubr.msk.bf16.mxu1 %vm284_vm1, %v2548_v35  ;;  %v8769_v35 = vpack.c.bf16 %v2537_v33, %v2536_v4  ;;  %v4556_v2 = vld [vmem:[#allocation3 + $0x22] sm:$0xff]  ;;  %v4557_v4 = vld [vmem:[#allocation3 + $0x32] sm:$0xff]  ;;  %v4558_v33 = vld [vmem:[#allocation3 + $0x3a] sm:$0xff] }
 0x1bb   : > { %6944 = vmatmul.mubr.msk.bf16.gmra.mrb[32].mxu0 %vm284_vm1, %v8542_v19  ;;  %v3859_v19 = vld [vmem:[#allocation3 + $0x61] sm:$0xff] }
 0x1bc   : > { %6947 = vmatprep.mubr.msk.bf16.mxu0 %vm284_vm1, %v8552_v25  ;;  %v8747_v25 = vpack.c.bf16 %v3858_v55, %v3857_v18  ;;  %v8751_v27 = vpack.c.bf16 %v3860_v9, %v3859_v19  ;;  %v3877_v18 = vld [vmem:[#allocation3 + $0x139] sm:$0xff]  ;;  %v3879_v55 = vld [vmem:[#allocation3 + $0x151] sm:$0xff] }
 0x1bd   : > { %v3880_v19 = vld [vmem:[#allocation3 + $0x159] sm:$0xff]  ;;  %v3882_v9 = vld [vmem:[#allocation3 + $0x171] sm:$0xff] }
 0x1be   : > { %v8825_v21 = vpack.c.bf16 %v3880_v19, %v3879_v55  ;;  %v4579_v55 = vld [vmem:[#allocation3 + $0x13a] sm:$0xff]  ;;  %v4580_v19 = vld [vmem:[#allocation3 + $0x142] sm:$0xff] }
 0x1bf   : > { %6750 = vmatmul.mubr.msk.bf16.vlgmr.msra.gmra.mrb[8].mxu1 %vm284_vm1, %v8680_v13 }
 0x1c0   : > { %6753 = vmatprep.mubr.msk.bf16.mxu1 %vm284_vm1, %v8682_v30  ;;  %6782 = vmatpush3.bf16.msra.mxu1 %v2818_v31  ;;  %v2539_v31 = vld [vmem:[#allocation2 + $0x142] sm:$0xff] }
 0x1c1   : > { %7707 = vmatprep.subr.msk.bf16.mxu1 %vm1277_vm3, %v8692_v32  ;;  %v8781_v45 = vpack.c.bf16 %v2539_v31, %v2538_v7  ;;  %v4562_v7 = vld [vmem:[#allocation3 + $0x6a] sm:$0xff]  ;;  %v8973_v31 = vpack.c.bf16 %v4560_v37, %v4559_v38 }
 0x1c2   : > { %v8975_v36 = vpack.c.bf16 %v4562_v7, %v4561_v58 }
 0x1c3   : > { %6948 = vmatmul.mubr.msk.bf16.gmra.mrb[36].mxu0 %vm284_vm1, %v3267_v51  ;;  %v2543_v51 = vld [vmem:[#allocation2 + $0x172] sm:$0xff] }
 0x1c4   : > { %6953 = vmatprep.mubr.msk.bf16.mxu0 %vm284_vm1, %v3887_v56  ;;  %v8795_v56 = vpack.c.bf16 %v3870_v49, %v3869_v48  ;;  %v8797_v61 = vpack.c.bf16 %v2543_v51, %v2542_v50  ;;  %v4567_v48 = vld [vmem:[#allocation3 + $0xaa] sm:$0xff]  ;;  %v4568_v49 = vld [vmem:[#allocation3 + $0xb2] sm:$0xff]  ;;  %v4569_v50 = vld [vmem:[#allocation3 + $0xc2] sm:$0xff] }
 0x1c5   : > { %v4570_v51 = vld [vmem:[#allocation3 + $0xca] sm:$0xff]  ;;  %v8989_v10 = vpack.c.bf16 %v4568_v49, %v4567_v48 }
 0x1c6   : > { %v8991_v54 = vpack.c.bf16 %v4570_v51, %v4569_v50 }
 0x1c7   : > { %6754 = vmatmul.mubr.msk.bf16.gmra.mrb[12].mxu1 %vm284_vm1, %v8700_v43 }
 0x1c8   : > { %6757 = vmatprep.mubr.msk.bf16.mxu1 %vm284_vm1, %v8702_v44 }
 0x1cb   : > { %6954 = vmatmul.mubr.msk.bf16.vlgmr.msra.gmra.mrb[8].mxu0 %vm284_vm1, %v8722_v11 }
 0x1cc   : > { %6986 = vmatpush3.bf16.msra.mxu0 %v4157_v12  ;;  %6957 = vmatprep.mubr.msk.bf16.mxu0 %vm284_vm1, %v8728_v52  ;;  %v3019_v12 = vsel %vm1277_vm3, %v8692_v32, 0  ;;  %v3881_v32 = vld [vmem:[#allocation3 + $0x169] sm:$0xff] }
 0x1cd   : > { %7713 = vmatprep.subr.msk.bf16.mxu0 %vm1277_vm3, %v8735_v17  ;;  %v8835_v22 = vpack.c.bf16 %v3882_v9, %v3881_v32  ;;  %v2545_v17 = vld [vmem:[#allocation2 + $0x18a] sm:$0xff]  ;;  %v9013_v32 = vpack.c.bf16 %v4580_v19, %v4579_v55 }
 0x1cf   : > { %6758 = vmatmul.mubr.msk.bf16.gmra.mrb[16].mxu1 %vm284_vm1, %v8712_v57 }
 0x1d0   : > { %6761 = vmatprep.mubr.msk.bf16.mxu1 %vm284_vm1, %v8714_v60 }
 0x1d3   : > { %6958 = vmatmul.mubr.msk.bf16.gmra.mrb[12].mxu0 %vm284_vm1, %v8747_v25 }
 0x1d4   : > { %6961 = vmatprep.mubr.msk.bf16.mxu0 %vm284_vm1, %v8751_v27 }
 0x1d7   : > { %6762 = vmatmul.mubr.msk.bf16.gmra.mrb[20].mxu1 %vm284_vm1, %v8726_v15 }
 0x1d8   : > { %6765 = vmatprep.mubr.msk.bf16.mxu1 %vm284_vm1, %v8730_v16 }
 0x1db   : > { %6962 = vmatmul.mubr.msk.bf16.gmra.mrb[16].mxu0 %vm284_vm1, %v8763_v34 }
 0x1dc   : > { %6965 = vmatprep.mubr.msk.bf16.mxu0 %vm284_vm1, %v8767_v23 }
 0x1df   : > { %6766 = vmatmul.mubr.msk.bf16.gmra.mrb[24].mxu1 %vm284_vm1, %v8749_v26 }
 0x1e0   : > { %6769 = vmatprep.mubr.msk.bf16.mxu1 %vm284_vm1, %v8753_v59 }
 0x1e3   : > { %6966 = vmatmul.mubr.msk.bf16.gmra.mrb[20].mxu0 %vm284_vm1, %v8779_v42 }
 0x1e4   : > { %6969 = vmatprep.mubr.msk.bf16.mxu0 %vm284_vm1, %v8783_v46 }
 0x1e7   : > { %6770 = vmatmul.mubr.msk.bf16.gmra.mrb[28].mxu1 %vm284_vm1, %v8765_v14 }
 0x1e8   : > { %6773 = vmatprep.mubr.msk.bf16.mxu1 %vm284_vm1, %v8769_v35 }
 0x1eb   : > { %6970 = vmatmul.mubr.msk.bf16.gmra.mrb[24].mxu0 %vm284_vm1, %v8795_v56 }
 0x1ec   : > { %6973 = vmatprep.mubr.msk.bf16.mxu0 %vm284_vm1, %v8799_v62 }
 0x1ef   : > { %6774 = vmatmul.mubr.msk.bf16.gmra.mrb[32].mxu1 %vm284_vm1, %v8781_v45 }
 0x1f0   : > { %6777 = vmatprep.mubr.msk.bf16.mxu1 %vm284_vm1, %v8785_v47 }
 0x1f3   : > { %6974 = vmatmul.mubr.msk.bf16.gmra.mrb[28].mxu0 %vm284_vm1, %v8809_v6 }
 0x1f4   : > { %6977 = vmatprep.mubr.msk.bf16.mxu0 %vm284_vm1, %v8811_v8 }
 0x1f7   : > { %6778 = vmatmul.mubr.msk.bf16.gmra.mrb[36].mxu1 %vm284_vm1, %v8797_v61 }
 0x1f8   : > { %6783 = vmatprep.mubr.msk.bf16.mxu1 %vm284_vm1, %v8680_v13  ;;  %v3878_v13 = vld [vmem:[#allocation3 + $0x141] sm:$0xff] }
 0x1f9   : > { %v8823_v20 = vpack.c.bf16 %v3878_v13, %v3877_v18 }
 0x1fb   : > { %6978 = vmatmul.mubr.msk.bf16.gmra.mrb[32].mxu0 %vm284_vm1, %v8823_v20 }
 0x1fc   : > { %6981 = vmatprep.mubr.msk.bf16.mxu0 %vm284_vm1, %v8825_v21 }
 0x1ff   : > { %6784 = vmatmul.mubr.msk.bf16.vlgmr.msra.gmra.mrb[8].mxu1 %vm284_vm1, %v8682_v30 }
 0x200   : > { %6787 = vmatprep.mubr.msk.bf16.mxu1 %vm284_vm1, %v8700_v43  ;;  %6816 = vmatpush3.bf16.msra.mxu1 %v3019_v12  ;;  %v4578_v12 = vld [vmem:[#allocation3 + $0x12a] sm:$0xff] }
 0x203   : > { %6982 = vmatmul.mubr.msk.bf16.gmra.mrb[36].mxu0 %vm284_vm1, %v8835_v22 }
 0x204   : > { %6987 = vmatprep.mubr.msk.bf16.mxu0 %vm284_vm1, %v8722_v11  ;;  %v2544_v11 = vld [vmem:[#allocation2 + $0x182] sm:$0xff] }
 0x205   : > { %v2564_v28 = vpack.c.bf16 %v2545_v17, %v2544_v11  ;;  %v4585_v17 = vld [vmem:[#allocation3 + $0x182] sm:$0xff] }
 0x207   : > { %6788 = vmatmul.mubr.msk.bf16.gmra.mrb[12].mxu1 %vm284_vm1, %v8702_v44 }
 0x208   : > { %6791 = vmatprep.mubr.msk.bf16.mxu1 %vm284_vm1, %v8712_v57 }
 0x20b   : > { %6988 = vmatmul.mubr.msk.bf16.vlgmr.msra.gmra.mrb[8].mxu0 %vm284_vm1, %v8728_v52 }
 0x20c   : > { %7020 = vmatpush3.bf16.msra.mxu0 %v4358_v24  ;;  %6991 = vmatprep.mubr.msk.bf16.mxu0 %vm284_vm1, %v8747_v25  ;;  %v4584_v24 = vld [vmem:[#allocation3 + $0x172] sm:$0xff] }
 0x20d   : > { %7714 = vmatprep.subr.msk.bf16.mxu0 %vm1277_vm3, %v6051_v40 }
 0x20f   : > { %6792 = vmatmul.mubr.msk.bf16.gmra.mrb[16].mxu1 %vm284_vm1, %v8714_v60 }
 0x210   : > { %6795 = vmatprep.mubr.msk.bf16.mxu1 %vm284_vm1, %v8726_v15 }
 0x213   : > { %6992 = vmatmul.mubr.msk.bf16.gmra.mrb[12].mxu0 %vm284_vm1, %v8751_v27 }
 0x214   : > { %6995 = vmatprep.mubr.msk.bf16.mxu0 %vm284_vm1, %v8763_v34 }
 0x217   : > { %6796 = vmatmul.mubr.msk.bf16.gmra.mrb[20].mxu1 %vm284_vm1, %v8730_v16 }
 0x218   : > { %6799 = vmatprep.mubr.msk.bf16.mxu1 %vm284_vm1, %v8749_v26 }
 0x21b   : > { %6996 = vmatmul.mubr.msk.bf16.gmra.mrb[16].mxu0 %vm284_vm1, %v8767_v23 }
 0x21c   : > { %6999 = vmatprep.mubr.msk.bf16.mxu0 %vm284_vm1, %v8779_v42 }
 0x21f   : > { %6800 = vmatmul.mubr.msk.bf16.gmra.mrb[24].mxu1 %vm284_vm1, %v8753_v59 }
 0x220   : > { %6803 = vmatprep.mubr.msk.bf16.mxu1 %vm284_vm1, %v8765_v14 }
 0x223   : > { %7000 = vmatmul.mubr.msk.bf16.gmra.mrb[20].mxu0 %vm284_vm1, %v8783_v46 }
 0x224   : > { %7003 = vmatprep.mubr.msk.bf16.mxu0 %vm284_vm1, %v8795_v56 }
 0x227   : > { %6804 = vmatmul.mubr.msk.bf16.gmra.mrb[28].mxu1 %vm284_vm1, %v8769_v35 }
 0x228   : > { %6807 = vmatprep.mubr.msk.bf16.mxu1 %vm284_vm1, %v8781_v45 }
 0x22b   : > { %7004 = vmatmul.mubr.msk.bf16.gmra.mrb[24].mxu0 %vm284_vm1, %v8799_v62 }
 0x22c   : > { %7007 = vmatprep.mubr.msk.bf16.mxu0 %vm284_vm1, %v8809_v6 }
 0x22f   : > { %6808 = vmatmul.mubr.msk.bf16.gmra.mrb[32].mxu1 %vm284_vm1, %v8785_v47 }
 0x230   : > { %6811 = vmatprep.mubr.msk.bf16.mxu1 %vm284_vm1, %v8797_v61 }
 0x233   : > { %7008 = vmatmul.mubr.msk.bf16.gmra.mrb[28].mxu0 %vm284_vm1, %v8811_v8 }
 0x234   : > { %7011 = vmatprep.mubr.msk.bf16.mxu0 %vm284_vm1, %v8823_v20 }
 0x237   : > { %6812 = vmatmul.mubr.msk.bf16.gmra.mrb[36].mxu1 %vm284_vm1, %v2564_v28 }
 0x238   : > { %6817 = vmatprep.mubr.msk.bf16.mxu1 %vm284_vm1, %v8682_v30  ;;  %v3883_v30 = vld [vmem:[#allocation3 + $0x181] sm:$0xff] }
 0x239   : > { %v3903_v1 = vpack.c.bf16 %v3884_v29, %v3883_v30 }
 0x23b   : > { %7012 = vmatmul.mubr.msk.bf16.gmra.mrb[32].mxu0 %vm284_vm1, %v8825_v21 }
 0x23c   : > { %7015 = vmatprep.mubr.msk.bf16.mxu0 %vm284_vm1, %v8835_v22 }
 0x23f   : > { %6818 = vmatmul.mubr.msk.bf16.vlgmr.msra.gmra.mrb[8].mxu1 %vm284_vm1, %v8700_v43  ;;  %v4658_v43 = vsel %vm1277_vm3, %v6051_v40, 0 }
 0x240   : > { %6821 = vmatprep.mubr.msk.bf16.mxu1 %vm284_vm1, %v8702_v44  ;;  %v6068_v44 = vld [vmem:[%s9610_s4 + $0xa] sm:$0x3] }
 0x243   : > { %7016 = vmatmul.mubr.msk.bf16.gmra.mrb[36].mxu0 %vm284_vm1, %v3903_v1 }
 0x244   : > { %7021 = vmatprep.mubr.msk.bf16.mxu0 %vm284_vm1, %v8728_v52  ;;  %v3885_v52 = vld [vmem:[#allocation3 + $0x199] sm:$0xff] }
 0x247   : > { %6822 = vmatmul.mubr.msk.bf16.gmra.mrb[12].mxu1 %vm284_vm1, %v8712_v57  ;;  %v2546_v57 = vld [vmem:[#allocation2 + $0x19a] sm:$0xff] }
 0x248   : > { %6825 = vmatprep.mubr.msk.bf16.mxu1 %vm284_vm1, %v8714_v60  ;;  %v2547_v60 = vld [vmem:[#allocation2 + $0x1a2] sm:$0xff] }
 0x24b   : > { %7022 = vmatmul.mubr.msk.bf16.vlgmr.msra.gmra.mrb[8].mxu0 %vm284_vm1, %v8747_v25  ;;  %v4553_v25 = vld [vmem:[#allocation3 + $0x2] sm:$0xff] }
 0x24c   : > { %7054 = vmatpush3.bf16.msra.mxu0 %v4658_v43  ;;  %7025 = vmatprep.mubr.msk.bf16.mxu0 %vm284_vm1, %v8751_v27 }
 0x24d   : > { %7715 = vmatprep.subr.msk.bf16.mxu0 %vm1277_vm3, %v6068_v44 }
 0x24f   : > { %6826 = vmatmul.mubr.msk.bf16.gmra.mrb[16].mxu1 %vm284_vm1, %v8726_v15  ;;  %v2565_v15 = vpack.c.bf16 %v2547_v60, %v2546_v57 }
 0x250   : > { %6829 = vmatprep.mubr.msk.bf16.mxu1 %vm284_vm1, %v8730_v16  ;;  %v3886_v16 = vld [vmem:[#allocation3 + $0x1a1] sm:$0xff] }
 0x251   : > { %v3904_v27 = vpack.c.bf16 %v3886_v16, %v3885_v52 }
 0x253   : > { %7026 = vmatmul.mubr.msk.bf16.gmra.mrb[12].mxu0 %vm284_vm1, %v8763_v34  ;;  %v4590_v34 = vpack.c.bf16 %v4556_v2, %v4555_v53 }
 0x254   : > { %7029 = vmatprep.mubr.msk.bf16.mxu0 %vm284_vm1, %v8767_v23  ;;  %v8964_v23 = vpack.c.bf16 %v4558_v33, %v4557_v4 }
 0x257   : > { %6830 = vmatmul.mubr.msk.bf16.gmra.mrb[20].mxu1 %vm284_vm1, %v8749_v26  ;;  %v4554_v26 = vld [vmem:[#allocation3 + $0xa] sm:$0xff] }
 0x258   : > { %6833 = vmatprep.mubr.msk.bf16.mxu1 %vm284_vm1, %v8753_v59  ;;  %v4589_v59 = vpack.c.bf16 %v4554_v26, %v4553_v25 }
 0x25b   : > { %7030 = vmatmul.mubr.msk.bf16.gmra.mrb[16].mxu0 %vm284_vm1, %v8779_v42  ;;  %v4565_v42 = vld [vmem:[#allocation3 + $0x92] sm:$0xff] }
 0x25c   : > { %7033 = vmatprep.mubr.msk.bf16.mxu0 %vm284_vm1, %v8783_v46  ;;  %v8981_v46 = vpack.c.bf16 %v4564_v41, %v4563_v39  ;;  %v4587_v41 = vld [vmem:[#allocation3 + $0x19a] sm:$0xff] }
 0x25f   : > { %6834 = vmatmul.mubr.msk.bf16.gmra.mrb[24].mxu1 %vm284_vm1, %v8765_v14  ;;  %v4859_v14 = vsel %vm1277_vm3, %v6068_v44, 0 }
 0x260   : > { %6837 = vmatprep.mubr.msk.bf16.mxu1 %vm284_vm1, %v8769_v35  ;;  %v6085_v35 = vld [vmem:[%s9610_s4 + $0x10] sm:$0x3] }
 0x261   : > { %v5060_v11 = vsel %vm1277_vm3, %v6085_v35, 0 }
 0x263   : > { %7034 = vmatmul.mubr.msk.bf16.gmra.mrb[20].mxu0 %vm284_vm1, %v8795_v56  ;;  %v4571_v56 = vld [vmem:[#allocation3 + $0xda] sm:$0xff] }
 0x264   : > { %7037 = vmatprep.mubr.msk.bf16.mxu0 %vm284_vm1, %v8799_v62  ;;  %v4573_v62 = vld [vmem:[#allocation3 + $0xf2] sm:$0xff] }
 0x265   : > { %v8999_v3 = vpack.c.bf16 %v4574_v63, %v4573_v62 }
 0x267   : > { %6838 = vmatmul.mubr.msk.bf16.gmra.mrb[28].mxu1 %vm284_vm1, %v8781_v45  ;;  %v4566_v45 = vld [vmem:[#allocation3 + $0x9a] sm:$0xff] }
 0x268   : > { %6841 = vmatprep.mubr.msk.bf16.mxu1 %vm284_vm1, %v8785_v47  ;;  %v8983_v47 = vpack.c.bf16 %v4566_v45, %v4565_v42  ;;  %v4588_v42 = vld [vmem:[#allocation3 + $0x1a2] sm:$0xff] }
 0x269   : > { %v4606_v45 = vpack.c.bf16 %v4588_v42, %v4587_v41 }
 0x26b   : > { %7038 = vmatmul.mubr.msk.bf16.gmra.mrb[24].mxu0 %vm284_vm1, %v8809_v6  ;;  %v4576_v6 = vld [vmem:[#allocation3 + $0x112] sm:$0xff] }
 0x26c   : > { %7041 = vmatprep.mubr.msk.bf16.mxu0 %vm284_vm1, %v8811_v8  ;;  %v4577_v8 = vld [vmem:[#allocation3 + $0x122] sm:$0xff]  ;;  %v9005_v18 = vpack.c.bf16 %v4576_v6, %v4575_v5 }
 0x26d   : > { %v9007_v13 = vpack.c.bf16 %v4578_v12, %v4577_v8 }
 0x26f   : > { %6842 = vmatmul.mubr.msk.bf16.gmra.mrb[32].mxu1 %vm284_vm1, %v8797_v61  ;;  %v4572_v61 = vld [vmem:[#allocation3 + $0xe2] sm:$0xff] }
 0x270   : > { %6845 = vmatprep.mubr.msk.bf16.mxu1 %vm284_vm1, %v2564_v28  ;;  %v8997_v0 = vpack.c.bf16 %v4572_v61, %v4571_v56  ;;  %v4586_v28 = vld [vmem:[#allocation3 + $0x18a] sm:$0xff] }
 0x271   : > { %v4605_v30 = vpack.c.bf16 %v4586_v28, %v4585_v17 }
 0x273   : > { %7042 = vmatmul.mubr.msk.bf16.gmra.mrb[28].mxu0 %vm284_vm1, %v8823_v20  ;;  %v4581_v20 = vld [vmem:[#allocation3 + $0x152] sm:$0xff] }
 0x274   : > { %7045 = vmatprep.mubr.msk.bf16.mxu0 %vm284_vm1, %v8825_v21  ;;  %v4582_v21 = vld [vmem:[#allocation3 + $0x15a] sm:$0xff] }
 0x275   : > { %v9015_v9 = vpack.c.bf16 %v4582_v21, %v4581_v20 }
 0x277   : > { %6846 = vmatmul.mubr.msk.bf16.gmra.mrb[36].mxu1 %vm284_vm1, %v2565_v15 }
 0x27b   : > { %7046 = vmatmul.mubr.msk.bf16.gmra.mrb[32].mxu0 %vm284_vm1, %v8835_v22  ;;  %v4583_v22 = vld [vmem:[#allocation3 + $0x16a] sm:$0xff] }
 0x27c   : > { %7049 = vmatprep.mubr.msk.bf16.mxu0 %vm284_vm1, %v3903_v1  ;;  %v9021_v40 = vpack.c.bf16 %v4584_v24, %v4583_v22 }
 0x283   : > { %7050 = vmatmul.mubr.msk.bf16.gmra.mrb[36].mxu0 %vm284_vm1, %v3904_v27 }
 0x284   : > { %7055 = vmatprep.mubr.msk.bf16.mxu0 %vm284_vm1, %v4589_v59 }
 0x28b   : > { %7056 = vmatmul.mubr.msk.bf16.vlgmr.msra.gmra.mrb[8].mxu0 %vm284_vm1, %v4590_v34 }
 0x28c   : > { %7088 = vmatpush3.bf16.msra.mxu0 %v4859_v14  ;;  %7059 = vmatprep.mubr.msk.bf16.mxu0 %vm284_vm1, %v8964_v23 }
 0x28d   : > { %7716 = vmatprep.subr.msk.bf16.mxu0 %vm1277_vm3, %v6085_v35 }
 0x293   : > { %7060 = vmatmul.mubr.msk.bf16.gmra.mrb[12].mxu0 %vm284_vm1, %v8973_v31 }
 0x294   : > { %7063 = vmatprep.mubr.msk.bf16.mxu0 %vm284_vm1, %v8975_v36 }
 0x29b   : > { %7064 = vmatmul.mubr.msk.bf16.gmra.mrb[16].mxu0 %vm284_vm1, %v8981_v46 }
 0x29c   : > { %7067 = vmatprep.mubr.msk.bf16.mxu0 %vm284_vm1, %v8983_v47 }
 0x2a3   : > { %7068 = vmatmul.mubr.msk.bf16.gmra.mrb[20].mxu0 %vm284_vm1, %v8989_v10 }
 0x2a4   : > { %7071 = vmatprep.mubr.msk.bf16.mxu0 %vm284_vm1, %v8991_v54 }
 0x2ab   : > { %7072 = vmatmul.mubr.msk.bf16.gmra.mrb[24].mxu0 %vm284_vm1, %v8997_v0 }
 0x2ac   : > { %7075 = vmatprep.mubr.msk.bf16.mxu0 %vm284_vm1, %v8999_v3 }
 0x2b3   : > { %7076 = vmatmul.mubr.msk.bf16.gmra.mrb[28].mxu0 %vm284_vm1, %v9005_v18 }
 0x2b4   : > { %7079 = vmatprep.mubr.msk.bf16.mxu0 %vm284_vm1, %v9007_v13 }
 0x2bb   : > { %7080 = vmatmul.mubr.msk.bf16.gmra.mrb[32].mxu0 %vm284_vm1, %v9013_v32 }
 0x2bc   : > { %7083 = vmatprep.mubr.msk.bf16.mxu0 %vm284_vm1, %v9015_v9 }
 0x2c3   : > { %7084 = vmatmul.mubr.msk.bf16.gmra.mrb[36].mxu0 %vm284_vm1, %v9021_v40 }
 0x2c4   : > { %7089 = vmatprep.mubr.msk.bf16.mxu0 %vm284_vm1, %v4590_v34 }
 0x2cb   : > { %7090 = vmatmul.mubr.msk.bf16.vlgmr.msra.gmra.mrb[8].mxu0 %vm284_vm1, %v8964_v23 }
 0x2cc   : > { %7122 = vmatpush3.bf16.msra.mxu0 %v5060_v11  ;;  %7093 = vmatprep.mubr.msk.bf16.mxu0 %vm284_vm1, %v8973_v31 }
 0x2d3   : > { %7094 = vmatmul.mubr.msk.bf16.gmra.mrb[12].mxu0 %vm284_vm1, %v8975_v36 }
 0x2d4   : > { %7097 = vmatprep.mubr.msk.bf16.mxu0 %vm284_vm1, %v8981_v46 }
 0x2db   : > { %7098 = vmatmul.mubr.msk.bf16.gmra.mrb[16].mxu0 %vm284_vm1, %v8983_v47 }
 0x2dc   : > { %7101 = vmatprep.mubr.msk.bf16.mxu0 %vm284_vm1, %v8989_v10 }
 0x2e3   : > { %7102 = vmatmul.mubr.msk.bf16.gmra.mrb[20].mxu0 %vm284_vm1, %v8991_v54 }
 0x2e4   : > { %7105 = vmatprep.mubr.msk.bf16.mxu0 %vm284_vm1, %v8997_v0 }
 0x2eb   : > { %7106 = vmatmul.mubr.msk.bf16.gmra.mrb[24].mxu0 %vm284_vm1, %v8999_v3 }
 0x2ec   : > { %7109 = vmatprep.mubr.msk.bf16.mxu0 %vm284_vm1, %v9005_v18 }
 0x2f3   : > { %7110 = vmatmul.mubr.msk.bf16.gmra.mrb[28].mxu0 %vm284_vm1, %v9007_v13 }
 0x2f4   : > { %7113 = vmatprep.mubr.msk.bf16.mxu0 %vm284_vm1, %v9013_v32 }
 0x2fb   : > { %7114 = vmatmul.mubr.msk.bf16.gmra.mrb[32].mxu0 %vm284_vm1, %v9015_v9 }
 0x2fc   : > { %7117 = vmatprep.mubr.msk.bf16.mxu0 %vm284_vm1, %v9021_v40 }
 0x303   : > { %7118 = vmatmul.mubr.msk.bf16.gmra.mrb[36].mxu0 %vm284_vm1, %v4605_v30 }
 0x304   : > { %7123 = vmatprep.mubr.msk.bf16.mxu0 %vm284_vm1, %v8964_v23 }
 0x30b   : > { %7124 = vmatmul.mubr.msk.bf16.vlgmr.msra.gmra.mrb[8].mxu0 %vm284_vm1, %v8973_v31 }
 0x30c   : > { %7127 = vmatprep.mubr.msk.bf16.mxu0 %vm284_vm1, %v8975_v36 }
 0x312   : > { %v6819_v29 = vpop.f32.mrb[8].mxu1 }
 0x313   : > { %v3055_v1 = vpop.f32.mrb[9].mxu1  ;;  %7128 = vmatmul.mubr.msk.bf16.gmra.mrb[12].mxu0 %vm284_vm1, %v8981_v46 }
 0x314   : > { %v6820_v43 = vpop.f32.mrb[10].mxu1  ;;  %7131 = vmatprep.mubr.msk.bf16.mxu0 %vm284_vm1, %v8983_v47 }
 0x315   : > { %v3058_v44 = vpop.f32.mrb[11].mxu1 }
 0x31a   : > { %v9062_v57 = vpop.f32.mrb[12].mxu1 }
 0x31b   : > { %v9064_v60 = vpop.f32.mrb[13].mxu1  ;;  %7132 = vmatmul.mubr.msk.bf16.gmra.mrb[16].mxu0 %vm284_vm1, %v8989_v10 }
 0x31c   : > { %v9066_v15 = vpop.f32.mrb[14].mxu1  ;;  %7135 = vmatprep.mubr.msk.bf16.mxu0 %vm284_vm1, %v8991_v54 }
 0x31d   : > { %v9070_v52 = vpop.f32.mrb[15].mxu1 }
 0x322   : > { %v9074_v16 = vpop.f32.mrb[16].mxu1 }
 0x323   : > { %v9076_v25 = vpop.f32.mrb[17].mxu1  ;;  %7136 = vmatmul.mubr.msk.bf16.gmra.mrb[20].mxu0 %vm284_vm1, %v8997_v0 }
 0x324   : > { %v9078_v26 = vpop.f32.mrb[18].mxu1  ;;  %7139 = vmatprep.mubr.msk.bf16.mxu0 %vm284_vm1, %v8999_v3 }
 0x325   : > { %v9082_v27 = vpop.f32.mrb[19].mxu1 }
 0x32a   : > { %v9086_v59 = vpop.f32.mrb[20].mxu1 }
 0x32b   : > { %v9088_v53 = vpop.f32.mrb[21].mxu1  ;;  %7140 = vmatmul.mubr.msk.bf16.gmra.mrb[24].mxu0 %vm284_vm1, %v9005_v18 }
 0x32c   : > { %v9090_v2 = vpop.f32.mrb[22].mxu1  ;;  %7143 = vmatprep.mubr.msk.bf16.mxu0 %vm284_vm1, %v9007_v13 }
 0x32d   : > { %v9094_v4 = vpop.f32.mrb[23].mxu1 }
 0x332   : > { %v9098_v33 = vpop.f32.mrb[24].mxu1 }
 0x333   : > { %v9100_v34 = vpop.f32.mrb[25].mxu1  ;;  %7144 = vmatmul.mubr.msk.bf16.gmra.mrb[28].mxu0 %vm284_vm1, %v9013_v32 }
 0x334   : > { %v9102_v14 = vpop.f32.mrb[26].mxu1  ;;  %7147 = vmatprep.mubr.msk.bf16.mxu0 %vm284_vm1, %v9015_v9 }
 0x335   : > { %v9106_v23 = vpop.f32.mrb[27].mxu1 }
 0x33a   : > { %v9110_v35 = vpop.f32.mrb[28].mxu1 }
 0x33b   : > { %v9112_v38 = vpop.f32.mrb[29].mxu1  ;;  %7148 = vmatmul.mubr.msk.bf16.gmra.mrb[32].mxu0 %vm284_vm1, %v9021_v40 }
 0x33c   : > { %v9114_v37 = vpop.f32.mrb[30].mxu1  ;;  %7151 = vmatprep.mubr.msk.bf16.mxu0 %vm284_vm1, %v4605_v30 }
 0x33d   : > { %v9118_v58 = vpop.f32.mrb[31].mxu1 }
 0x342   : > { %v9122_v7 = vpop.f32.mrb[32].mxu1 }
 0x343   : > { %v9124_v31 = vpop.f32.mrb[33].mxu1  ;;  %7152 = vmatmul.mubr.msk.bf16.gmra.mrb[36].mxu0 %vm284_vm1, %v4606_v45 }
 0x344   : > { %v9126_v36 = vpop.f32.mrb[34].mxu1 }
 0x345   : > { %v9130_v39 = vpop.f32.mrb[35].mxu1 }
 0x34a   : > { %v9133_v46 = vpop.f32.mrb[36].mxu1 }
 0x34b   : > { %v9135_v47 = vpop.f32.mrb[37].mxu1 }
 0x34c   : > { %v9137_v48 = vpop.f32.mrb[38].mxu1 }
 0x34d   : > { %v9140_v49 = vpop.f32.mrb[39].mxu1 }
 0x3de   : > { %v7125_v50 = vpop.f32.mrb[8].mxu0 }
 0x3df   : > { %v9143_v51 = vadd.f32 %v7125_v50, %v6819_v29  ;;  %v5096_v10 = vpop.f32.mrb[9].mxu0 }
 0x3e0   : > { %v9150_v54 = vadd.f32 %v5096_v10, %v3055_v1  ;;  %v7126_v56 = vpop.f32.mrb[10].mxu0 }
 0x3e1   : > { %v6143_v61 = vpack.c.bf16 %v9143_v51, %v9143_v51  ;;  %v9154_v62 = vadd.f32 %v7126_v56, %v6820_v43  ;;  %v5099_v63 = vpop.f32.mrb[11].mxu0  ;;  %v5290_v13 = vsel %vm284_vm1, %v9143_v51, 0.0 }
 0x3e2   : > { %v6141_v0 = vpack.c.bf16 %v9150_v54, %v9150_v54  ;;  %v9158_v3 = vadd.f32 %v5099_v63, %v3058_v44  ;;  %v5287_v6 = vsel %vm284_vm1, %v9150_v54, 0.0 }
 0x3e3   : > { %5623 = vst.msk [vmem:[%s9148_s19 + $0x8] sm:$0xf] %vm5620_vm5, %v6143_v61  ;;  %v6144_v5 = vpack.c.bf16 %v9154_v62, %v9154_v62  ;;  %v5292_v32 = vsel %vm284_vm1, %v9154_v62, 0.0 }
 0x3e4   : > { %5621 = vst.msk [vmem:[%s9148_s19] sm:$0xf] %vm5620_vm5, %v6141_v0  ;;  %v5288_v8 = vsel %vm284_vm1, %v9158_v3, 0.0  ;;  %v6142_v12 = vpack.c.bf16 %v9158_v3, %v9158_v3 }
 0x3e5   : > { %5624 = vst.msk [vmem:[%s9148_s19 + $0xc] sm:$0xf] %vm5620_vm5, %v6144_v5  ;;  %v5289_v18 = vadd.f32 %v5288_v8, %v5287_v6 }
 0x3e6   : > { %5622 = vst.msk [vmem:[%s9148_s19 + $0x4] sm:$0xf] %vm5620_vm5, %v6142_v12  ;;  %v7129_v55 = vpop.f32.mrb[12].mxu0 }
 0x3e7   : > { %v5291_v19 = vadd.f32 %v5290_v13, %v5289_v18  ;;  %v9179_v20 = vadd.f32 %v7129_v55, %v9062_v57  ;;  %v5112_v21 = vpop.f32.mrb[13].mxu0 }
 0x3e8   : > { %v9184_v9 = vadd.f32 %v5112_v21, %v9064_v60  ;;  %v7130_v22 = vpop.f32.mrb[14].mxu0 }
 0x3e9   : > { %v6147_v24 = vpack.c.bf16 %v9179_v20, %v9179_v20  ;;  %v5293_v40 = vadd.f32 %v5292_v32, %v5291_v19  ;;  %v9189_v11 = vadd.f32 %v7130_v22, %v9066_v15  ;;  %v5115_v17 = vpop.f32.mrb[15].mxu0  ;;  %v5298_v15 = vsel %vm284_vm1, %v9179_v20, 0.0 }
 0x3ea   : > { %v5294_v28 = vsel %vm284_vm1, %v9184_v9, 0.0  ;;  %v6145_v30 = vpack.c.bf16 %v9184_v9, %v9184_v9  ;;  %v9196_v29 = vadd.f32 %v5115_v17, %v9070_v52 }
 0x3eb   : > { %5627 = vst.msk [vmem:[%s9148_s19 + $0x18] sm:$0xf] %vm5620_vm5, %v6147_v24  ;;  %v5295_v1 = vadd.f32 %v5294_v28, %v5293_v40  ;;  %v6148_v43 = vpack.c.bf16 %v9189_v11, %v9189_v11  ;;  %v5300_v50 = vsel %vm284_vm1, %v9189_v11, 0.0 }
 0x3ec   : > { %5625 = vst.msk [vmem:[%s9148_s19 + $0x10] sm:$0xf] %vm5620_vm5, %v6145_v30  ;;  %v5296_v44 = vsel %vm284_vm1, %v9196_v29, 0.0  ;;  %v6146_v57 = vpack.c.bf16 %v9196_v29, %v9196_v29 }
 0x3ed   : > { %5628 = vst.msk [vmem:[%s9148_s19 + $0x1c] sm:$0xf] %vm5620_vm5, %v6148_v43  ;;  %v5297_v60 = vadd.f32 %v5296_v44, %v5295_v1 }
 0x3ee   : > { %5626 = vst.msk [vmem:[%s9148_s19 + $0x14] sm:$0xf] %vm5620_vm5, %v6146_v57  ;;  %v7133_v52 = vpop.f32.mrb[16].mxu0 }
 0x3ef   : > { %v5299_v41 = vadd.f32 %v5298_v15, %v5297_v60  ;;  %v9215_v42 = vadd.f32 %v7133_v52, %v9074_v16  ;;  %v5128_v45 = vpop.f32.mrb[17].mxu0 }
 0x3f0   : > { %v9220_v10 = vadd.f32 %v5128_v45, %v9076_v25  ;;  %v7134_v56 = vpop.f32.mrb[18].mxu0 }
 0x3f1   : > { %v6151_v61 = vpack.c.bf16 %v9215_v42, %v9215_v42  ;;  %v5301_v63 = vadd.f32 %v5300_v50, %v5299_v41  ;;  %v9225_v0 = vadd.f32 %v7134_v56, %v9078_v26  ;;  %v5131_v5 = vpop.f32.mrb[19].mxu0 }
 0x3f2   : > { %v5302_v16 = vsel %vm284_vm1, %v9220_v10, 0.0  ;;  %v6149_v6 = vpack.c.bf16 %v9220_v10, %v9220_v10  ;;  %v9232_v8 = vadd.f32 %v5131_v5, %v9082_v27  ;;  %v5306_v27 = vsel %vm284_vm1, %v9215_v42, 0.0 }
 0x3f3   : > { %5631 = vst.msk [vmem:[%s9148_s19 + $0x28] sm:$0xf] %vm5620_vm5, %v6151_v61  ;;  %v5303_v25 = vadd.f32 %v5302_v16, %v5301_v63  ;;  %v6152_v12 = vpack.c.bf16 %v9225_v0, %v9225_v0  ;;  %v5308_v22 = vsel %vm284_vm1, %v9225_v0, 0.0 }
 0x3f4   : > { %5629 = vst.msk [vmem:[%s9148_s19 + $0x20] sm:$0xf] %vm5620_vm5, %v6149_v6  ;;  %v5304_v26 = vsel %vm284_vm1, %v9232_v8, 0.0  ;;  %v6150_v18 = vpack.c.bf16 %v9232_v8, %v9232_v8 }
 0x3f5   : > { %5632 = vst.msk [vmem:[%s9148_s19 + $0x2c] sm:$0xf] %vm5620_vm5, %v6152_v12  ;;  %v5305_v13 = vadd.f32 %v5304_v26, %v5303_v25 }
 0x3f6   : > { %5630 = vst.msk [vmem:[%s9148_s19 + $0x24] sm:$0xf] %vm5620_vm5, %v6150_v18  ;;  %v7137_v55 = vpop.f32.mrb[20].mxu0 }
 0x3f7   : > { %v5307_v19 = vadd.f32 %v5306_v27, %v5305_v13  ;;  %v9251_v21 = vadd.f32 %v7137_v55, %v9086_v59  ;;  %v5144_v32 = vpop.f32.mrb[21].mxu0 }
 0x3f8   : > { %v9256_v24 = vadd.f32 %v5144_v32, %v9088_v53  ;;  %v7138_v40 = vpop.f32.mrb[22].mxu0 }
 0x3f9   : > { %v6155_v17 = vpack.c.bf16 %v9251_v21, %v9251_v21  ;;  %v5309_v28 = vadd.f32 %v5308_v22, %v5307_v19  ;;  %v9261_v30 = vadd.f32 %v7138_v40, %v9090_v2  ;;  %v5147_v1 = vpop.f32.mrb[23].mxu0 }
 0x3fa   : > { %v5310_v59 = vsel %vm284_vm1, %v9256_v24, 0.0  ;;  %v6153_v43 = vpack.c.bf16 %v9256_v24, %v9256_v24  ;;  %v9268_v44 = vadd.f32 %v5147_v1, %v9094_v4  ;;  %v5314_v4 = vsel %vm284_vm1, %v9251_v21, 0.0 }
 0x3fb   : > { %5635 = vst.msk [vmem:[%s9148_s19 + $0x38] sm:$0xf] %vm5620_vm5, %v6155_v17  ;;  %v5311_v53 = vadd.f32 %v5310_v59, %v5309_v28  ;;  %v6156_v57 = vpack.c.bf16 %v9261_v30, %v9261_v30  ;;  %v5316_v56 = vsel %vm284_vm1, %v9261_v30, 0.0 }
 0x3fc   : > { %5633 = vst.msk [vmem:[%s9148_s19 + $0x30] sm:$0xf] %vm5620_vm5, %v6153_v43  ;;  %v5312_v2 = vsel %vm284_vm1, %v9268_v44, 0.0  ;;  %v6154_v60 = vpack.c.bf16 %v9268_v44, %v9268_v44 }
 0x3fd   : > { %5636 = vst.msk [vmem:[%s9148_s19 + $0x3c] sm:$0xf] %vm5620_vm5, %v6156_v57  ;;  %v5313_v15 = vadd.f32 %v5312_v2, %v5311_v53 }
 0x3fe   : > { %5634 = vst.msk [vmem:[%s9148_s19 + $0x34] sm:$0xf] %vm5620_vm5, %v6154_v60  ;;  %v7141_v52 = vpop.f32.mrb[24].mxu0 }
 0x3ff   : > { %v5315_v41 = vadd.f32 %v5314_v4, %v5313_v15  ;;  %v9287_v45 = vadd.f32 %v7141_v52, %v9098_v33  ;;  %v5160_v50 = vpop.f32.mrb[25].mxu0 }
 0x400   : > { %v9292_v61 = vadd.f32 %v5160_v50, %v9100_v34  ;;  %v7142_v63 = vpop.f32.mrb[26].mxu0 }
 0x401   : > { %v6159_v5 = vpack.c.bf16 %v9287_v45, %v9287_v45  ;;  %v5317_v16 = vadd.f32 %v5316_v56, %v5315_v41  ;;  %v9297_v6 = vadd.f32 %v7142_v63, %v9102_v14  ;;  %v5163_v25 = vpop.f32.mrb[27].mxu0 }
 0x402   : > { %v5318_v33 = vsel %vm284_vm1, %v9292_v61, 0.0  ;;  %v6157_v12 = vpack.c.bf16 %v9292_v61, %v9292_v61  ;;  %v9304_v26 = vadd.f32 %v5163_v25, %v9106_v23  ;;  %v5322_v23 = vsel %vm284_vm1, %v9287_v45, 0.0 }
 0x403   : > { %5639 = vst.msk [vmem:[%s9148_s19 + $0x48] sm:$0xf] %vm5620_vm5, %v6159_v5  ;;  %v5319_v34 = vadd.f32 %v5318_v33, %v5317_v16  ;;  %v6160_v18 = vpack.c.bf16 %v9297_v6, %v9297_v6  ;;  %v5324_v40 = vsel %vm284_vm1, %v9297_v6, 0.0 }
 0x404   : > { %5637 = vst.msk [vmem:[%s9148_s19 + $0x40] sm:$0xf] %vm5620_vm5, %v6157_v12  ;;  %v5320_v14 = vsel %vm284_vm1, %v9304_v26, 0.0  ;;  %v6158_v13 = vpack.c.bf16 %v9304_v26, %v9304_v26 }
 0x405   : > { %5640 = vst.msk [vmem:[%s9148_s19 + $0x4c] sm:$0xf] %vm5620_vm5, %v6160_v18  ;;  %v5321_v27 = vadd.f32 %v5320_v14, %v5319_v34 }
 0x406   : > { %5638 = vst.msk [vmem:[%s9148_s19 + $0x44] sm:$0xf] %vm5620_vm5, %v6158_v13  ;;  %v7145_v55 = vpop.f32.mrb[28].mxu0 }
 0x407   : > { %v5323_v19 = vadd.f32 %v5322_v23, %v5321_v27  ;;  %v9323_v32 = vadd.f32 %v7145_v55, %v9110_v35  ;;  %v5176_v22 = vpop.f32.mrb[29].mxu0 }
 0x408   : > { %v9328_v17 = vadd.f32 %v5176_v22, %v9112_v38  ;;  %v7146_v28 = vpop.f32.mrb[30].mxu0 }
 0x409   : > { %v6163_v1 = vpack.c.bf16 %v9323_v32, %v9323_v32  ;;  %v5325_v59 = vadd.f32 %v5324_v40, %v5323_v19  ;;  %v9333_v43 = vadd.f32 %v7146_v28, %v9114_v37  ;;  %v5179_v53 = vpop.f32.mrb[31].mxu0 }
 0x40a   : > { %v5326_v35 = vsel %vm284_vm1, %v9328_v17, 0.0  ;;  %v6161_v57 = vpack.c.bf16 %v9328_v17, %v9328_v17  ;;  %v9340_v2 = vadd.f32 %v5179_v53, %v9118_v58  ;;  %v5330_v58 = vsel %vm284_vm1, %v9323_v32, 0.0 }
 0x40b   : > { %5643 = vst.msk [vmem:[%s9148_s19 + $0x58] sm:$0xf] %vm5620_vm5, %v6163_v1  ;;  %v5327_v38 = vadd.f32 %v5326_v35, %v5325_v59  ;;  %v6164_v60 = vpack.c.bf16 %v9333_v43, %v9333_v43  ;;  %v5332_v63 = vsel %vm284_vm1, %v9333_v43, 0.0 }
 0x40c   : > { %5641 = vst.msk [vmem:[%s9148_s19 + $0x50] sm:$0xf] %vm5620_vm5, %v6161_v57  ;;  %v5328_v37 = vsel %vm284_vm1, %v9340_v2, 0.0  ;;  %v6162_v15 = vpack.c.bf16 %v9340_v2, %v9340_v2 }
 0x40d   : > { %5644 = vst.msk [vmem:[%s9148_s19 + $0x5c] sm:$0xf] %vm5620_vm5, %v6164_v60  ;;  %v5329_v4 = vadd.f32 %v5328_v37, %v5327_v38 }
 0x40e   : > { %5642 = vst.msk [vmem:[%s9148_s19 + $0x54] sm:$0xf] %vm5620_vm5, %v6162_v15  ;;  %v7149_v52 = vpop.f32.mrb[32].mxu0 }
 0x40f   : > { %v5331_v41 = vadd.f32 %v5330_v58, %v5329_v4  ;;  %v9359_v50 = vadd.f32 %v7149_v52, %v9122_v7  ;;  %v5192_v56 = vpop.f32.mrb[33].mxu0 }
 0x410   : > { %v9364_v5 = vadd.f32 %v5192_v56, %v9124_v31  ;;  %v7150_v16 = vpop.f32.mrb[34].mxu0 }
 0x411   : > { %v6167_v25 = vpack.c.bf16 %v9359_v50, %v9359_v50  ;;  %v5333_v33 = vadd.f32 %v5332_v63, %v5331_v41  ;;  %v9369_v12 = vadd.f32 %v7150_v16, %v9126_v36  ;;  %v5195_v34 = vpop.f32.mrb[35].mxu0 }
 0x412   : > { %v5334_v7 = vsel %vm284_vm1, %v9364_v5, 0.0  ;;  %v6165_v18 = vpack.c.bf16 %v9364_v5, %v9364_v5  ;;  %v9376_v14 = vadd.f32 %v5195_v34, %v9130_v39  ;;  %v5338_v39 = vsel %vm284_vm1, %v9359_v50, 0.0 }
 0x413   : > { %5647 = vst.msk [vmem:[%s9148_s19 + $0x68] sm:$0xf] %vm5620_vm5, %v6167_v25  ;;  %v5335_v31 = vadd.f32 %v5334_v7, %v5333_v33  ;;  %v6168_v13 = vpack.c.bf16 %v9369_v12, %v9369_v12  ;;  %v5340_v28 = vsel %vm284_vm1, %v9369_v12, 0.0 }
 0x414   : > { %5645 = vst.msk [vmem:[%s9148_s19 + $0x60] sm:$0xf] %vm5620_vm5, %v6165_v18  ;;  %v5336_v36 = vsel %vm284_vm1, %v9376_v14, 0.0  ;;  %v6166_v27 = vpack.c.bf16 %v9376_v14, %v9376_v14 }
 0x415   : > { %5648 = vst.msk [vmem:[%s9148_s19 + $0x6c] sm:$0xf] %vm5620_vm5, %v6168_v13  ;;  %v5337_v23 = vadd.f32 %v5336_v36, %v5335_v31 }
 0x416   : > { %5646 = vst.msk [vmem:[%s9148_s19 + $0x64] sm:$0xf] %vm5620_vm5, %v6166_v27  ;;  %v7153_v55 = vpop.f32.mrb[36].mxu0 }
 0x417   : > { %v5339_v19 = vadd.f32 %v5338_v39, %v5337_v23  ;;  %v7183_v22 = vadd.f32 %v7153_v55, %v9133_v46  ;;  %v5208_v40 = vpop.f32.mrb[37].mxu0 }
 0x418   : > { %v7184_v1 = vadd.f32 %v5208_v40, %v9135_v47  ;;  %v7154_v59 = vpop.f32.mrb[38].mxu0 }
 0x419   : > { %v6171_v53 = vpack.c.bf16 %v7183_v22, %v7183_v22  ;;  %v5341_v35 = vadd.f32 %v5340_v28, %v5339_v19  ;;  %v7185_v57 = vadd.f32 %v7154_v59, %v9137_v48  ;;  %v5211_v38 = vpop.f32.mrb[39].mxu0  ;;  %v5346_v52 = vsel %vm284_vm1, %v7183_v22, 0.0 }
 0x41a   : > { %v5342_v60 = vsel %vm284_vm1, %v7184_v1, 0.0  ;;  %v6169_v37 = vpack.c.bf16 %v7184_v1, %v7184_v1  ;;  %v7186_v15 = vadd.f32 %v5211_v38, %v9140_v49 }
 0x41b   : > { %5651 = vst.msk [vmem:[%s9148_s19 + $0x78] sm:$0xf] %vm5620_vm5, %v6171_v53  ;;  %v5343_v46 = vadd.f32 %v5342_v60, %v5341_v35  ;;  %v6172_v4 = vpack.c.bf16 %v7185_v57, %v7185_v57  ;;  %v5348_v49 = vsel %vm284_vm1, %v7185_v57, 0.0 }
 0x41c   : > { %5649 = vst.msk [vmem:[%s9148_s19 + $0x70] sm:$0xf] %vm5620_vm5, %v6169_v37  ;;  %v5344_v47 = vsel %vm284_vm1, %v7186_v15, 0.0  ;;  %v6170_v58 = vpack.c.bf16 %v7186_v15, %v7186_v15 }
 0x41d   : > { %5652 = vst.msk [vmem:[%s9148_s19 + $0x7c] sm:$0xf] %vm5620_vm5, %v6172_v4  ;;  %v5345_v48 = vadd.f32 %v5344_v47, %v5343_v46 }
 0x41e   : > { %5650 = vst.msk [vmem:[%s9148_s19 + $0x74] sm:$0xf] %vm5620_vm5, %v6170_v58 }
 0x41f   : > { %v5347_v41 = vadd.f32 %v5346_v52, %v5345_v48 }
 0x421   : > { %v5349_v56 = vadd.f32 %v5348_v49, %v5347_v41 }
 0x423   : > { %v5350_v63 = vrot.slane %v5349_v56, 4 }
 0x425   : > { %v5351_v16 = vadd.f32 %v5350_v63, %v5349_v56 }
 0x427   : > { %v5352_v25 = vrot.slane %v5351_v16, 2 }
 0x429   : > { %v5353_v33 = vadd.f32 %v5352_v25, %v5351_v16 }
 0x42b   : > { %v5354_v34 = vrot.slane %v5353_v33, 1 }
 0x42d   : > { %v5355_v7 = vadd.f32 %v5354_v34, %v5353_v33 }
 0x42f   : > { %v5356_v18 = vmul.f32 0.00390625, %v5355_v7 }
 0x431   : > { %5389 = vst.msk [vmem:[%s9415_s26] sm:$0x1] %vm293_vm2, %v5356_v18  ;;  %v5366_v31 = vsub.f32 %v9232_v8, %v5356_v18  ;;  %v5368_v13 = vsub.f32 %v9225_v0, %v5356_v18  ;;  %v5369_v36 = vsub.f32 %v9256_v24, %v5356_v18  ;;  %v9423_v27 = vsub.f32 %v9268_v44, %v5356_v18 }
 0x432   : > { %v9426_v23 = vsub.f32 %v9251_v21, %v5356_v18  ;;  %v9429_v39 = vsub.f32 %v9261_v30, %v5356_v18  ;;  %v9432_v55 = vsub.f32 %v9292_v61, %v5356_v18  ;;  %v9435_v19 = vsub.f32 %v9304_v26, %v5356_v18 }
 0x433   : > { %v9438_v8 = vsub.f32 %v9287_v45, %v5356_v18  ;;  %v9441_v0 = vsub.f32 %v9297_v6, %v5356_v18  ;;  %v9444_v24 = vsub.f32 %v9328_v17, %v5356_v18  ;;  %v9447_v21 = vsub.f32 %v9340_v2, %v5356_v18 }
 0x434   : > { %v9450_v30 = vsub.f32 %v9323_v32, %v5356_v18  ;;  %v9453_v44 = vsub.f32 %v9333_v43, %v5356_v18  ;;  %v9456_v61 = vsub.f32 %v9364_v5, %v5356_v18  ;;  %v9459_v45 = vsub.f32 %v9376_v14, %v5356_v18 }
 0x435   : > { %v9462_v6 = vsub.f32 %v9359_v50, %v5356_v18  ;;  %v9465_v26 = vsub.f32 %v9369_v12, %v5356_v18  ;;  %v9467_v17 = vsub.f32 %v7184_v1, %v5356_v18  ;;  %v9469_v2 = vsub.f32 %v7186_v15, %v5356_v18 }
 0x436   : > { %v9471_v32 = vsub.f32 %v7183_v22, %v5356_v18  ;;  %v9473_v43 = vsub.f32 %v7185_v57, %v5356_v18  ;;  %v5357_v5 = vsub.f32 %v9150_v54, %v5356_v18  ;;  %v5358_v40 = vsub.f32 %v9158_v3, %v5356_v18 }
 0x437   : > { %v5359_v14 = vsub.f32 %v9143_v51, %v5356_v18  ;;  %v5360_v50 = vsub.f32 %v9154_v62, %v5356_v18  ;;  %v5361_v12 = vsub.f32 %v9184_v9, %v5356_v18  ;;  %v5362_v53 = vsub.f32 %v9196_v29, %v5356_v18 }
 0x438   : > { %v5390_v28 = vmul.f32 %v5357_v5, %v5357_v5  ;;  %v5391_v59 = vmul.f32 %v5358_v40, %v5358_v40  ;;  %v5363_v54 = vsub.f32 %v9179_v20, %v5356_v18  ;;  %v5364_v62 = vsub.f32 %v9189_v11, %v5356_v18 }
 0x439   : > { %v5392_v1 = vmul.f32 %v5359_v14, %v5359_v14  ;;  %v5393_v35 = vmul.f32 %v5360_v50, %v5360_v50  ;;  %v5394_v3 = vmul.f32 %v5361_v12, %v5361_v12  ;;  %v5395_v37 = vmul.f32 %v5362_v53, %v5362_v53 }
 0x43a   : > { %v5422_v22 = vsel %vm284_vm1, %v5390_v28, 0.0  ;;  %v5423_v57 = vsel %vm284_vm1, %v5391_v59, 0.0  ;;  %v5365_v29 = vsub.f32 %v9220_v10, %v5356_v18  ;;  %v5396_v46 = vmul.f32 %v5363_v54, %v5363_v54 }
 0x43b   : > { %v5424_v38 = vadd.f32 %v5423_v57, %v5422_v22  ;;  %v5425_v51 = vsel %vm284_vm1, %v5392_v1, 0.0  ;;  %v5427_v9 = vsel %vm284_vm1, %v5393_v35, 0.0  ;;  %v5429_v4 = vsel %vm284_vm1, %v5394_v3, 0.0 }
 0x43c   : > { %v5397_v58 = vmul.f32 %v5364_v62, %v5364_v62  ;;  %v5431_v48 = vsel %vm284_vm1, %v5395_v37, 0.0  ;;  %v5367_v52 = vsub.f32 %v9215_v42, %v5356_v18  ;;  %v5398_v41 = vmul.f32 %v5365_v29, %v5365_v29 }
 0x43d   : > { %v5426_v60 = vadd.f32 %v5425_v51, %v5424_v38  ;;  %v5433_v49 = vsel %vm284_vm1, %v5396_v46, 0.0  ;;  %v5399_v56 = vmul.f32 %v5366_v31, %v5366_v31  ;;  %v5401_v34 = vmul.f32 %v5368_v13, %v5368_v13 }
 0x43e   : > { %v5435_v63 = vsel %vm284_vm1, %v5397_v58, 0.0  ;;  %v5400_v25 = vmul.f32 %v5367_v52, %v5367_v52  ;;  %v5437_v10 = vsel %vm284_vm1, %v5398_v41, 0.0  ;;  %v5402_v40 = vmul.f32 %v5369_v36, %v5369_v36 }
 0x43f   : > { %v5428_v15 = vadd.f32 %v5427_v9, %v5426_v60  ;;  %v5439_v7 = vsel %vm284_vm1, %v5399_v56, 0.0  ;;  %v5403_v18 = vmul.f32 %v9423_v27, %v9423_v27  ;;  %v5443_v31 = vsel %vm284_vm1, %v5401_v34, 0.0 }
 0x440   : > { %v5441_v14 = vsel %vm284_vm1, %v5400_v25, 0.0  ;;  %v5404_v28 = vmul.f32 %v9426_v23, %v9426_v23  ;;  %v5445_v59 = vsel %vm284_vm1, %v5402_v40, 0.0  ;;  %v5405_v13 = vmul.f32 %v9429_v39, %v9429_v39 }
 0x441   : > { %v5430_v47 = vadd.f32 %v5429_v4, %v5428_v15  ;;  %v5447_v36 = vsel %vm284_vm1, %v5403_v18, 0.0  ;;  %v5406_v53 = vmul.f32 %v9432_v55, %v9432_v55  ;;  %v5407_v22 = vmul.f32 %v9435_v19, %v9435_v19 }
 0x442   : > { %v5449_v27 = vsel %vm284_vm1, %v5404_v28, 0.0  ;;  %v5451_v23 = vsel %vm284_vm1, %v5405_v13, 0.0  ;;  %v5408_v38 = vmul.f32 %v9438_v8, %v9438_v8  ;;  %v5409_v3 = vmul.f32 %v9441_v0, %v9441_v0 }
 0x443   : > { %v5432_v20 = vadd.f32 %v5431_v48, %v5430_v47  ;;  %v5453_v39 = vsel %vm284_vm1, %v5406_v53, 0.0  ;;  %v5455_v55 = vsel %vm284_vm1, %v5407_v22, 0.0  ;;  %v5410_v60 = vmul.f32 %v9444_v24, %v9444_v24 }
 0x444   : > { %v5457_v19 = vsel %vm284_vm1, %v5408_v38, 0.0  ;;  %v5411_v37 = vmul.f32 %v9447_v21, %v9447_v21  ;;  %v5459_v8 = vsel %vm284_vm1, %v5409_v3, 0.0  ;;  %v5412_v15 = vmul.f32 %v9450_v30, %v9450_v30 }
 0x445   : > { %v5434_v11 = vadd.f32 %v5433_v49, %v5432_v20  ;;  %v5461_v0 = vsel %vm284_vm1, %v5410_v60, 0.0  ;;  %v5413_v46 = vmul.f32 %v9453_v44, %v9453_v44  ;;  %v5414_v47 = vmul.f32 %v9456_v61, %v9456_v61 }
 0x446   : > { %v5463_v24 = vsel %vm284_vm1, %v5411_v37, 0.0  ;;  %v5465_v21 = vsel %vm284_vm1, %v5412_v15, 0.0  ;;  %v5415_v48 = vmul.f32 %v9459_v45, %v9459_v45  ;;  %v5416_v52 = vmul.f32 %v9462_v6, %v9462_v6 }
 0x447   : > { %v5436_v16 = vadd.f32 %v5435_v63, %v5434_v11  ;;  %v5467_v30 = vsel %vm284_vm1, %v5413_v46, 0.0  ;;  %v5469_v44 = vsel %vm284_vm1, %v5414_v47, 0.0  ;;  %v5417_v49 = vmul.f32 %v9465_v26, %v9465_v26 }
 0x448   : > { %v5471_v61 = vsel %vm284_vm1, %v5415_v48, 0.0  ;;  %v5418_v56 = vmul.f32 %v9467_v17, %v9467_v17  ;;  %v5473_v45 = vsel %vm284_vm1, %v5416_v52, 0.0  ;;  %v5420_v26 = vmul.f32 %v9471_v32, %v9471_v32 }
 0x449   : > { %v5438_v33 = vadd.f32 %v5437_v10, %v5436_v16  ;;  %v5419_v16 = vmul.f32 %v9469_v2, %v9469_v2  ;;  %v5475_v6 = vsel %vm284_vm1, %v5417_v49, 0.0  ;;  %v5421_v17 = vmul.f32 %v9473_v43, %v9473_v43 }
 0x44a   : > { %v5477_v10 = vsel %vm284_vm1, %v5418_v56, 0.0  ;;  %v5481_v2 = vsel %vm284_vm1, %v5420_v26, 0.0 }
 0x44b   : > { %v5440_v5 = vadd.f32 %v5439_v7, %v5438_v33  ;;  %v5479_v34 = vsel %vm284_vm1, %v5419_v16, 0.0  ;;  %v5483_v40 = vsel %vm284_vm1, %v5421_v17, 0.0 }
 0x44d   : > { %v5442_v42 = vadd.f32 %v5441_v14, %v5440_v5 }
 0x44f   : > { %v5444_v50 = vadd.f32 %v5443_v31, %v5442_v42 }
 0x451   : > { %v5446_v12 = vadd.f32 %v5445_v59, %v5444_v50 }
 0x453   : > { %v5448_v1 = vadd.f32 %v5447_v36, %v5446_v12 }
 0x455   : > { %v5450_v35 = vadd.f32 %v5449_v27, %v5448_v1 }
 0x457   : > { %v5452_v57 = vadd.f32 %v5451_v23, %v5450_v35 }
 0x459   : > { %v5454_v54 = vadd.f32 %v5453_v39, %v5452_v57 }
 0x45b   : > { %v5456_v51 = vadd.f32 %v5455_v55, %v5454_v54 }
 0x45d   : > { %v5458_v62 = vadd.f32 %v5457_v19, %v5456_v51 }
 0x45f   : > { %v5460_v9 = vadd.f32 %v5459_v8, %v5458_v62 }
 0x461   : > { %v5462_v29 = vadd.f32 %v5461_v0, %v5460_v9 }
 0x463   : > { %v5464_v4 = vadd.f32 %v5463_v24, %v5462_v29 }
 0x465   : > { %v5466_v58 = vadd.f32 %v5465_v21, %v5464_v4 }
 0x467   : > { %v5468_v20 = vadd.f32 %v5467_v30, %v5466_v58 }
 0x469   : > { %v5470_v41 = vadd.f32 %v5469_v44, %v5468_v20 }
 0x46b   : > { %v5472_v11 = vadd.f32 %v5471_v61, %v5470_v41 }
 0x46d   : > { %v5474_v63 = vadd.f32 %v5473_v45, %v5472_v11 }
 0x46f   : > { %v5476_v25 = vadd.f32 %v5475_v6, %v5474_v63 }
 0x471   : > { %v5478_v33 = vadd.f32 %v5477_v10, %v5476_v25 }
 0x473   : > { %v5480_v7 = vadd.f32 %v5479_v34, %v5478_v33 }
 0x475   : > { %v5482_v5 = vadd.f32 %v5481_v2, %v5480_v7 }
 0x477   : > { %v5484_v14 = vadd.f32 %v5483_v40, %v5482_v5 }
 0x479   : > { %v5485_v42 = vrot.slane %v5484_v14, 4 }
 0x47b   : > { %v5486_v32 = vadd.f32 %v5485_v42, %v5484_v14 }
 0x47d   : > { %v5487_v18 = vrot.slane %v5486_v32, 2 }
 0x47f   : > { %v5488_v31 = vadd.f32 %v5487_v18, %v5486_v32 }
 0x481   : > { %v5489_v50 = vrot.slane %v5488_v31, 1 }
 0x483   : > { %v5490_v43 = vadd.f32 %v5489_v50, %v5488_v31 }
 0x485   : > { %5491 = vst.msk [vmem:[%s9415_s26 + $0x1] sm:$0x1] %vm293_vm2, %v5490_v43 }
 0x486   : > { %7770 = shalt.err (!%p7767_p3)
}
 0x487   : > { %s7771_s17 = scalar_lea.hbm %s9560_s12, 32  ;;  %s7775_s11 = scalar_lea.hbm %s9612_s6, 64 }
 0x488   : > { %p7772_p4 = scmp.ne.s32.totalorder %s9560_s12, %s7771_s17  ;;  %p7776_p9 = scmp.lt.u32.totalorder %s9560_s12, %s9612_s6 }
 0x489   : > { %p7777_p10 = scmp.lt.u32.totalorder %s7775_s11, %s7771_s17  ;;  %p7779_p12 = scmp.lt.u32.totalorder %s7771_s17, %s9560_s12 }
 0x48a   : > { %p7773_p7 = pnand %p7772_p4, %p7896_p5 }
 0x48b   : > { %p7778_p11 = por %p7777_p10, %p7776_p9 }
 0x48c   : > { %p7774_p8 = pneg %p7773_p7 }
 0x48d   : > { %p7780_p13 = por %p7779_p12, %p7778_p11 }
 0x48f   : > { %p7781_p0 = pnand %p7780_p13, %p7774_p8 }
 0x491   : > { %7784 = shalt.err (!%p7781_p0)
}
 0x492   : > { %7717 = dma.vmem_to_hbm [thread:$0]  (%p7896_p5), %s9562_s29, 32, %s9560_s12, %s5659_s13  }
 0x493 PF: > { %p7723_p1 = scmp.ge.s32.totalorder %s7819_s24, 2  ;;  %s5695_s28 = sand.u32 1, %s7807_s21  }
 0x494   : > { %s5696_s9 = scalar_lea.sflag [#allocation5], %s5695_s28 }
 0x495   : > { %p7720_p2 = pnand %p7723_p1, %p7900_p6 }
 0x497   : > { %7802 = dma.done.wait (!%p7720_p2), %s5696_s9, 32  }
 0x498   : > { %7804 = vsyncadd (!%p7720_p2), %s5696_s9, 4294967264  ;;  %p17_p3 = scmp.ge.s32.totalorder %s7883_s27, 4   ;;  %s9615_s21 = smov %s7811_s22 }
 0x499   : > { %s9616_s22 = smov %s7815_s23  ;;  %s9617_s23 = smov %s7894_s30 }
 0x49a   : > { %s9618_s24 = smov %s7883_s27  ;;  %19 = sbr.rel (!%p17_p3) target bundleno = 3 (0x3), region = 110 }
 0x4a1   :  { %5701 = vsyncpa [#allocation5], 1 }
 0x4a2   :  { %5703 = vsyncpa [#allocation5 + $0x1], 1 }

</bundles_post_ra>
